<compile_context>
chip_gen: v7x
topology: tpu7x:2x2x1
jax: 0.10.0
libtpu: 0.0.40
codegen_flags: <defaults>
</compile_context>

<pallas_src>
import functools

import jax
import jax.numpy as jnp
from jax.experimental import pallas as pl
from jax.experimental.pallas import tpu as pltpu

LEVEL_AMOUNT = 2
IN_CHANNELS = 3
FEATURES = 8
BLOCK_AMOUNT = 1
LEAKY_SLOPE = 0.2

_LANE_TILE_CAP = 2048          # lanes per grid step (review: 512 -> 2048)


def _round_up(x, m):
    return ((x + m - 1) // m) * m


def _pick_lane_tile(py):
    """lane_tile (multiple of 128) and number of lane blocks for `py` lanes.

    Guarantees >=2 blocks whenever py >= 256 (megacore sharding on v7x) and a
    bounded block size (no full-extent fallback) for any py.
    """
    if py < 256:
        return _round_up(py, 128), 1
    nb = max(2, -(-py // _LANE_TILE_CAP))
    pt = _round_up(-(-py // nb), 128)
    nb = -(-py // pt)
    return pt, nb


# ---------------------------------------------------------------------------
# The single Pallas kernel: generic KHxKW conv as tap-shifted lane GEMMs.
#   w_ref : (T, Coutp, Cin)   bf16, T = KH*KW taps, tap order (kh, kw)
#   b_ref : (Coutp, 1)        f32, folded bias/BN shift
#   x_ref : (Cin, Lxp)        bf16, whole padded image of one batch element,
#                             flattened over padded (row, col); resident in
#                             VMEM across the lane-block axis (constant index)
#   y_ref : (Coutp, lane_tile) f32, lane-dense output tile
# Per grid step: one extended lane window is loaded once, each tap is a static
# lane slice of it, and T tiny MXU dots accumulate in registers (mem-bound;
# MXU under-fill is irrelevant here).
# ---------------------------------------------------------------------------
def _conv_taps_kernel(w_ref, b_ref, x_ref, y_ref, *, shifts, lane_tile,
                      ext_width, act):
    j = pl.program_id(1)
    base = pl.multiple_of(j * lane_tile, 128)
    ext = x_ref[:, pl.ds(base, ext_width)]                 # (Cin, ext_width)
    acc = jnp.zeros(y_ref.shape, jnp.float32)
    for t, s in enumerate(shifts):                          # static unroll
        acc = acc + jnp.dot(w_ref[t], ext[:, s:s + lane_tile],
                            preferred_element_type=jnp.float32)
    y = acc + b_ref[...]
    if act == "leaky_relu":
        y = jnp.where(y >= 0.0, y, LEAKY_SLOPE * y)
    elif act == "sigmoid":
        # exact sigmoid via tanh -> EUP slot, range stays in [0, 1]
        y = 0.5 * (jnp.tanh(0.5 * y) + 1.0)
    y_ref[...] = y


def _conv_core(x, w, shift, *, pads, act):
    """Stride-1 conv + shift + activation via the tap-shift kernel.

    x     : (Cin, N, H, W) f32      w : (Cout, Cin, KH, KW) f32 (scale folded)
    shift : (Cout,) f32             pads = (top, bottom, left, right)
    returns (Cout, N, Hout, Wout) f32
    """
    Cin, N, H, W = x.shape
    Cout, wcin, KH, KW = w.shape
    assert wcin == Cin
    p_top, p_bot, p_left, p_right = pads
    Hp, Wp = H + p_top + p_bot, W + p_left + p_right
    Hout, Wout = Hp - KH + 1, Wp - KW + 1

    Py = Hout * Wp                               # output lane grid (junk cols >= Wout)
    lane_tile, nb = _pick_lane_tile(Py)
    Pyp = nb * lane_tile
    max_shift = (KH - 1) * Wp + (KW - 1)
    halo = _round_up(max_shift, 128)
    ext_width = lane_tile + halo
    Lxp = Pyp + halo                             # input lanes (multiple of 128)
    Coutp = _round_up(Cout, 8)                   # full-sublane stores

    # Padded, flattened, bf16 input (1x the activation; no patch slab).
    xp = jnp.pad(x, ((0, 0), (0, 0), (p_top, p_bot), (p_left, p_right)))
    X = xp.transpose(1, 0, 2, 3).reshape(N, Cin, Hp * Wp)
    X = jnp.pad(X, ((0, 0), (0, 0), (0, Lxp - Hp * Wp))).astype(jnp.bfloat16)

    T = KH * KW
    wt = w.transpose(2, 3, 0, 1).reshape(T, Cout, Cin)      # tap-major (kh, kw)
    wt = jnp.pad(wt, ((0, 0), (0, Coutp - Cout), (0, 0))).astype(jnp.bfloat16)
    bt = jnp.pad(shift.reshape(Cout, 1).astype(jnp.float32),
                 ((0, Coutp - Cout), (0, 0)))
    tap_shifts = tuple(kh * Wp + kw for kh in range(KH) for kw in range(KW))

    Yp = pl.pallas_call(
        functools.partial(_conv_taps_kernel, shifts=tap_shifts,
                          lane_tile=lane_tile, ext_width=ext_width, act=act),
        out_shape=jax.ShapeDtypeStruct((N, Coutp, Pyp), jnp.float32),
        grid=(N, nb),
        in_specs=[
            pl.BlockSpec((T, Coutp, Cin), lambda n, j: (0, 0, 0)),
            pl.BlockSpec((Coutp, 1), lambda n, j: (0, 0)),
            # whole padded image of batch element n, resident across j
            pl.BlockSpec((None, Cin, Lxp), lambda n, j: (n, 0, 0)),
        ],
        out_specs=pl.BlockSpec((None, Coutp, lane_tile), lambda n, j: (n, 0, j)),
        compiler_params=pltpu.CompilerParams(
            dimension_semantics=("parallel", "parallel")),
    )(wt, bt, X)

    y = Yp[:, :Cout, :Py].reshape(N, Cout, Hout, Wp)[:, :, :, :Wout]
    return y.transpose(1, 0, 2, 3)


# ---------------------------------------------------------------------------
# Wrapper-side weight / layout rewrites (pure plumbing, tiny or 1x-sized).
# ---------------------------------------------------------------------------
def _space_to_depth(x):
    """(C, N, H, W) -> (4C, N, H//2, W//2), channel order (ph, pw, c)."""
    C, N, H, W = x.shape
    xs = x.reshape(C, N, H // 2, 2, W // 2, 2)        # [c, n, i, ph, j, pw]
    xs = xs.transpose(3, 5, 0, 1, 2, 4)               # [ph, pw, c, n, i, j]
    return xs.reshape(4 * C, N, H // 2, W // 2)


def _stride2_s2d_weights(w):
    """3x3 stride-2 weights -> 2x2 stride-1 weights on space-to-depth input."""
    Cout, Cin, KH, KW = w.shape
    assert KH == 3 and KW == 3
    ws = jnp.zeros((2, 2, Cout, Cin, 2, 2), w.dtype)  # [ph, pw, co, ci, di, dj]
    tap = {0: (1, 0), 1: (0, 1), 2: (1, 1)}           # k -> (phase, new tap)
    for kh in range(3):
        ph, di = tap[kh]
        for kw in range(3):
            pw, dj = tap[kw]
            ws = ws.at[ph, pw, :, :, di, dj].set(w[:, :, kh, kw])
    return ws.transpose(2, 0, 1, 3, 4, 5).reshape(Cout, 4 * Cin, 2, 2)


def _upsample_phase_weights(w):
    """nearest-2x-upsample + 3x3 conv  ==  one 3x3 conv on the low-res input
    with 4 phase-combined kernels (phase-major along Cout)."""
    M = [jnp.array([[1., 0., 0.], [0., 1., 0.], [0., 1., 0.]], w.dtype),  # a=0
         jnp.array([[0., 1., 0.], [0., 1., 0.], [0., 0., 1.]], w.dtype)]  # a=1
    blocks = []
    for a in range(2):
        for b in range(2):
            wa = jnp.einsum('oikl,kd->oidl', w, M[a])
            wab = jnp.einsum('oidl,le->oide', wa, M[b])
            blocks.append(wab)
    return jnp.concatenate(blocks, axis=0)            # (4*Cout, Cin, 3, 3)


def _depth_to_space(y, cout):
    """(4*Cout, N, Hl, Wl) phase-major -> (Cout, N, 2Hl, 2Wl)."""
    _, N, Hl, Wl = y.shape
    y = y.reshape(2, 2, cout, N, Hl, Wl)              # [a, b, co, n, i, j]
    y = y.transpose(2, 3, 4, 0, 5, 1)                 # [co, n, i, a, j, b]
    return y.reshape(cout, N, 2 * Hl, 2 * Wl)


def conv_bn_act(x, w, scale, shift, *, stride=1, upsample=False, act="none"):
    """Conv + folded (bias / eval-BN) + activation, all via the one kernel."""
    w = (w * scale[:, None, None, None]).astype(jnp.float32)   # fold BN scale
    shift = shift.astype(jnp.float32)
    if upsample:
        cout = w.shape[0]
        y = _conv_core(x, _upsample_phase_weights(w), jnp.tile(shift, 4),
                       pads=(1, 1, 1, 1), act=act)
        return _depth_to_space(y, cout)
    if stride == 2:
        # TODO(synk): even spatial dims assumed for the space-to-depth rewrite.
        assert x.shape[2] % 2 == 0 and x.shape[3] % 2 == 0
        return _conv_core(_space_to_depth(x), _stride2_s2d_weights(w), shift,
                          pads=(1, 0, 1, 0), act=act)
    KH, KW = w.shape[2], w.shape[3]
    return _conv_core(x, w, shift,
                      pads=((KH - 1) // 2, (KH - 1) // 2,
                            (KW - 1) // 2, (KW - 1) // 2), act=act)


# ---------------------------------------------------------------------------
# Concat_layer (the spec module): center-crop dims 2/3 to min, concat channels.
# ---------------------------------------------------------------------------
def concat_layer(inputs):
    th = min(t.shape[2] for t in inputs)
    tw = min(t.shape[3] for t in inputs)
    cropped = []
    for t in inputs:
        dh = (t.shape[2] - th) // 2
        dw = (t.shape[3] - tw) // 2
        cropped.append(t[:, :, dh:dh + th, dw:dw + tw])
    return jnp.concatenate(cropped, axis=0)     # channel axis in (C, N, H, W)


# ---------------------------------------------------------------------------
# Deterministic parameter initialization (eval-mode BatchNorm folded).
# ---------------------------------------------------------------------------
def _init_conv(key, cout, cin, kh, kw):
    wkey, bkey = jax.random.split(key)
    fan_in = float(kh * kw * cin)
    w = jax.random.normal(wkey, (cout, cin, kh, kw), jnp.float32) / jnp.sqrt(fan_in)
    b = 0.01 * jax.random.normal(bkey, (cout,), jnp.float32)
    return w, b


def _fold_bias_bn(bias, cout, eps=1e-5):
    gamma = jnp.ones((cout,), jnp.float32)
    beta = jnp.zeros((cout,), jnp.float32)
    mean = jnp.zeros((cout,), jnp.float32)
    var = jnp.ones((cout,), jnp.float32)
    scale = gamma / jnp.sqrt(var + eps)
    shift = (bias - mean) * scale + beta
    return scale, shift


def init_params(key):
    keys = iter(jax.random.split(key, 32))
    params = {"down": [], "enc": [], "dec": [None] * LEVEL_AMOUNT,
              "up": [None] * LEVEL_AMOUNT, "last": None}

    for level in range(LEVEL_AMOUNT):
        cin = IN_CHANNELS if level == 0 else FEATURES
        w, b = _init_conv(next(keys), FEATURES, cin, 3, 3)
        s, sh = _fold_bias_bn(b, FEATURES)
        params["down"].append({"w": w, "scale": s, "shift": sh})

        blocks, c = [], FEATURES
        for _ in range(BLOCK_AMOUNT):
            w, b = _init_conv(next(keys), FEATURES, c, 3, 3)
            s, sh = _fold_bias_bn(b, FEATURES)
            blocks.append({"w": w, "scale": s, "shift": sh})
            c = FEATURES
        params["enc"].append(blocks)

    for level in range(LEVEL_AMOUNT - 1, -1, -1):
        cin = FEATURES if level == LEVEL_AMOUNT - 1 else 2 * FEATURES
        blocks, c = [], cin
        for _ in range(BLOCK_AMOUNT):
            w, b = _init_conv(next(keys), FEATURES, c, 3, 3)
            s, sh = _fold_bias_bn(b, FEATURES)
            blocks.append({"w": w, "scale": s, "shift": sh})
            c = FEATURES
        params["dec"][level] = blocks

        w, b = _init_conv(next(keys), FEATURES, FEATURES, 3, 3)
        s, sh = _fold_bias_bn(b, FEATURES)      # UpBlock's trailing BN folded
        params["up"][level] = {"w": w, "scale": s, "shift": sh}

    w, b = _init_conv(next(keys), IN_CHANNELS, FEATURES + IN_CHANNELS, 1, 1)
    params["last"] = {"w": w,
                      "scale": jnp.ones((IN_CHANNELS,), jnp.float32),
                      "shift": b}
    return params


# ---------------------------------------------------------------------------
# Unet forward (NCHW in / NCHW out, like the PyTorch module).
# ---------------------------------------------------------------------------
def unet_forward(x_nchw, params):
    x = jnp.transpose(x_nchw, (1, 0, 2, 3))      # (C, N, H, W)
    origin_x = x
    encoder_conv_outputs = [None] * LEVEL_AMOUNT

    # Encoder
    for level in range(LEVEL_AMOUNT):
        p = params["down"][level]
        x = conv_bn_act(x, p["w"], p["scale"], p["shift"],
                        stride=2, act="leaky_relu")
        for blk in params["enc"][level]:
            x = conv_bn_act(x, blk["w"], blk["scale"], blk["shift"],
                            act="leaky_relu")
        encoder_conv_outputs[level] = x

    # Decoder
    for level in range(LEVEL_AMOUNT - 1, -1, -1):
        if level != LEVEL_AMOUNT - 1:
            x = concat_layer([x, encoder_conv_outputs[level]])
        for blk in params["dec"][level]:
            x = conv_bn_act(x, blk["w"], blk["scale"], blk["shift"],
                            act="leaky_relu")
        p = params["up"][level]                  # fused upsample + conv (+BN)
        x = conv_bn_act(x, p["w"], p["scale"], p["shift"],
                        upsample=True, act="none")

    x = concat_layer([x, origin_x])
    p = params["last"]
    x = conv_bn_act(x, p["w"], p["scale"], p["shift"], act="sigmoid")
    return jnp.transpose(x, (1, 0, 2, 3))        # back to NCHW


if __name__ == "__main__":
    key = jax.random.PRNGKey(0)
    pkey, xkey = jax.random.split(key)
    params = init_params(pkey)

    # NCHW input like the PyTorch module: (batch=2, channels=3, 32, 32).
    x = jax.random.uniform(xkey, (2, IN_CHANNELS, 32, 32), jnp.float32)

    fwd = jax.jit(unet_forward)
    out = jax.block_until_ready(fwd(x, params))
    assert out.shape == (2, IN_CHANNELS, 32, 32), out.shape
    assert bool(jnp.all(jnp.isfinite(out)))
    assert bool(jnp.all((out >= 0.0) & (out <= 1.0)))    # sigmoid output range
    print("KERNEL_OK")
</pallas_src>

<mosaic_0001>
module attributes {stable_mosaic.version = 11 : i64} {
  func.func @_conv_taps_kernel(%arg0: i32, %arg1: i32, %arg2: memref<4x8x12xbf16, #tpu.memory_space<vmem>>, %arg3: memref<8x1xf32, #tpu.memory_space<vmem>>, %arg4: memref<1x12x640xbf16, #tpu.memory_space<vmem>>, %arg5: memref<1x8x256xf32, #tpu.memory_space<vmem>>) attributes {dimension_semantics = [#tpu.dimension_semantics<parallel>, #tpu.dimension_semantics<parallel>], iteration_bounds = array<i64: 2, 2>, scalar_prefetch = 0 : i64, scratch_operands = 0 : i64, tpu.core_type = #tpu.core_type<tc>, window_params = [{pipeline_mode = #tpu.pipeline_mode<synchronous>, transform_indices = @transform_0, window_bounds = array<i64: 4, 8, 12>}, {pipeline_mode = #tpu.pipeline_mode<synchronous>, transform_indices = @transform_1, window_bounds = array<i64: 8, 1>}, {transform_indices = @transform_2, window_bounds = array<i64: 1, 12, 640>}, {transform_indices = @transform_3, window_bounds = array<i64: 1, 8, 256>}]} {
    %c256_i32 = arith.constant 256 : i32
    %0 = arith.muli %arg1, %c256_i32 : i32
    %1 = tpu.assume_multiple %0, 128 : i32
    %c0 = arith.constant 0 : index
    %c0_0 = arith.constant 0 : index
    %2 = arith.index_cast %1 : i32 to index
    %3 = vector.load %arg4[%c0, %c0_0, %2] : memref<1x12x640xbf16, #tpu.memory_space<vmem>>, vector<1x12x384xbf16>
    %4 = vector.shape_cast %3 : vector<1x12x384xbf16> to vector<12x384xbf16>
    %cst = arith.constant 0.000000e+00 : f32
    %5 = vector.broadcast %cst : f32 to vector<8x256xf32>
    %c0_1 = arith.constant 0 : index
    %c0_2 = arith.constant 0 : index
    %c0_3 = arith.constant 0 : index
    %6 = vector.load %arg2[%c0_1, %c0_2, %c0_3] : memref<4x8x12xbf16, #tpu.memory_space<vmem>>, vector<1x8x12xbf16>
    %7 = vector.shape_cast %6 : vector<1x8x12xbf16> to vector<8x12xbf16>
    %8 = vector.extract_strided_slice %4 {offsets = [0, 0], sizes = [12, 256], strides = [1, 1]} : vector<12x384xbf16> to vector<12x256xbf16>
    %cst_4 = arith.constant dense<0.000000e+00> : vector<8x256xf32>
    %9 = tpu.matmul %7, %8, %cst_4 {dimension_numbers = #tpu.dot_dimension_numbers<[1], [0], [0], [1], [0, 0, 1, 1], [], []>} : vector<8x12xbf16>, vector<12x256xbf16>, vector<8x256xf32> -> vector<8x256xf32>
    %10 = arith.addf %5, %9 : vector<8x256xf32>
    %c1 = arith.constant 1 : index
    %c0_5 = arith.constant 0 : index
    %c0_6 = arith.constant 0 : index
    %11 = vector.load %arg2[%c1, %c0_5, %c0_6] : memref<4x8x12xbf16, #tpu.memory_space<vmem>>, vector<1x8x12xbf16>
    %12 = vector.shape_cast %11 : vector<1x8x12xbf16> to vector<8x12xbf16>
    %13 = vector.extract_strided_slice %4 {offsets = [0, 1], sizes = [12, 256], strides = [1, 1]} : vector<12x384xbf16> to vector<12x256xbf16>
    %cst_7 = arith.constant dense<0.000000e+00> : vector<8x256xf32>
    %14 = tpu.matmul %12, %13, %cst_7 {dimension_numbers = #tpu.dot_dimension_numbers<[1], [0], [0], [1], [0, 0, 1, 1], [], []>} : vector<8x12xbf16>, vector<12x256xbf16>, vector<8x256xf32> -> vector<8x256xf32>
    %15 = arith.addf %10, %14 : vector<8x256xf32>
    %c2 = arith.constant 2 : index
    %c0_8 = arith.constant 0 : index
    %c0_9 = arith.constant 0 : index
    %16 = vector.load %arg2[%c2, %c0_8, %c0_9] : memref<4x8x12xbf16, #tpu.memory_space<vmem>>, vector<1x8x12xbf16>
    %17 = vector.shape_cast %16 : vector<1x8x12xbf16> to vector<8x12xbf16>
    %18 = vector.extract_strided_slice %4 {offsets = [0, 17], sizes = [12, 256], strides = [1, 1]} : vector<12x384xbf16> to vector<12x256xbf16>
    %cst_10 = arith.constant dense<0.000000e+00> : vector<8x256xf32>
    %19 = tpu.matmul %17, %18, %cst_10 {dimension_numbers = #tpu.dot_dimension_numbers<[1], [0], [0], [1], [0, 0, 1, 1], [], []>} : vector<8x12xbf16>, vector<12x256xbf16>, vector<8x256xf32> -> vector<8x256xf32>
    %20 = arith.addf %15, %19 : vector<8x256xf32>
    %c3 = arith.constant 3 : index
    %c0_11 = arith.constant 0 : index
    %c0_12 = arith.constant 0 : index
    %21 = vector.load %arg2[%c3, %c0_11, %c0_12] : memref<4x8x12xbf16, #tpu.memory_space<vmem>>, vector<1x8x12xbf16>
    %22 = vector.shape_cast %21 : vector<1x8x12xbf16> to vector<8x12xbf16>
    %23 = vector.extract_strided_slice %4 {offsets = [0, 18], sizes = [12, 256], strides = [1, 1]} : vector<12x384xbf16> to vector<12x256xbf16>
    %cst_13 = arith.constant dense<0.000000e+00> : vector<8x256xf32>
    %24 = tpu.matmul %22, %23, %cst_13 {dimension_numbers = #tpu.dot_dimension_numbers<[1], [0], [0], [1], [0, 0, 1, 1], [], []>} : vector<8x12xbf16>, vector<12x256xbf16>, vector<8x256xf32> -> vector<8x256xf32>
    %25 = arith.addf %20, %24 : vector<8x256xf32>
    %c0_14 = arith.constant 0 : index
    %c0_15 = arith.constant 0 : index
    %26 = vector.load %arg3[%c0_14, %c0_15] : memref<8x1xf32, #tpu.memory_space<vmem>>, vector<8x1xf32>
    %27 = vector.broadcast %26 : vector<8x1xf32> to vector<8x256xf32>
    %28 = arith.addf %25, %27 : vector<8x256xf32>
    %cst_16 = arith.constant 0.000000e+00 : f32
    %29 = vector.broadcast %cst_16 : f32 to vector<8x256xf32>
    %30 = arith.cmpf oge, %28, %29 : vector<8x256xf32>
    %cst_17 = arith.constant 2.000000e-01 : f32
    %31 = vector.broadcast %cst_17 : f32 to vector<8x256xf32>
    %32 = arith.mulf %31, %28 : vector<8x256xf32>
    %33 = arith.select %30, %28, %32 : vector<8x256xi1>, vector<8x256xf32>
    %c0_18 = arith.constant 0 : index
    %c0_19 = arith.constant 0 : index
    %c0_20 = arith.constant 0 : index
    %34 = vector.load %arg5[%c0_18, %c0_19, %c0_20] : memref<1x8x256xf32, #tpu.memory_space<vmem>>, vector<1x8x256xf32>
    %35 = vector.shape_cast %34 : vector<1x8x256xf32> to vector<8x256xf32>
    %36 = vector.shape_cast %33 : vector<8x256xf32> to vector<1x8x256xf32>
    tpu.vector_store %arg5[%c0_18, %c0_19, %c0_20], %36 {strides = array<i32>} : memref<1x8x256xf32, #tpu.memory_space<vmem>>, vector<1x8x256xf32>,
    return
  }
  func.func @transform_0(%arg0: i32, %arg1: i32) -> (i32, i32, i32) {
    %c0_i32 = arith.constant 0 : i32
    %c0_i32_0 = arith.constant 0 : i32
    %c0_i32_1 = arith.constant 0 : i32
    %c0_i32_2 = arith.constant 0 : i32
    return %c0_i32, %c0_i32_0, %c0_i32_1 : i32, i32, i32
  }
  func.func @transform_1(%arg0: i32, %arg1: i32) -> (i32, i32) {
    %c0_i32 = arith.constant 0 : i32
    %c0_i32_0 = arith.constant 0 : i32
    %c0_i32_1 = arith.constant 0 : i32
    return %c0_i32, %c0_i32_0 : i32, i32
  }
  func.func @transform_2(%arg0: i32, %arg1: i32) -> (i32, i32, i32) {
    %c0_i32 = arith.constant 0 : i32
    %c0_i32_0 = arith.constant 0 : i32
    %c0_i32_1 = arith.constant 0 : i32
    return %arg0, %c0_i32, %c0_i32_0 : i32, i32, i32
  }
  func.func @transform_3(%arg0: i32, %arg1: i32) -> (i32, i32, i32) {
    %c0_i32 = arith.constant 0 : i32
    %c0_i32_0 = arith.constant 0 : i32
    return %arg0, %c0_i32, %arg1 : i32, i32, i32
  }
}

module attributes {stable_mosaic.version = 11 : i64} {
  func.func @_conv_taps_kernel(%arg0: i32, %arg1: i32, %arg2: memref<9x8x8xbf16, #tpu.memory_space<vmem>>, %arg3: memref<8x1xf32, #tpu.memory_space<vmem>>, %arg4: memref<1x8x640xbf16, #tpu.memory_space<vmem>>, %arg5: memref<1x8x256xf32, #tpu.memory_space<vmem>>) attributes {dimension_semantics = [#tpu.dimension_semantics<parallel>, #tpu.dimension_semantics<parallel>], iteration_bounds = array<i64: 2, 2>, scalar_prefetch = 0 : i64, scratch_operands = 0 : i64, tpu.core_type = #tpu.core_type<tc>, window_params = [{pipeline_mode = #tpu.pipeline_mode<synchronous>, transform_indices = @transform_0, window_bounds = array<i64: 9, 8, 8>}, {pipeline_mode = #tpu.pipeline_mode<synchronous>, transform_indices = @transform_1, window_bounds = array<i64: 8, 1>}, {transform_indices = @transform_2, window_bounds = array<i64: 1, 8, 640>}, {transform_indices = @transform_3, window_bounds = array<i64: 1, 8, 256>}]} {
    %c256_i32 = arith.constant 256 : i32
    %0 = arith.muli %arg1, %c256_i32 : i32
    %1 = tpu.assume_multiple %0, 128 : i32
    %c0 = arith.constant 0 : index
    %c0_0 = arith.constant 0 : index
    %2 = arith.index_cast %1 : i32 to index
    %3 = vector.load %arg4[%c0, %c0_0, %2] : memref<1x8x640xbf16, #tpu.memory_space<vmem>>, vector<1x8x384xbf16>
    %4 = vector.shape_cast %3 : vector<1x8x384xbf16> to vector<8x384xbf16>
    %cst = arith.constant 0.000000e+00 : f32
    %5 = vector.broadcast %cst : f32 to vector<8x256xf32>
    %c0_1 = arith.constant 0 : index
    %c0_2 = arith.constant 0 : index
    %c0_3 = arith.constant 0 : index
    %6 = vector.load %arg2[%c0_1, %c0_2, %c0_3] : memref<9x8x8xbf16, #tpu.memory_space<vmem>>, vector<1x8x8xbf16>
    %7 = vector.shape_cast %6 : vector<1x8x8xbf16> to vector<8x8xbf16>
    %8 = vector.extract_strided_slice %4 {offsets = [0, 0], sizes = [8, 256], strides = [1, 1]} : vector<8x384xbf16> to vector<8x256xbf16>
    %cst_4 = arith.constant dense<0.000000e+00> : vector<8x256xf32>
    %9 = tpu.matmul %7, %8, %cst_4 {dimension_numbers = #tpu.dot_dimension_numbers<[1], [0], [0], [1], [0, 0, 1, 1], [], []>} : vector<8x8xbf16>, vector<8x256xbf16>, vector<8x256xf32> -> vector<8x256xf32>
    %10 = arith.addf %5, %9 : vector<8x256xf32>
    %c1 = arith.constant 1 : index
    %c0_5 = arith.constant 0 : index
    %c0_6 = arith.constant 0 : index
    %11 = vector.load %arg2[%c1, %c0_5, %c0_6] : memref<9x8x8xbf16, #tpu.memory_space<vmem>>, vector<1x8x8xbf16>
    %12 = vector.shape_cast %11 : vector<1x8x8xbf16> to vector<8x8xbf16>
    %13 = vector.extract_strided_slice %4 {offsets = [0, 1], sizes = [8, 256], strides = [1, 1]} : vector<8x384xbf16> to vector<8x256xbf16>
    %cst_7 = arith.constant dense<0.000000e+00> : vector<8x256xf32>
    %14 = tpu.matmul %12, %13, %cst_7 {dimension_numbers = #tpu.dot_dimension_numbers<[1], [0], [0], [1], [0, 0, 1, 1], [], []>} : vector<8x8xbf16>, vector<8x256xbf16>, vector<8x256xf32> -> vector<8x256xf32>
    %15 = arith.addf %10, %14 : vector<8x256xf32>
    %c2 = arith.constant 2 : index
    %c0_8 = arith.constant 0 : index
    %c0_9 = arith.constant 0 : index
    %16 = vector.load %arg2[%c2, %c0_8, %c0_9] : memref<9x8x8xbf16, #tpu.memory_space<vmem>>, vector<1x8x8xbf16>
    %17 = vector.shape_cast %16 : vector<1x8x8xbf16> to vector<8x8xbf16>
    %18 = vector.extract_strided_slice %4 {offsets = [0, 2], sizes = [8, 256], strides = [1, 1]} : vector<8x384xbf16> to vector<8x256xbf16>
    %cst_10 = arith.constant dense<0.000000e+00> : vector<8x256xf32>
    %19 = tpu.matmul %17, %18, %cst_10 {dimension_numbers = #tpu.dot_dimension_numbers<[1], [0], [0], [1], [0, 0, 1, 1], [], []>} : vector<8x8xbf16>, vector<8x256xbf16>, vector<8x256xf32> -> vector<8x256xf32>
    %20 = arith.addf %15, %19 : vector<8x256xf32>
    %c3 = arith.constant 3 : index
    %c0_11 = arith.constant 0 : index
    %c0_12 = arith.constant 0 : index
    %21 = vector.load %arg2[%c3, %c0_11, %c0_12] : memref<9x8x8xbf16, #tpu.memory_space<vmem>>, vector<1x8x8xbf16>
    %22 = vector.shape_cast %21 : vector<1x8x8xbf16> to vector<8x8xbf16>
    %23 = vector.extract_strided_slice %4 {offsets = [0, 18], sizes = [8, 256], strides = [1, 1]} : vector<8x384xbf16> to vector<8x256xbf16>
    %cst_13 = arith.constant dense<0.000000e+00> : vector<8x256xf32>
    %24 = tpu.matmul %22, %23, %cst_13 {dimension_numbers = #tpu.dot_dimension_numbers<[1], [0], [0], [1], [0, 0, 1, 1], [], []>} : vector<8x8xbf16>, vector<8x256xbf16>, vector<8x256xf32> -> vector<8x256xf32>
    %25 = arith.addf %20, %24 : vector<8x256xf32>
    %c4 = arith.constant 4 : index
    %c0_14 = arith.constant 0 : index
    %c0_15 = arith.constant 0 : index
    %26 = vector.load %arg2[%c4, %c0_14, %c0_15] : memref<9x8x8xbf16, #tpu.memory_space<vmem>>, vector<1x8x8xbf16>
    %27 = vector.shape_cast %26 : vector<1x8x8xbf16> to vector<8x8xbf16>
    %28 = vector.extract_strided_slice %4 {offsets = [0, 19], sizes = [8, 256], strides = [1, 1]} : vector<8x384xbf16> to vector<8x256xbf16>
    %cst_16 = arith.constant dense<0.000000e+00> : vector<8x256xf32>
    %29 = tpu.matmul %27, %28, %cst_16 {dimension_numbers = #tpu.dot_dimension_numbers<[1], [0], [0], [1], [0, 0, 1, 1], [], []>} : vector<8x8xbf16>, vector<8x256xbf16>, vector<8x256xf32> -> vector<8x256xf32>
    %30 = arith.addf %25, %29 : vector<8x256xf32>
    %c5 = arith.constant 5 : index
    %c0_17 = arith.constant 0 : index
    %c0_18 = arith.constant 0 : index
    %31 = vector.load %arg2[%c5, %c0_17, %c0_18] : memref<9x8x8xbf16, #tpu.memory_space<vmem>>, vector<1x8x8xbf16>
    %32 = vector.shape_cast %31 : vector<1x8x8xbf16> to vector<8x8xbf16>
    %33 = vector.extract_strided_slice %4 {offsets = [0, 20], sizes = [8, 256], strides = [1, 1]} : vector<8x384xbf16> to vector<8x256xbf16>
    %cst_19 = arith.constant dense<0.000000e+00> : vector<8x256xf32>
    %34 = tpu.matmul %32, %33, %cst_19 {dimension_numbers = #tpu.dot_dimension_numbers<[1], [0], [0], [1], [0, 0, 1, 1], [], []>} : vector<8x8xbf16>, vector<8x256xbf16>, vector<8x256xf32> -> vector<8x256xf32>
    %35 = arith.addf %30, %34 : vector<8x256xf32>
    %c6 = arith.constant 6 : index
    %c0_20 = arith.constant 0 : index
    %c0_21 = arith.constant 0 : index
    %36 = vector.load %arg2[%c6, %c0_20, %c0_21] : memref<9x8x8xbf16, #tpu.memory_space<vmem>>, vector<1x8x8xbf16>
    %37 = vector.shape_cast %36 : vector<1x8x8xbf16> to vector<8x8xbf16>
    %38 = vector.extract_strided_slice %4 {offsets = [0, 36], sizes = [8, 256], strides = [1, 1]} : vector<8x384xbf16> to vector<8x256xbf16>
    %cst_22 = arith.constant dense<0.000000e+00> : vector<8x256xf32>
    %39 = tpu.matmul %37, %38, %cst_22 {dimension_numbers = #tpu.dot_dimension_numbers<[1], [0], [0], [1], [0, 0, 1, 1], [], []>} : vector<8x8xbf16>, vector<8x256xbf16>, vector<8x256xf32> -> vector<8x256xf32>
    %40 = arith.addf %35, %39 : vector<8x256xf32>
    %c7 = arith.constant 7 : index
    %c0_23 = arith.constant 0 : index
    %c0_24 = arith.constant 0 : index
    %41 = vector.load %arg2[%c7, %c0_23, %c0_24] : memref<9x8x8xbf16, #tpu.memory_space<vmem>>, vector<1x8x8xbf16>
    %42 = vector.shape_cast %41 : vector<1x8x8xbf16> to vector<8x8xbf16>
    %43 = vector.extract_strided_slice %4 {offsets = [0, 37], sizes = [8, 256], strides = [1, 1]} : vector<8x384xbf16> to vector<8x256xbf16>
    %cst_25 = arith.constant dense<0.000000e+00> : vector<8x256xf32>
    %44 = tpu.matmul %42, %43, %cst_25 {dimension_numbers = #tpu.dot_dimension_numbers<[1], [0], [0], [1], [0, 0, 1, 1], [], []>} : vector<8x8xbf16>, vector<8x256xbf16>, vector<8x256xf32> -> vector<8x256xf32>
    %45 = arith.addf %40, %44 : vector<8x256xf32>
    %c8 = arith.constant 8 : index
    %c0_26 = arith.constant 0 : index
    %c0_27 = arith.constant 0 : index
    %46 = vector.load %arg2[%c8, %c0_26, %c0_27] : memref<9x8x8xbf16, #tpu.memory_space<vmem>>, vector<1x8x8xbf16>
    %47 = vector.shape_cast %46 : vector<1x8x8xbf16> to vector<8x8xbf16>
    %48 = vector.extract_strided_slice %4 {offsets = [0, 38], sizes = [8, 256], strides = [1, 1]} : vector<8x384xbf16> to vector<8x256xbf16>
    %cst_28 = arith.constant dense<0.000000e+00> : vector<8x256xf32>
    %49 = tpu.matmul %47, %48, %cst_28 {dimension_numbers = #tpu.dot_dimension_numbers<[1], [0], [0], [1], [0, 0, 1, 1], [], []>} : vector<8x8xbf16>, vector<8x256xbf16>, vector<8x256xf32> -> vector<8x256xf32>
    %50 = arith.addf %45, %49 : vector<8x256xf32>
    %c0_29 = arith.constant 0 : index
    %c0_30 = arith.constant 0 : index
    %51 = vector.load %arg3[%c0_29, %c0_30] : memref<8x1xf32, #tpu.memory_space<vmem>>, vector<8x1xf32>
    %52 = vector.broadcast %51 : vector<8x1xf32> to vector<8x256xf32>
    %53 = arith.addf %50, %52 : vector<8x256xf32>
    %cst_31 = arith.constant 0.000000e+00 : f32
    %54 = vector.broadcast %cst_31 : f32 to vector<8x256xf32>
    %55 = arith.cmpf oge, %53, %54 : vector<8x256xf32>
    %cst_32 = arith.constant 2.000000e-01 : f32
    %56 = vector.broadcast %cst_32 : f32 to vector<8x256xf32>
    %57 = arith.mulf %56, %53 : vector<8x256xf32>
    %58 = arith.select %55, %53, %57 : vector<8x256xi1>, vector<8x256xf32>
    %c0_33 = arith.constant 0 : index
    %c0_34 = arith.constant 0 : index
    %c0_35 = arith.constant 0 : index
    %59 = vector.load %arg5[%c0_33, %c0_34, %c0_35] : memref<1x8x256xf32, #tpu.memory_space<vmem>>, vector<1x8x256xf32>
    %60 = vector.shape_cast %59 : vector<1x8x256xf32> to vector<8x256xf32>
    %61 = vector.shape_cast %58 : vector<8x256xf32> to vector<1x8x256xf32>
    tpu.vector_store %arg5[%c0_33, %c0_34, %c0_35], %61 {strides = array<i32>} : memref<1x8x256xf32, #tpu.memory_space<vmem>>, vector<1x8x256xf32>,
    return
  }
  func.func @transform_0(%arg0: i32, %arg1: i32) -> (i32, i32, i32) {
    %c0_i32 = arith.constant 0 : i32
    %c0_i32_0 = arith.constant 0 : i32
    %c0_i32_1 = arith.constant 0 : i32
    %c0_i32_2 = arith.constant 0 : i32
    return %c0_i32, %c0_i32_0, %c0_i32_1 : i32, i32, i32
  }
  func.func @transform_1(%arg0: i32, %arg1: i32) -> (i32, i32) {
    %c0_i32 = arith.constant 0 : i32
    %c0_i32_0 = arith.constant 0 : i32
    %c0_i32_1 = arith.constant 0 : i32
    return %c0_i32, %c0_i32_0 : i32, i32
  }
  func.func @transform_2(%arg0: i32, %arg1: i32) -> (i32, i32, i32) {
    %c0_i32 = arith.constant 0 : i32
    %c0_i32_0 = arith.constant 0 : i32
    %c0_i32_1 = arith.constant 0 : i32
    return %arg0, %c0_i32, %c0_i32_0 : i32, i32, i32
  }
  func.func @transform_3(%arg0: i32, %arg1: i32) -> (i32, i32, i32) {
    %c0_i32 = arith.constant 0 : i32
    %c0_i32_0 = arith.constant 0 : i32
    return %arg0, %c0_i32, %arg1 : i32, i32, i32
  }
}

module attributes {stable_mosaic.version = 11 : i64} {
  func.func @_conv_taps_kernel(%arg0: i32, %arg1: i32, %arg2: memref<4x8x32xbf16, #tpu.memory_space<vmem>>, %arg3: memref<8x1xf32, #tpu.memory_space<vmem>>, %arg4: memref<1x32x256xbf16, #tpu.memory_space<vmem>>, %arg5: memref<1x8x128xf32, #tpu.memory_space<vmem>>) attributes {dimension_semantics = [#tpu.dimension_semantics<parallel>, #tpu.dimension_semantics<parallel>], iteration_bounds = array<i64: 2, 1>, scalar_prefetch = 0 : i64, scratch_operands = 0 : i64, tpu.core_type = #tpu.core_type<tc>, window_params = [{pipeline_mode = #tpu.pipeline_mode<synchronous>, transform_indices = @transform_0, window_bounds = array<i64: 4, 8, 32>}, {pipeline_mode = #tpu.pipeline_mode<synchronous>, transform_indices = @transform_1, window_bounds = array<i64: 8, 1>}, {transform_indices = @transform_2, window_bounds = array<i64: 1, 32, 256>}, {transform_indices = @transform_3, window_bounds = array<i64: 1, 8, 128>}]} {
    %c128_i32 = arith.constant 128 : i32
    %0 = arith.muli %arg1, %c128_i32 : i32
    %1 = tpu.assume_multiple %0, 128 : i32
    %c0 = arith.constant 0 : index
    %c0_0 = arith.constant 0 : index
    %2 = arith.index_cast %1 : i32 to index
    %3 = vector.load %arg4[%c0, %c0_0, %2] : memref<1x32x256xbf16, #tpu.memory_space<vmem>>, vector<1x32x256xbf16>
    %4 = vector.shape_cast %3 : vector<1x32x256xbf16> to vector<32x256xbf16>
    %cst = arith.constant 0.000000e+00 : f32
    %5 = vector.broadcast %cst : f32 to vector<8x128xf32>
    %c0_1 = arith.constant 0 : index
    %c0_2 = arith.constant 0 : index
    %c0_3 = arith.constant 0 : index
    %6 = vector.load %arg2[%c0_1, %c0_2, %c0_3] : memref<4x8x32xbf16, #tpu.memory_space<vmem>>, vector<1x8x32xbf16>
    %7 = vector.shape_cast %6 : vector<1x8x32xbf16> to vector<8x32xbf16>
    %8 = vector.extract_strided_slice %4 {offsets = [0, 0], sizes = [32, 128], strides = [1, 1]} : vector<32x256xbf16> to vector<32x128xbf16>
    %cst_4 = arith.constant dense<0.000000e+00> : vector<8x128xf32>
    %9 = tpu.matmul %7, %8, %cst_4 {dimension_numbers = #tpu.dot_dimension_numbers<[1], [0], [0], [1], [0, 0, 1, 1], [], []>} : vector<8x32xbf16>, vector<32x128xbf16>, vector<8x128xf32> -> vector<8x128xf32>
    %10 = arith.addf %5, %9 : vector<8x128xf32>
    %c1 = arith.constant 1 : index
    %c0_5 = arith.constant 0 : index
    %c0_6 = arith.constant 0 : index
    %11 = vector.load %arg2[%c1, %c0_5, %c0_6] : memref<4x8x32xbf16, #tpu.memory_space<vmem>>, vector<1x8x32xbf16>
    %12 = vector.shape_cast %11 : vector<1x8x32xbf16> to vector<8x32xbf16>
    %13 = vector.extract_strided_slice %4 {offsets = [0, 1], sizes = [32, 128], strides = [1, 1]} : vector<32x256xbf16> to vector<32x128xbf16>
    %cst_7 = arith.constant dense<0.000000e+00> : vector<8x128xf32>
    %14 = tpu.matmul %12, %13, %cst_7 {dimension_numbers = #tpu.dot_dimension_numbers<[1], [0], [0], [1], [0, 0, 1, 1], [], []>} : vector<8x32xbf16>, vector<32x128xbf16>, vector<8x128xf32> -> vector<8x128xf32>
    %15 = arith.addf %10, %14 : vector<8x128xf32>
    %c2 = arith.constant 2 : index
    %c0_8 = arith.constant 0 : index
    %c0_9 = arith.constant 0 : index
    %16 = vector.load %arg2[%c2, %c0_8, %c0_9] : memref<4x8x32xbf16, #tpu.memory_space<vmem>>, vector<1x8x32xbf16>
    %17 = vector.shape_cast %16 : vector<1x8x32xbf16> to vector<8x32xbf16>
    %18 = vector.extract_strided_slice %4 {offsets = [0, 9], sizes = [32, 128], strides = [1, 1]} : vector<32x256xbf16> to vector<32x128xbf16>
    %cst_10 = arith.constant dense<0.000000e+00> : vector<8x128xf32>
    %19 = tpu.matmul %17, %18, %cst_10 {dimension_numbers = #tpu.dot_dimension_numbers<[1], [0], [0], [1], [0, 0, 1, 1], [], []>} : vector<8x32xbf16>, vector<32x128xbf16>, vector<8x128xf32> -> vector<8x128xf32>
    %20 = arith.addf %15, %19 : vector<8x128xf32>
    %c3 = arith.constant 3 : index
    %c0_11 = arith.constant 0 : index
    %c0_12 = arith.constant 0 : index
    %21 = vector.load %arg2[%c3, %c0_11, %c0_12] : memref<4x8x32xbf16, #tpu.memory_space<vmem>>, vector<1x8x32xbf16>
    %22 = vector.shape_cast %21 : vector<1x8x32xbf16> to vector<8x32xbf16>
    %23 = vector.extract_strided_slice %4 {offsets = [0, 10], sizes = [32, 128], strides = [1, 1]} : vector<32x256xbf16> to vector<32x128xbf16>
    %cst_13 = arith.constant dense<0.000000e+00> : vector<8x128xf32>
    %24 = tpu.matmul %22, %23, %cst_13 {dimension_numbers = #tpu.dot_dimension_numbers<[1], [0], [0], [1], [0, 0, 1, 1], [], []>} : vector<8x32xbf16>, vector<32x128xbf16>, vector<8x128xf32> -> vector<8x128xf32>
    %25 = arith.addf %20, %24 : vector<8x128xf32>
    %c0_14 = arith.constant 0 : index
    %c0_15 = arith.constant 0 : index
    %26 = vector.load %arg3[%c0_14, %c0_15] : memref<8x1xf32, #tpu.memory_space<vmem>>, vector<8x1xf32>
    %27 = vector.broadcast %26 : vector<8x1xf32> to vector<8x128xf32>
    %28 = arith.addf %25, %27 : vector<8x128xf32>
    %cst_16 = arith.constant 0.000000e+00 : f32
    %29 = vector.broadcast %cst_16 : f32 to vector<8x128xf32>
    %30 = arith.cmpf oge, %28, %29 : vector<8x128xf32>
    %cst_17 = arith.constant 2.000000e-01 : f32
    %31 = vector.broadcast %cst_17 : f32 to vector<8x128xf32>
    %32 = arith.mulf %31, %28 : vector<8x128xf32>
    %33 = arith.select %30, %28, %32 : vector<8x128xi1>, vector<8x128xf32>
    %c0_18 = arith.constant 0 : index
    %c0_19 = arith.constant 0 : index
    %c0_20 = arith.constant 0 : index
    %34 = vector.load %arg5[%c0_18, %c0_19, %c0_20] : memref<1x8x128xf32, #tpu.memory_space<vmem>>, vector<1x8x128xf32>
    %35 = vector.shape_cast %34 : vector<1x8x128xf32> to vector<8x128xf32>
    %36 = vector.shape_cast %33 : vector<8x128xf32> to vector<1x8x128xf32>
    tpu.vector_store %arg5[%c0_18, %c0_19, %c0_20], %36 {strides = array<i32>} : memref<1x8x128xf32, #tpu.memory_space<vmem>>, vector<1x8x128xf32>,
    return
  }
  func.func @transform_0(%arg0: i32, %arg1: i32) -> (i32, i32, i32) {
    %c0_i32 = arith.constant 0 : i32
    %c0_i32_0 = arith.constant 0 : i32
    %c0_i32_1 = arith.constant 0 : i32
    %c0_i32_2 = arith.constant 0 : i32
    return %c0_i32, %c0_i32_0, %c0_i32_1 : i32, i32, i32
  }
  func.func @transform_1(%arg0: i32, %arg1: i32) -> (i32, i32) {
    %c0_i32 = arith.constant 0 : i32
    %c0_i32_0 = arith.constant 0 : i32
    %c0_i32_1 = arith.constant 0 : i32
    return %c0_i32, %c0_i32_0 : i32, i32
  }
  func.func @transform_2(%arg0: i32, %arg1: i32) -> (i32, i32, i32) {
    %c0_i32 = arith.constant 0 : i32
    %c0_i32_0 = arith.constant 0 : i32
    %c0_i32_1 = arith.constant 0 : i32
    return %arg0, %c0_i32, %c0_i32_0 : i32, i32, i32
  }
  func.func @transform_3(%arg0: i32, %arg1: i32) -> (i32, i32, i32) {
    %c0_i32 = arith.constant 0 : i32
    %c0_i32_0 = arith.constant 0 : i32
    return %arg0, %c0_i32, %arg1 : i32, i32, i32
  }
}

module attributes {stable_mosaic.version = 11 : i64} {
  func.func @_conv_taps_kernel(%arg0: i32, %arg1: i32, %arg2: memref<9x8x8xbf16, #tpu.memory_space<vmem>>, %arg3: memref<8x1xf32, #tpu.memory_space<vmem>>, %arg4: memref<1x8x256xbf16, #tpu.memory_space<vmem>>, %arg5: memref<1x8x128xf32, #tpu.memory_space<vmem>>) attributes {dimension_semantics = [#tpu.dimension_semantics<parallel>, #tpu.dimension_semantics<parallel>], iteration_bounds = array<i64: 2, 1>, scalar_prefetch = 0 : i64, scratch_operands = 0 : i64, tpu.core_type = #tpu.core_type<tc>, window_params = [{pipeline_mode = #tpu.pipeline_mode<synchronous>, transform_indices = @transform_0, window_bounds = array<i64: 9, 8, 8>}, {pipeline_mode = #tpu.pipeline_mode<synchronous>, transform_indices = @transform_1, window_bounds = array<i64: 8, 1>}, {transform_indices = @transform_2, window_bounds = array<i64: 1, 8, 256>}, {transform_indices = @transform_3, window_bounds = array<i64: 1, 8, 128>}]} {
    %c128_i32 = arith.constant 128 : i32
    %0 = arith.muli %arg1, %c128_i32 : i32
    %1 = tpu.assume_multiple %0, 128 : i32
    %c0 = arith.constant 0 : index
    %c0_0 = arith.constant 0 : index
    %2 = arith.index_cast %1 : i32 to index
    %3 = vector.load %arg4[%c0, %c0_0, %2] : memref<1x8x256xbf16, #tpu.memory_space<vmem>>, vector<1x8x256xbf16>
    %4 = vector.shape_cast %3 : vector<1x8x256xbf16> to vector<8x256xbf16>
    %cst = arith.constant 0.000000e+00 : f32
    %5 = vector.broadcast %cst : f32 to vector<8x128xf32>
    %c0_1 = arith.constant 0 : index
    %c0_2 = arith.constant 0 : index
    %c0_3 = arith.constant 0 : index
    %6 = vector.load %arg2[%c0_1, %c0_2, %c0_3] : memref<9x8x8xbf16, #tpu.memory_space<vmem>>, vector<1x8x8xbf16>
    %7 = vector.shape_cast %6 : vector<1x8x8xbf16> to vector<8x8xbf16>
    %8 = vector.extract_strided_slice %4 {offsets = [0, 0], sizes = [8, 128], strides = [1, 1]} : vector<8x256xbf16> to vector<8x128xbf16>
    %cst_4 = arith.constant dense<0.000000e+00> : vector<8x128xf32>
    %9 = tpu.matmul %7, %8, %cst_4 {dimension_numbers = #tpu.dot_dimension_numbers<[1], [0], [0], [1], [0, 0, 1, 1], [], []>} : vector<8x8xbf16>, vector<8x128xbf16>, vector<8x128xf32> -> vector<8x128xf32>
    %10 = arith.addf %5, %9 : vector<8x128xf32>
    %c1 = arith.constant 1 : index
    %c0_5 = arith.constant 0 : index
    %c0_6 = arith.constant 0 : index
    %11 = vector.load %arg2[%c1, %c0_5, %c0_6] : memref<9x8x8xbf16, #tpu.memory_space<vmem>>, vector<1x8x8xbf16>
    %12 = vector.shape_cast %11 : vector<1x8x8xbf16> to vector<8x8xbf16>
    %13 = vector.extract_strided_slice %4 {offsets = [0, 1], sizes = [8, 128], strides = [1, 1]} : vector<8x256xbf16> to vector<8x128xbf16>
    %cst_7 = arith.constant dense<0.000000e+00> : vector<8x128xf32>
    %14 = tpu.matmul %12, %13, %cst_7 {dimension_numbers = #tpu.dot_dimension_numbers<[1], [0], [0], [1], [0, 0, 1, 1], [], []>} : vector<8x8xbf16>, vector<8x128xbf16>, vector<8x128xf32> -> vector<8x128xf32>
    %15 = arith.addf %10, %14 : vector<8x128xf32>
    %c2 = arith.constant 2 : index
    %c0_8 = arith.constant 0 : index
    %c0_9 = arith.constant 0 : index
    %16 = vector.load %arg2[%c2, %c0_8, %c0_9] : memref<9x8x8xbf16, #tpu.memory_space<vmem>>, vector<1x8x8xbf16>
    %17 = vector.shape_cast %16 : vector<1x8x8xbf16> to vector<8x8xbf16>
    %18 = vector.extract_strided_slice %4 {offsets = [0, 2], sizes = [8, 128], strides = [1, 1]} : vector<8x256xbf16> to vector<8x128xbf16>
    %cst_10 = arith.constant dense<0.000000e+00> : vector<8x128xf32>
    %19 = tpu.matmul %17, %18, %cst_10 {dimension_numbers = #tpu.dot_dimension_numbers<[1], [0], [0], [1], [0, 0, 1, 1], [], []>} : vector<8x8xbf16>, vector<8x128xbf16>, vector<8x128xf32> -> vector<8x128xf32>
    %20 = arith.addf %15, %19 : vector<8x128xf32>
    %c3 = arith.constant 3 : index
    %c0_11 = arith.constant 0 : index
    %c0_12 = arith.constant 0 : index
    %21 = vector.load %arg2[%c3, %c0_11, %c0_12] : memref<9x8x8xbf16, #tpu.memory_space<vmem>>, vector<1x8x8xbf16>
    %22 = vector.shape_cast %21 : vector<1x8x8xbf16> to vector<8x8xbf16>
    %23 = vector.extract_strided_slice %4 {offsets = [0, 10], sizes = [8, 128], strides = [1, 1]} : vector<8x256xbf16> to vector<8x128xbf16>
    %cst_13 = arith.constant dense<0.000000e+00> : vector<8x128xf32>
    %24 = tpu.matmul %22, %23, %cst_13 {dimension_numbers = #tpu.dot_dimension_numbers<[1], [0], [0], [1], [0, 0, 1, 1], [], []>} : vector<8x8xbf16>, vector<8x128xbf16>, vector<8x128xf32> -> vector<8x128xf32>
    %25 = arith.addf %20, %24 : vector<8x128xf32>
    %c4 = arith.constant 4 : index
    %c0_14 = arith.constant 0 : index
    %c0_15 = arith.constant 0 : index
    %26 = vector.load %arg2[%c4, %c0_14, %c0_15] : memref<9x8x8xbf16, #tpu.memory_space<vmem>>, vector<1x8x8xbf16>
    %27 = vector.shape_cast %26 : vector<1x8x8xbf16> to vector<8x8xbf16>
    %28 = vector.extract_strided_slice %4 {offsets = [0, 11], sizes = [8, 128], strides = [1, 1]} : vector<8x256xbf16> to vector<8x128xbf16>
    %cst_16 = arith.constant dense<0.000000e+00> : vector<8x128xf32>
    %29 = tpu.matmul %27, %28, %cst_16 {dimension_numbers = #tpu.dot_dimension_numbers<[1], [0], [0], [1], [0, 0, 1, 1], [], []>} : vector<8x8xbf16>, vector<8x128xbf16>, vector<8x128xf32> -> vector<8x128xf32>
    %30 = arith.addf %25, %29 : vector<8x128xf32>
    %c5 = arith.constant 5 : index
    %c0_17 = arith.constant 0 : index
    %c0_18 = arith.constant 0 : index
    %31 = vector.load %arg2[%c5, %c0_17, %c0_18] : memref<9x8x8xbf16, #tpu.memory_space<vmem>>, vector<1x8x8xbf16>
    %32 = vector.shape_cast %31 : vector<1x8x8xbf16> to vector<8x8xbf16>
    %33 = vector.extract_strided_slice %4 {offsets = [0, 12], sizes = [8, 128], strides = [1, 1]} : vector<8x256xbf16> to vector<8x128xbf16>
    %cst_19 = arith.constant dense<0.000000e+00> : vector<8x128xf32>
    %34 = tpu.matmul %32, %33, %cst_19 {dimension_numbers = #tpu.dot_dimension_numbers<[1], [0], [0], [1], [0, 0, 1, 1], [], []>} : vector<8x8xbf16>, vector<8x128xbf16>, vector<8x128xf32> -> vector<8x128xf32>
    %35 = arith.addf %30, %34 : vector<8x128xf32>
    %c6 = arith.constant 6 : index
    %c0_20 = arith.constant 0 : index
    %c0_21 = arith.constant 0 : index
    %36 = vector.load %arg2[%c6, %c0_20, %c0_21] : memref<9x8x8xbf16, #tpu.memory_space<vmem>>, vector<1x8x8xbf16>
    %37 = vector.shape_cast %36 : vector<1x8x8xbf16> to vector<8x8xbf16>
    %38 = vector.extract_strided_slice %4 {offsets = [0, 20], sizes = [8, 128], strides = [1, 1]} : vector<8x256xbf16> to vector<8x128xbf16>
    %cst_22 = arith.constant dense<0.000000e+00> : vector<8x128xf32>
    %39 = tpu.matmul %37, %38, %cst_22 {dimension_numbers = #tpu.dot_dimension_numbers<[1], [0], [0], [1], [0, 0, 1, 1], [], []>} : vector<8x8xbf16>, vector<8x128xbf16>, vector<8x128xf32> -> vector<8x128xf32>
    %40 = arith.addf %35, %39 : vector<8x128xf32>
    %c7 = arith.constant 7 : index
    %c0_23 = arith.constant 0 : index
    %c0_24 = arith.constant 0 : index
    %41 = vector.load %arg2[%c7, %c0_23, %c0_24] : memref<9x8x8xbf16, #tpu.memory_space<vmem>>, vector<1x8x8xbf16>
    %42 = vector.shape_cast %41 : vector<1x8x8xbf16> to vector<8x8xbf16>
    %43 = vector.extract_strided_slice %4 {offsets = [0, 21], sizes = [8, 128], strides = [1, 1]} : vector<8x256xbf16> to vector<8x128xbf16>
    %cst_25 = arith.constant dense<0.000000e+00> : vector<8x128xf32>
    %44 = tpu.matmul %42, %43, %cst_25 {dimension_numbers = #tpu.dot_dimension_numbers<[1], [0], [0], [1], [0, 0, 1, 1], [], []>} : vector<8x8xbf16>, vector<8x128xbf16>, vector<8x128xf32> -> vector<8x128xf32>
    %45 = arith.addf %40, %44 : vector<8x128xf32>
    %c8 = arith.constant 8 : index
    %c0_26 = arith.constant 0 : index
    %c0_27 = arith.constant 0 : index
    %46 = vector.load %arg2[%c8, %c0_26, %c0_27] : memref<9x8x8xbf16, #tpu.memory_space<vmem>>, vector<1x8x8xbf16>
    %47 = vector.shape_cast %46 : vector<1x8x8xbf16> to vector<8x8xbf16>
    %48 = vector.extract_strided_slice %4 {offsets = [0, 22], sizes = [8, 128], strides = [1, 1]} : vector<8x256xbf16> to vector<8x128xbf16>
    %cst_28 = arith.constant dense<0.000000e+00> : vector<8x128xf32>
    %49 = tpu.matmul %47, %48, %cst_28 {dimension_numbers = #tpu.dot_dimension_numbers<[1], [0], [0], [1], [0, 0, 1, 1], [], []>} : vector<8x8xbf16>, vector<8x128xbf16>, vector<8x128xf32> -> vector<8x128xf32>
    %50 = arith.addf %45, %49 : vector<8x128xf32>
    %c0_29 = arith.constant 0 : index
    %c0_30 = arith.constant 0 : index
    %51 = vector.load %arg3[%c0_29, %c0_30] : memref<8x1xf32, #tpu.memory_space<vmem>>, vector<8x1xf32>
    %52 = vector.broadcast %51 : vector<8x1xf32> to vector<8x128xf32>
    %53 = arith.addf %50, %52 : vector<8x128xf32>
    %cst_31 = arith.constant 0.000000e+00 : f32
    %54 = vector.broadcast %cst_31 : f32 to vector<8x128xf32>
    %55 = arith.cmpf oge, %53, %54 : vector<8x128xf32>
    %cst_32 = arith.constant 2.000000e-01 : f32
    %56 = vector.broadcast %cst_32 : f32 to vector<8x128xf32>
    %57 = arith.mulf %56, %53 : vector<8x128xf32>
    %58 = arith.select %55, %53, %57 : vector<8x128xi1>, vector<8x128xf32>
    %c0_33 = arith.constant 0 : index
    %c0_34 = arith.constant 0 : index
    %c0_35 = arith.constant 0 : index
    %59 = vector.load %arg5[%c0_33, %c0_34, %c0_35] : memref<1x8x128xf32, #tpu.memory_space<vmem>>, vector<1x8x128xf32>
    %60 = vector.shape_cast %59 : vector<1x8x128xf32> to vector<8x128xf32>
    %61 = vector.shape_cast %58 : vector<8x128xf32> to vector<1x8x128xf32>
    tpu.vector_store %arg5[%c0_33, %c0_34, %c0_35], %61 {strides = array<i32>} : memref<1x8x128xf32, #tpu.memory_space<vmem>>, vector<1x8x128xf32>,
    return
  }
  func.func @transform_0(%arg0: i32, %arg1: i32) -> (i32, i32, i32) {
    %c0_i32 = arith.constant 0 : i32
    %c0_i32_0 = arith.constant 0 : i32
    %c0_i32_1 = arith.constant 0 : i32
    %c0_i32_2 = arith.constant 0 : i32
    return %c0_i32, %c0_i32_0, %c0_i32_1 : i32, i32, i32
  }
  func.func @transform_1(%arg0: i32, %arg1: i32) -> (i32, i32) {
    %c0_i32 = arith.constant 0 : i32
    %c0_i32_0 = arith.constant 0 : i32
    %c0_i32_1 = arith.constant 0 : i32
    return %c0_i32, %c0_i32_0 : i32, i32
  }
  func.func @transform_2(%arg0: i32, %arg1: i32) -> (i32, i32, i32) {
    %c0_i32 = arith.constant 0 : i32
    %c0_i32_0 = arith.constant 0 : i32
    %c0_i32_1 = arith.constant 0 : i32
    return %arg0, %c0_i32, %c0_i32_0 : i32, i32, i32
  }
  func.func @transform_3(%arg0: i32, %arg1: i32) -> (i32, i32, i32) {
    %c0_i32 = arith.constant 0 : i32
    %c0_i32_0 = arith.constant 0 : i32
    return %arg0, %c0_i32, %arg1 : i32, i32, i32
  }
}

module attributes {stable_mosaic.version = 11 : i64} {
  func.func @_conv_taps_kernel(%arg0: i32, %arg1: i32, %arg2: memref<9x32x8xbf16, #tpu.memory_space<vmem>>, %arg3: memref<32x1xf32, #tpu.memory_space<vmem>>, %arg4: memref<1x8x256xbf16, #tpu.memory_space<vmem>>, %arg5: memref<1x32x128xf32, #tpu.memory_space<vmem>>) attributes {dimension_semantics = [#tpu.dimension_semantics<parallel>, #tpu.dimension_semantics<parallel>], iteration_bounds = array<i64: 2, 1>, scalar_prefetch = 0 : i64, scratch_operands = 0 : i64, tpu.core_type = #tpu.core_type<tc>, window_params = [{pipeline_mode = #tpu.pipeline_mode<synchronous>, transform_indices = @transform_0, window_bounds = array<i64: 9, 32, 8>}, {pipeline_mode = #tpu.pipeline_mode<synchronous>, transform_indices = @transform_1, window_bounds = array<i64: 32, 1>}, {transform_indices = @transform_2, window_bounds = array<i64: 1, 8, 256>}, {transform_indices = @transform_3, window_bounds = array<i64: 1, 32, 128>}]} {
    %c128_i32 = arith.constant 128 : i32
    %0 = arith.muli %arg1, %c128_i32 : i32
    %1 = tpu.assume_multiple %0, 128 : i32
    %c0 = arith.constant 0 : index
    %c0_0 = arith.constant 0 : index
    %2 = arith.index_cast %1 : i32 to index
    %3 = vector.load %arg4[%c0, %c0_0, %2] : memref<1x8x256xbf16, #tpu.memory_space<vmem>>, vector<1x8x256xbf16>
    %4 = vector.shape_cast %3 : vector<1x8x256xbf16> to vector<8x256xbf16>
    %cst = arith.constant 0.000000e+00 : f32
    %5 = vector.broadcast %cst : f32 to vector<32x128xf32>
    %c0_1 = arith.constant 0 : index
    %c0_2 = arith.constant 0 : index
    %c0_3 = arith.constant 0 : index
    %6 = vector.load %arg2[%c0_1, %c0_2, %c0_3] : memref<9x32x8xbf16, #tpu.memory_space<vmem>>, vector<1x32x8xbf16>
    %7 = vector.shape_cast %6 : vector<1x32x8xbf16> to vector<32x8xbf16>
    %8 = vector.extract_strided_slice %4 {offsets = [0, 0], sizes = [8, 128], strides = [1, 1]} : vector<8x256xbf16> to vector<8x128xbf16>
    %cst_4 = arith.constant dense<0.000000e+00> : vector<32x128xf32>
    %9 = tpu.matmul %7, %8, %cst_4 {dimension_numbers = #tpu.dot_dimension_numbers<[1], [0], [0], [1], [0, 0, 1, 1], [], []>} : vector<32x8xbf16>, vector<8x128xbf16>, vector<32x128xf32> -> vector<32x128xf32>
    %10 = arith.addf %5, %9 : vector<32x128xf32>
    %c1 = arith.constant 1 : index
    %c0_5 = arith.constant 0 : index
    %c0_6 = arith.constant 0 : index
    %11 = vector.load %arg2[%c1, %c0_5, %c0_6] : memref<9x32x8xbf16, #tpu.memory_space<vmem>>, vector<1x32x8xbf16>
    %12 = vector.shape_cast %11 : vector<1x32x8xbf16> to vector<32x8xbf16>
    %13 = vector.extract_strided_slice %4 {offsets = [0, 1], sizes = [8, 128], strides = [1, 1]} : vector<8x256xbf16> to vector<8x128xbf16>
    %cst_7 = arith.constant dense<0.000000e+00> : vector<32x128xf32>
    %14 = tpu.matmul %12, %13, %cst_7 {dimension_numbers = #tpu.dot_dimension_numbers<[1], [0], [0], [1], [0, 0, 1, 1], [], []>} : vector<32x8xbf16>, vector<8x128xbf16>, vector<32x128xf32> -> vector<32x128xf32>
    %15 = arith.addf %10, %14 : vector<32x128xf32>
    %c2 = arith.constant 2 : index
    %c0_8 = arith.constant 0 : index
    %c0_9 = arith.constant 0 : index
    %16 = vector.load %arg2[%c2, %c0_8, %c0_9] : memref<9x32x8xbf16, #tpu.memory_space<vmem>>, vector<1x32x8xbf16>
    %17 = vector.shape_cast %16 : vector<1x32x8xbf16> to vector<32x8xbf16>
    %18 = vector.extract_strided_slice %4 {offsets = [0, 2], sizes = [8, 128], strides = [1, 1]} : vector<8x256xbf16> to vector<8x128xbf16>
    %cst_10 = arith.constant dense<0.000000e+00> : vector<32x128xf32>
    %19 = tpu.matmul %17, %18, %cst_10 {dimension_numbers = #tpu.dot_dimension_numbers<[1], [0], [0], [1], [0, 0, 1, 1], [], []>} : vector<32x8xbf16>, vector<8x128xbf16>, vector<32x128xf32> -> vector<32x128xf32>
    %20 = arith.addf %15, %19 : vector<32x128xf32>
    %c3 = arith.constant 3 : index
    %c0_11 = arith.constant 0 : index
    %c0_12 = arith.constant 0 : index
    %21 = vector.load %arg2[%c3, %c0_11, %c0_12] : memref<9x32x8xbf16, #tpu.memory_space<vmem>>, vector<1x32x8xbf16>
    %22 = vector.shape_cast %21 : vector<1x32x8xbf16> to vector<32x8xbf16>
    %23 = vector.extract_strided_slice %4 {offsets = [0, 10], sizes = [8, 128], strides = [1, 1]} : vector<8x256xbf16> to vector<8x128xbf16>
    %cst_13 = arith.constant dense<0.000000e+00> : vector<32x128xf32>
    %24 = tpu.matmul %22, %23, %cst_13 {dimension_numbers = #tpu.dot_dimension_numbers<[1], [0], [0], [1], [0, 0, 1, 1], [], []>} : vector<32x8xbf16>, vector<8x128xbf16>, vector<32x128xf32> -> vector<32x128xf32>
    %25 = arith.addf %20, %24 : vector<32x128xf32>
    %c4 = arith.constant 4 : index
    %c0_14 = arith.constant 0 : index
    %c0_15 = arith.constant 0 : index
    %26 = vector.load %arg2[%c4, %c0_14, %c0_15] : memref<9x32x8xbf16, #tpu.memory_space<vmem>>, vector<1x32x8xbf16>
    %27 = vector.shape_cast %26 : vector<1x32x8xbf16> to vector<32x8xbf16>
    %28 = vector.extract_strided_slice %4 {offsets = [0, 11], sizes = [8, 128], strides = [1, 1]} : vector<8x256xbf16> to vector<8x128xbf16>
    %cst_16 = arith.constant dense<0.000000e+00> : vector<32x128xf32>
    %29 = tpu.matmul %27, %28, %cst_16 {dimension_numbers = #tpu.dot_dimension_numbers<[1], [0], [0], [1], [0, 0, 1, 1], [], []>} : vector<32x8xbf16>, vector<8x128xbf16>, vector<32x128xf32> -> vector<32x128xf32>
    %30 = arith.addf %25, %29 : vector<32x128xf32>
    %c5 = arith.constant 5 : index
    %c0_17 = arith.constant 0 : index
    %c0_18 = arith.constant 0 : index
    %31 = vector.load %arg2[%c5, %c0_17, %c0_18] : memref<9x32x8xbf16, #tpu.memory_space<vmem>>, vector<1x32x8xbf16>
    %32 = vector.shape_cast %31 : vector<1x32x8xbf16> to vector<32x8xbf16>
    %33 = vector.extract_strided_slice %4 {offsets = [0, 12], sizes = [8, 128], strides = [1, 1]} : vector<8x256xbf16> to vector<8x128xbf16>
    %cst_19 = arith.constant dense<0.000000e+00> : vector<32x128xf32>
    %34 = tpu.matmul %32, %33, %cst_19 {dimension_numbers = #tpu.dot_dimension_numbers<[1], [0], [0], [1], [0, 0, 1, 1], [], []>} : vector<32x8xbf16>, vector<8x128xbf16>, vector<32x128xf32> -> vector<32x128xf32>
    %35 = arith.addf %30, %34 : vector<32x128xf32>
    %c6 = arith.constant 6 : index
    %c0_20 = arith.constant 0 : index
    %c0_21 = arith.constant 0 : index
    %36 = vector.load %arg2[%c6, %c0_20, %c0_21] : memref<9x32x8xbf16, #tpu.memory_space<vmem>>, vector<1x32x8xbf16>
    %37 = vector.shape_cast %36 : vector<1x32x8xbf16> to vector<32x8xbf16>
    %38 = vector.extract_strided_slice %4 {offsets = [0, 20], sizes = [8, 128], strides = [1, 1]} : vector<8x256xbf16> to vector<8x128xbf16>
    %cst_22 = arith.constant dense<0.000000e+00> : vector<32x128xf32>
    %39 = tpu.matmul %37, %38, %cst_22 {dimension_numbers = #tpu.dot_dimension_numbers<[1], [0], [0], [1], [0, 0, 1, 1], [], []>} : vector<32x8xbf16>, vector<8x128xbf16>, vector<32x128xf32> -> vector<32x128xf32>
    %40 = arith.addf %35, %39 : vector<32x128xf32>
    %c7 = arith.constant 7 : index
    %c0_23 = arith.constant 0 : index
    %c0_24 = arith.constant 0 : index
    %41 = vector.load %arg2[%c7, %c0_23, %c0_24] : memref<9x32x8xbf16, #tpu.memory_space<vmem>>, vector<1x32x8xbf16>
    %42 = vector.shape_cast %41 : vector<1x32x8xbf16> to vector<32x8xbf16>
    %43 = vector.extract_strided_slice %4 {offsets = [0, 21], sizes = [8, 128], strides = [1, 1]} : vector<8x256xbf16> to vector<8x128xbf16>
    %cst_25 = arith.constant dense<0.000000e+00> : vector<32x128xf32>
    %44 = tpu.matmul %42, %43, %cst_25 {dimension_numbers = #tpu.dot_dimension_numbers<[1], [0], [0], [1], [0, 0, 1, 1], [], []>} : vector<32x8xbf16>, vector<8x128xbf16>, vector<32x128xf32> -> vector<32x128xf32>
    %45 = arith.addf %40, %44 : vector<32x128xf32>
    %c8 = arith.constant 8 : index
    %c0_26 = arith.constant 0 : index
    %c0_27 = arith.constant 0 : index
    %46 = vector.load %arg2[%c8, %c0_26, %c0_27] : memref<9x32x8xbf16, #tpu.memory_space<vmem>>, vector<1x32x8xbf16>
    %47 = vector.shape_cast %46 : vector<1x32x8xbf16> to vector<32x8xbf16>
    %48 = vector.extract_strided_slice %4 {offsets = [0, 22], sizes = [8, 128], strides = [1, 1]} : vector<8x256xbf16> to vector<8x128xbf16>
    %cst_28 = arith.constant dense<0.000000e+00> : vector<32x128xf32>
    %49 = tpu.matmul %47, %48, %cst_28 {dimension_numbers = #tpu.dot_dimension_numbers<[1], [0], [0], [1], [0, 0, 1, 1], [], []>} : vector<32x8xbf16>, vector<8x128xbf16>, vector<32x128xf32> -> vector<32x128xf32>
    %50 = arith.addf %45, %49 : vector<32x128xf32>
    %c0_29 = arith.constant 0 : index
    %c0_30 = arith.constant 0 : index
    %51 = vector.load %arg3[%c0_29, %c0_30] : memref<32x1xf32, #tpu.memory_space<vmem>>, vector<32x1xf32>
    %52 = vector.broadcast %51 : vector<32x1xf32> to vector<32x128xf32>
    %53 = arith.addf %50, %52 : vector<32x128xf32>
    %c0_31 = arith.constant 0 : index
    %c0_32 = arith.constant 0 : index
    %c0_33 = arith.constant 0 : index
    %54 = vector.load %arg5[%c0_31, %c0_32, %c0_33] : memref<1x32x128xf32, #tpu.memory_space<vmem>>, vector<1x32x128xf32>
    %55 = vector.shape_cast %54 : vector<1x32x128xf32> to vector<32x128xf32>
    %56 = vector.shape_cast %53 : vector<32x128xf32> to vector<1x32x128xf32>
    tpu.vector_store %arg5[%c0_31, %c0_32, %c0_33], %56 {strides = array<i32>} : memref<1x32x128xf32, #tpu.memory_space<vmem>>, vector<1x32x128xf32>,
    return
  }
  func.func @transform_0(%arg0: i32, %arg1: i32) -> (i32, i32, i32) {
    %c0_i32 = arith.constant 0 : i32
    %c0_i32_0 = arith.constant 0 : i32
    %c0_i32_1 = arith.constant 0 : i32
    %c0_i32_2 = arith.constant 0 : i32
    return %c0_i32, %c0_i32_0, %c0_i32_1 : i32, i32, i32
  }
  func.func @transform_1(%arg0: i32, %arg1: i32) -> (i32, i32) {
    %c0_i32 = arith.constant 0 : i32
    %c0_i32_0 = arith.constant 0 : i32
    %c0_i32_1 = arith.constant 0 : i32
    return %c0_i32, %c0_i32_0 : i32, i32
  }
  func.func @transform_2(%arg0: i32, %arg1: i32) -> (i32, i32, i32) {
    %c0_i32 = arith.constant 0 : i32
    %c0_i32_0 = arith.constant 0 : i32
    %c0_i32_1 = arith.constant 0 : i32
    return %arg0, %c0_i32, %c0_i32_0 : i32, i32, i32
  }
  func.func @transform_3(%arg0: i32, %arg1: i32) -> (i32, i32, i32) {
    %c0_i32 = arith.constant 0 : i32
    %c0_i32_0 = arith.constant 0 : i32
    return %arg0, %c0_i32, %arg1 : i32, i32, i32
  }
}

module attributes {stable_mosaic.version = 11 : i64} {
  func.func @_conv_taps_kernel(%arg0: i32, %arg1: i32, %arg2: memref<9x8x16xbf16, #tpu.memory_space<vmem>>, %arg3: memref<8x1xf32, #tpu.memory_space<vmem>>, %arg4: memref<1x16x640xbf16, #tpu.memory_space<vmem>>, %arg5: memref<1x8x256xf32, #tpu.memory_space<vmem>>) attributes {dimension_semantics = [#tpu.dimension_semantics<parallel>, #tpu.dimension_semantics<parallel>], iteration_bounds = array<i64: 2, 2>, scalar_prefetch = 0 : i64, scratch_operands = 0 : i64, tpu.core_type = #tpu.core_type<tc>, window_params = [{pipeline_mode = #tpu.pipeline_mode<synchronous>, transform_indices = @transform_0, window_bounds = array<i64: 9, 8, 16>}, {pipeline_mode = #tpu.pipeline_mode<synchronous>, transform_indices = @transform_1, window_bounds = array<i64: 8, 1>}, {transform_indices = @transform_2, window_bounds = array<i64: 1, 16, 640>}, {transform_indices = @transform_3, window_bounds = array<i64: 1, 8, 256>}]} {
    %c256_i32 = arith.constant 256 : i32
    %0 = arith.muli %arg1, %c256_i32 : i32
    %1 = tpu.assume_multiple %0, 128 : i32
    %c0 = arith.constant 0 : index
    %c0_0 = arith.constant 0 : index
    %2 = arith.index_cast %1 : i32 to index
    %3 = vector.load %arg4[%c0, %c0_0, %2] : memref<1x16x640xbf16, #tpu.memory_space<vmem>>, vector<1x16x384xbf16>
    %4 = vector.shape_cast %3 : vector<1x16x384xbf16> to vector<16x384xbf16>
    %cst = arith.constant 0.000000e+00 : f32
    %5 = vector.broadcast %cst : f32 to vector<8x256xf32>
    %c0_1 = arith.constant 0 : index
    %c0_2 = arith.constant 0 : index
    %c0_3 = arith.constant 0 : index
    %6 = vector.load %arg2[%c0_1, %c0_2, %c0_3] : memref<9x8x16xbf16, #tpu.memory_space<vmem>>, vector<1x8x16xbf16>
    %7 = vector.shape_cast %6 : vector<1x8x16xbf16> to vector<8x16xbf16>
    %8 = vector.extract_strided_slice %4 {offsets = [0, 0], sizes = [16, 256], strides = [1, 1]} : vector<16x384xbf16> to vector<16x256xbf16>
    %cst_4 = arith.constant dense<0.000000e+00> : vector<8x256xf32>
    %9 = tpu.matmul %7, %8, %cst_4 {dimension_numbers = #tpu.dot_dimension_numbers<[1], [0], [0], [1], [0, 0, 1, 1], [], []>} : vector<8x16xbf16>, vector<16x256xbf16>, vector<8x256xf32> -> vector<8x256xf32>
    %10 = arith.addf %5, %9 : vector<8x256xf32>
    %c1 = arith.constant 1 : index
    %c0_5 = arith.constant 0 : index
    %c0_6 = arith.constant 0 : index
    %11 = vector.load %arg2[%c1, %c0_5, %c0_6] : memref<9x8x16xbf16, #tpu.memory_space<vmem>>, vector<1x8x16xbf16>
    %12 = vector.shape_cast %11 : vector<1x8x16xbf16> to vector<8x16xbf16>
    %13 = vector.extract_strided_slice %4 {offsets = [0, 1], sizes = [16, 256], strides = [1, 1]} : vector<16x384xbf16> to vector<16x256xbf16>
    %cst_7 = arith.constant dense<0.000000e+00> : vector<8x256xf32>
    %14 = tpu.matmul %12, %13, %cst_7 {dimension_numbers = #tpu.dot_dimension_numbers<[1], [0], [0], [1], [0, 0, 1, 1], [], []>} : vector<8x16xbf16>, vector<16x256xbf16>, vector<8x256xf32> -> vector<8x256xf32>
    %15 = arith.addf %10, %14 : vector<8x256xf32>
    %c2 = arith.constant 2 : index
    %c0_8 = arith.constant 0 : index
    %c0_9 = arith.constant 0 : index
    %16 = vector.load %arg2[%c2, %c0_8, %c0_9] : memref<9x8x16xbf16, #tpu.memory_space<vmem>>, vector<1x8x16xbf16>
    %17 = vector.shape_cast %16 : vector<1x8x16xbf16> to vector<8x16xbf16>
    %18 = vector.extract_strided_slice %4 {offsets = [0, 2], sizes = [16, 256], strides = [1, 1]} : vector<16x384xbf16> to vector<16x256xbf16>
    %cst_10 = arith.constant dense<0.000000e+00> : vector<8x256xf32>
    %19 = tpu.matmul %17, %18, %cst_10 {dimension_numbers = #tpu.dot_dimension_numbers<[1], [0], [0], [1], [0, 0, 1, 1], [], []>} : vector<8x16xbf16>, vector<16x256xbf16>, vector<8x256xf32> -> vector<8x256xf32>
    %20 = arith.addf %15, %19 : vector<8x256xf32>
    %c3 = arith.constant 3 : index
    %c0_11 = arith.constant 0 : index
    %c0_12 = arith.constant 0 : index
    %21 = vector.load %arg2[%c3, %c0_11, %c0_12] : memref<9x8x16xbf16, #tpu.memory_space<vmem>>, vector<1x8x16xbf16>
    %22 = vector.shape_cast %21 : vector<1x8x16xbf16> to vector<8x16xbf16>
    %23 = vector.extract_strided_slice %4 {offsets = [0, 18], sizes = [16, 256], strides = [1, 1]} : vector<16x384xbf16> to vector<16x256xbf16>
    %cst_13 = arith.constant dense<0.000000e+00> : vector<8x256xf32>
    %24 = tpu.matmul %22, %23, %cst_13 {dimension_numbers = #tpu.dot_dimension_numbers<[1], [0], [0], [1], [0, 0, 1, 1], [], []>} : vector<8x16xbf16>, vector<16x256xbf16>, vector<8x256xf32> -> vector<8x256xf32>
    %25 = arith.addf %20, %24 : vector<8x256xf32>
    %c4 = arith.constant 4 : index
    %c0_14 = arith.constant 0 : index
    %c0_15 = arith.constant 0 : index
    %26 = vector.load %arg2[%c4, %c0_14, %c0_15] : memref<9x8x16xbf16, #tpu.memory_space<vmem>>, vector<1x8x16xbf16>
    %27 = vector.shape_cast %26 : vector<1x8x16xbf16> to vector<8x16xbf16>
    %28 = vector.extract_strided_slice %4 {offsets = [0, 19], sizes = [16, 256], strides = [1, 1]} : vector<16x384xbf16> to vector<16x256xbf16>
    %cst_16 = arith.constant dense<0.000000e+00> : vector<8x256xf32>
    %29 = tpu.matmul %27, %28, %cst_16 {dimension_numbers = #tpu.dot_dimension_numbers<[1], [0], [0], [1], [0, 0, 1, 1], [], []>} : vector<8x16xbf16>, vector<16x256xbf16>, vector<8x256xf32> -> vector<8x256xf32>
    %30 = arith.addf %25, %29 : vector<8x256xf32>
    %c5 = arith.constant 5 : index
    %c0_17 = arith.constant 0 : index
    %c0_18 = arith.constant 0 : index
    %31 = vector.load %arg2[%c5, %c0_17, %c0_18] : memref<9x8x16xbf16, #tpu.memory_space<vmem>>, vector<1x8x16xbf16>
    %32 = vector.shape_cast %31 : vector<1x8x16xbf16> to vector<8x16xbf16>
    %33 = vector.extract_strided_slice %4 {offsets = [0, 20], sizes = [16, 256], strides = [1, 1]} : vector<16x384xbf16> to vector<16x256xbf16>
    %cst_19 = arith.constant dense<0.000000e+00> : vector<8x256xf32>
    %34 = tpu.matmul %32, %33, %cst_19 {dimension_numbers = #tpu.dot_dimension_numbers<[1], [0], [0], [1], [0, 0, 1, 1], [], []>} : vector<8x16xbf16>, vector<16x256xbf16>, vector<8x256xf32> -> vector<8x256xf32>
    %35 = arith.addf %30, %34 : vector<8x256xf32>
    %c6 = arith.constant 6 : index
    %c0_20 = arith.constant 0 : index
    %c0_21 = arith.constant 0 : index
    %36 = vector.load %arg2[%c6, %c0_20, %c0_21] : memref<9x8x16xbf16, #tpu.memory_space<vmem>>, vector<1x8x16xbf16>
    %37 = vector.shape_cast %36 : vector<1x8x16xbf16> to vector<8x16xbf16>
    %38 = vector.extract_strided_slice %4 {offsets = [0, 36], sizes = [16, 256], strides = [1, 1]} : vector<16x384xbf16> to vector<16x256xbf16>
    %cst_22 = arith.constant dense<0.000000e+00> : vector<8x256xf32>
    %39 = tpu.matmul %37, %38, %cst_22 {dimension_numbers = #tpu.dot_dimension_numbers<[1], [0], [0], [1], [0, 0, 1, 1], [], []>} : vector<8x16xbf16>, vector<16x256xbf16>, vector<8x256xf32> -> vector<8x256xf32>
    %40 = arith.addf %35, %39 : vector<8x256xf32>
    %c7 = arith.constant 7 : index
    %c0_23 = arith.constant 0 : index
    %c0_24 = arith.constant 0 : index
    %41 = vector.load %arg2[%c7, %c0_23, %c0_24] : memref<9x8x16xbf16, #tpu.memory_space<vmem>>, vector<1x8x16xbf16>
    %42 = vector.shape_cast %41 : vector<1x8x16xbf16> to vector<8x16xbf16>
    %43 = vector.extract_strided_slice %4 {offsets = [0, 37], sizes = [16, 256], strides = [1, 1]} : vector<16x384xbf16> to vector<16x256xbf16>
    %cst_25 = arith.constant dense<0.000000e+00> : vector<8x256xf32>
    %44 = tpu.matmul %42, %43, %cst_25 {dimension_numbers = #tpu.dot_dimension_numbers<[1], [0], [0], [1], [0, 0, 1, 1], [], []>} : vector<8x16xbf16>, vector<16x256xbf16>, vector<8x256xf32> -> vector<8x256xf32>
    %45 = arith.addf %40, %44 : vector<8x256xf32>
    %c8 = arith.constant 8 : index
    %c0_26 = arith.constant 0 : index
    %c0_27 = arith.constant 0 : index
    %46 = vector.load %arg2[%c8, %c0_26, %c0_27] : memref<9x8x16xbf16, #tpu.memory_space<vmem>>, vector<1x8x16xbf16>
    %47 = vector.shape_cast %46 : vector<1x8x16xbf16> to vector<8x16xbf16>
    %48 = vector.extract_strided_slice %4 {offsets = [0, 38], sizes = [16, 256], strides = [1, 1]} : vector<16x384xbf16> to vector<16x256xbf16>
    %cst_28 = arith.constant dense<0.000000e+00> : vector<8x256xf32>
    %49 = tpu.matmul %47, %48, %cst_28 {dimension_numbers = #tpu.dot_dimension_numbers<[1], [0], [0], [1], [0, 0, 1, 1], [], []>} : vector<8x16xbf16>, vector<16x256xbf16>, vector<8x256xf32> -> vector<8x256xf32>
    %50 = arith.addf %45, %49 : vector<8x256xf32>
    %c0_29 = arith.constant 0 : index
    %c0_30 = arith.constant 0 : index
    %51 = vector.load %arg3[%c0_29, %c0_30] : memref<8x1xf32, #tpu.memory_space<vmem>>, vector<8x1xf32>
    %52 = vector.broadcast %51 : vector<8x1xf32> to vector<8x256xf32>
    %53 = arith.addf %50, %52 : vector<8x256xf32>
    %cst_31 = arith.constant 0.000000e+00 : f32
    %54 = vector.broadcast %cst_31 : f32 to vector<8x256xf32>
    %55 = arith.cmpf oge, %53, %54 : vector<8x256xf32>
    %cst_32 = arith.constant 2.000000e-01 : f32
    %56 = vector.broadcast %cst_32 : f32 to vector<8x256xf32>
    %57 = arith.mulf %56, %53 : vector<8x256xf32>
    %58 = arith.select %55, %53, %57 : vector<8x256xi1>, vector<8x256xf32>
    %c0_33 = arith.constant 0 : index
    %c0_34 = arith.constant 0 : index
    %c0_35 = arith.constant 0 : index
    %59 = vector.load %arg5[%c0_33, %c0_34, %c0_35] : memref<1x8x256xf32, #tpu.memory_space<vmem>>, vector<1x8x256xf32>
    %60 = vector.shape_cast %59 : vector<1x8x256xf32> to vector<8x256xf32>
    %61 = vector.shape_cast %58 : vector<8x256xf32> to vector<1x8x256xf32>
    tpu.vector_store %arg5[%c0_33, %c0_34, %c0_35], %61 {strides = array<i32>} : memref<1x8x256xf32, #tpu.memory_space<vmem>>, vector<1x8x256xf32>,
    return
  }
  func.func @transform_0(%arg0: i32, %arg1: i32) -> (i32, i32, i32) {
    %c0_i32 = arith.constant 0 : i32
    %c0_i32_0 = arith.constant 0 : i32
    %c0_i32_1 = arith.constant 0 : i32
    %c0_i32_2 = arith.constant 0 : i32
    return %c0_i32, %c0_i32_0, %c0_i32_1 : i32, i32, i32
  }
  func.func @transform_1(%arg0: i32, %arg1: i32) -> (i32, i32) {
    %c0_i32 = arith.constant 0 : i32
    %c0_i32_0 = arith.constant 0 : i32
    %c0_i32_1 = arith.constant 0 : i32
    return %c0_i32, %c0_i32_0 : i32, i32
  }
  func.func @transform_2(%arg0: i32, %arg1: i32) -> (i32, i32, i32) {
    %c0_i32 = arith.constant 0 : i32
    %c0_i32_0 = arith.constant 0 : i32
    %c0_i32_1 = arith.constant 0 : i32
    return %arg0, %c0_i32, %c0_i32_0 : i32, i32, i32
  }
  func.func @transform_3(%arg0: i32, %arg1: i32) -> (i32, i32, i32) {
    %c0_i32 = arith.constant 0 : i32
    %c0_i32_0 = arith.constant 0 : i32
    return %arg0, %c0_i32, %arg1 : i32, i32, i32
  }
}

module attributes {stable_mosaic.version = 11 : i64} {
  func.func @_conv_taps_kernel(%arg0: i32, %arg1: i32, %arg2: memref<9x32x8xbf16, #tpu.memory_space<vmem>>, %arg3: memref<32x1xf32, #tpu.memory_space<vmem>>, %arg4: memref<1x8x640xbf16, #tpu.memory_space<vmem>>, %arg5: memref<1x32x256xf32, #tpu.memory_space<vmem>>) attributes {dimension_semantics = [#tpu.dimension_semantics<parallel>, #tpu.dimension_semantics<parallel>], iteration_bounds = array<i64: 2, 2>, scalar_prefetch = 0 : i64, scratch_operands = 0 : i64, tpu.core_type = #tpu.core_type<tc>, window_params = [{pipeline_mode = #tpu.pipeline_mode<synchronous>, transform_indices = @transform_0, window_bounds = array<i64: 9, 32, 8>}, {pipeline_mode = #tpu.pipeline_mode<synchronous>, transform_indices = @transform_1, window_bounds = array<i64: 32, 1>}, {transform_indices = @transform_2, window_bounds = array<i64: 1, 8, 640>}, {transform_indices = @transform_3, window_bounds = array<i64: 1, 32, 256>}]} {
    %c256_i32 = arith.constant 256 : i32
    %0 = arith.muli %arg1, %c256_i32 : i32
    %1 = tpu.assume_multiple %0, 128 : i32
    %c0 = arith.constant 0 : index
    %c0_0 = arith.constant 0 : index
    %2 = arith.index_cast %1 : i32 to index
    %3 = vector.load %arg4[%c0, %c0_0, %2] : memref<1x8x640xbf16, #tpu.memory_space<vmem>>, vector<1x8x384xbf16>
    %4 = vector.shape_cast %3 : vector<1x8x384xbf16> to vector<8x384xbf16>
    %cst = arith.constant 0.000000e+00 : f32
    %5 = vector.broadcast %cst : f32 to vector<32x256xf32>
    %c0_1 = arith.constant 0 : index
    %c0_2 = arith.constant 0 : index
    %c0_3 = arith.constant 0 : index
    %6 = vector.load %arg2[%c0_1, %c0_2, %c0_3] : memref<9x32x8xbf16, #tpu.memory_space<vmem>>, vector<1x32x8xbf16>
    %7 = vector.shape_cast %6 : vector<1x32x8xbf16> to vector<32x8xbf16>
    %8 = vector.extract_strided_slice %4 {offsets = [0, 0], sizes = [8, 256], strides = [1, 1]} : vector<8x384xbf16> to vector<8x256xbf16>
    %cst_4 = arith.constant dense<0.000000e+00> : vector<32x256xf32>
    %9 = tpu.matmul %7, %8, %cst_4 {dimension_numbers = #tpu.dot_dimension_numbers<[1], [0], [0], [1], [0, 0, 1, 1], [], []>} : vector<32x8xbf16>, vector<8x256xbf16>, vector<32x256xf32> -> vector<32x256xf32>
    %10 = arith.addf %5, %9 : vector<32x256xf32>
    %c1 = arith.constant 1 : index
    %c0_5 = arith.constant 0 : index
    %c0_6 = arith.constant 0 : index
    %11 = vector.load %arg2[%c1, %c0_5, %c0_6] : memref<9x32x8xbf16, #tpu.memory_space<vmem>>, vector<1x32x8xbf16>
    %12 = vector.shape_cast %11 : vector<1x32x8xbf16> to vector<32x8xbf16>
    %13 = vector.extract_strided_slice %4 {offsets = [0, 1], sizes = [8, 256], strides = [1, 1]} : vector<8x384xbf16> to vector<8x256xbf16>
    %cst_7 = arith.constant dense<0.000000e+00> : vector<32x256xf32>
    %14 = tpu.matmul %12, %13, %cst_7 {dimension_numbers = #tpu.dot_dimension_numbers<[1], [0], [0], [1], [0, 0, 1, 1], [], []>} : vector<32x8xbf16>, vector<8x256xbf16>, vector<32x256xf32> -> vector<32x256xf32>
    %15 = arith.addf %10, %14 : vector<32x256xf32>
    %c2 = arith.constant 2 : index
    %c0_8 = arith.constant 0 : index
    %c0_9 = arith.constant 0 : index
    %16 = vector.load %arg2[%c2, %c0_8, %c0_9] : memref<9x32x8xbf16, #tpu.memory_space<vmem>>, vector<1x32x8xbf16>
    %17 = vector.shape_cast %16 : vector<1x32x8xbf16> to vector<32x8xbf16>
    %18 = vector.extract_strided_slice %4 {offsets = [0, 2], sizes = [8, 256], strides = [1, 1]} : vector<8x384xbf16> to vector<8x256xbf16>
    %cst_10 = arith.constant dense<0.000000e+00> : vector<32x256xf32>
    %19 = tpu.matmul %17, %18, %cst_10 {dimension_numbers = #tpu.dot_dimension_numbers<[1], [0], [0], [1], [0, 0, 1, 1], [], []>} : vector<32x8xbf16>, vector<8x256xbf16>, vector<32x256xf32> -> vector<32x256xf32>
    %20 = arith.addf %15, %19 : vector<32x256xf32>
    %c3 = arith.constant 3 : index
    %c0_11 = arith.constant 0 : index
    %c0_12 = arith.constant 0 : index
    %21 = vector.load %arg2[%c3, %c0_11, %c0_12] : memref<9x32x8xbf16, #tpu.memory_space<vmem>>, vector<1x32x8xbf16>
    %22 = vector.shape_cast %21 : vector<1x32x8xbf16> to vector<32x8xbf16>
    %23 = vector.extract_strided_slice %4 {offsets = [0, 18], sizes = [8, 256], strides = [1, 1]} : vector<8x384xbf16> to vector<8x256xbf16>
    %cst_13 = arith.constant dense<0.000000e+00> : vector<32x256xf32>
    %24 = tpu.matmul %22, %23, %cst_13 {dimension_numbers = #tpu.dot_dimension_numbers<[1], [0], [0], [1], [0, 0, 1, 1], [], []>} : vector<32x8xbf16>, vector<8x256xbf16>, vector<32x256xf32> -> vector<32x256xf32>
    %25 = arith.addf %20, %24 : vector<32x256xf32>
    %c4 = arith.constant 4 : index
    %c0_14 = arith.constant 0 : index
    %c0_15 = arith.constant 0 : index
    %26 = vector.load %arg2[%c4, %c0_14, %c0_15] : memref<9x32x8xbf16, #tpu.memory_space<vmem>>, vector<1x32x8xbf16>
    %27 = vector.shape_cast %26 : vector<1x32x8xbf16> to vector<32x8xbf16>
    %28 = vector.extract_strided_slice %4 {offsets = [0, 19], sizes = [8, 256], strides = [1, 1]} : vector<8x384xbf16> to vector<8x256xbf16>
    %cst_16 = arith.constant dense<0.000000e+00> : vector<32x256xf32>
    %29 = tpu.matmul %27, %28, %cst_16 {dimension_numbers = #tpu.dot_dimension_numbers<[1], [0], [0], [1], [0, 0, 1, 1], [], []>} : vector<32x8xbf16>, vector<8x256xbf16>, vector<32x256xf32> -> vector<32x256xf32>
    %30 = arith.addf %25, %29 : vector<32x256xf32>
    %c5 = arith.constant 5 : index
    %c0_17 = arith.constant 0 : index
    %c0_18 = arith.constant 0 : index
    %31 = vector.load %arg2[%c5, %c0_17, %c0_18] : memref<9x32x8xbf16, #tpu.memory_space<vmem>>, vector<1x32x8xbf16>
    %32 = vector.shape_cast %31 : vector<1x32x8xbf16> to vector<32x8xbf16>
    %33 = vector.extract_strided_slice %4 {offsets = [0, 20], sizes = [8, 256], strides = [1, 1]} : vector<8x384xbf16> to vector<8x256xbf16>
    %cst_19 = arith.constant dense<0.000000e+00> : vector<32x256xf32>
    %34 = tpu.matmul %32, %33, %cst_19 {dimension_numbers = #tpu.dot_dimension_numbers<[1], [0], [0], [1], [0, 0, 1, 1], [], []>} : vector<32x8xbf16>, vector<8x256xbf16>, vector<32x256xf32> -> vector<32x256xf32>
    %35 = arith.addf %30, %34 : vector<32x256xf32>
    %c6 = arith.constant 6 : index
    %c0_20 = arith.constant 0 : index
    %c0_21 = arith.constant 0 : index
    %36 = vector.load %arg2[%c6, %c0_20, %c0_21] : memref<9x32x8xbf16, #tpu.memory_space<vmem>>, vector<1x32x8xbf16>
    %37 = vector.shape_cast %36 : vector<1x32x8xbf16> to vector<32x8xbf16>
    %38 = vector.extract_strided_slice %4 {offsets = [0, 36], sizes = [8, 256], strides = [1, 1]} : vector<8x384xbf16> to vector<8x256xbf16>
    %cst_22 = arith.constant dense<0.000000e+00> : vector<32x256xf32>
    %39 = tpu.matmul %37, %38, %cst_22 {dimension_numbers = #tpu.dot_dimension_numbers<[1], [0], [0], [1], [0, 0, 1, 1], [], []>} : vector<32x8xbf16>, vector<8x256xbf16>, vector<32x256xf32> -> vector<32x256xf32>
    %40 = arith.addf %35, %39 : vector<32x256xf32>
    %c7 = arith.constant 7 : index
    %c0_23 = arith.constant 0 : index
    %c0_24 = arith.constant 0 : index
    %41 = vector.load %arg2[%c7, %c0_23, %c0_24] : memref<9x32x8xbf16, #tpu.memory_space<vmem>>, vector<1x32x8xbf16>
    %42 = vector.shape_cast %41 : vector<1x32x8xbf16> to vector<32x8xbf16>
    %43 = vector.extract_strided_slice %4 {offsets = [0, 37], sizes = [8, 256], strides = [1, 1]} : vector<8x384xbf16> to vector<8x256xbf16>
    %cst_25 = arith.constant dense<0.000000e+00> : vector<32x256xf32>
    %44 = tpu.matmul %42, %43, %cst_25 {dimension_numbers = #tpu.dot_dimension_numbers<[1], [0], [0], [1], [0, 0, 1, 1], [], []>} : vector<32x8xbf16>, vector<8x256xbf16>, vector<32x256xf32> -> vector<32x256xf32>
    %45 = arith.addf %40, %44 : vector<32x256xf32>
    %c8 = arith.constant 8 : index
    %c0_26 = arith.constant 0 : index
    %c0_27 = arith.constant 0 : index
    %46 = vector.load %arg2[%c8, %c0_26, %c0_27] : memref<9x32x8xbf16, #tpu.memory_space<vmem>>, vector<1x32x8xbf16>
    %47 = vector.shape_cast %46 : vector<1x32x8xbf16> to vector<32x8xbf16>
    %48 = vector.extract_strided_slice %4 {offsets = [0, 38], sizes = [8, 256], strides = [1, 1]} : vector<8x384xbf16> to vector<8x256xbf16>
    %cst_28 = arith.constant dense<0.000000e+00> : vector<32x256xf32>
    %49 = tpu.matmul %47, %48, %cst_28 {dimension_numbers = #tpu.dot_dimension_numbers<[1], [0], [0], [1], [0, 0, 1, 1], [], []>} : vector<32x8xbf16>, vector<8x256xbf16>, vector<32x256xf32> -> vector<32x256xf32>
    %50 = arith.addf %45, %49 : vector<32x256xf32>
    %c0_29 = arith.constant 0 : index
    %c0_30 = arith.constant 0 : index
    %51 = vector.load %arg3[%c0_29, %c0_30] : memref<32x1xf32, #tpu.memory_space<vmem>>, vector<32x1xf32>
    %52 = vector.broadcast %51 : vector<32x1xf32> to vector<32x256xf32>
    %53 = arith.addf %50, %52 : vector<32x256xf32>
    %c0_31 = arith.constant 0 : index
    %c0_32 = arith.constant 0 : index
    %c0_33 = arith.constant 0 : index
    %54 = vector.load %arg5[%c0_31, %c0_32, %c0_33] : memref<1x32x256xf32, #tpu.memory_space<vmem>>, vector<1x32x256xf32>
    %55 = vector.shape_cast %54 : vector<1x32x256xf32> to vector<32x256xf32>
    %56 = vector.shape_cast %53 : vector<32x256xf32> to vector<1x32x256xf32>
    tpu.vector_store %arg5[%c0_31, %c0_32, %c0_33], %56 {strides = array<i32>} : memref<1x32x256xf32, #tpu.memory_space<vmem>>, vector<1x32x256xf32>,
    return
  }
  func.func @transform_0(%arg0: i32, %arg1: i32) -> (i32, i32, i32) {
    %c0_i32 = arith.constant 0 : i32
    %c0_i32_0 = arith.constant 0 : i32
    %c0_i32_1 = arith.constant 0 : i32
    %c0_i32_2 = arith.constant 0 : i32
    return %c0_i32, %c0_i32_0, %c0_i32_1 : i32, i32, i32
  }
  func.func @transform_1(%arg0: i32, %arg1: i32) -> (i32, i32) {
    %c0_i32 = arith.constant 0 : i32
    %c0_i32_0 = arith.constant 0 : i32
    %c0_i32_1 = arith.constant 0 : i32
    return %c0_i32, %c0_i32_0 : i32, i32
  }
  func.func @transform_2(%arg0: i32, %arg1: i32) -> (i32, i32, i32) {
    %c0_i32 = arith.constant 0 : i32
    %c0_i32_0 = arith.constant 0 : i32
    %c0_i32_1 = arith.constant 0 : i32
    return %arg0, %c0_i32, %c0_i32_0 : i32, i32, i32
  }
  func.func @transform_3(%arg0: i32, %arg1: i32) -> (i32, i32, i32) {
    %c0_i32 = arith.constant 0 : i32
    %c0_i32_0 = arith.constant 0 : i32
    return %arg0, %c0_i32, %arg1 : i32, i32, i32
  }
}

module attributes {stable_mosaic.version = 11 : i64} {
  func.func @_conv_taps_kernel(%arg0: i32, %arg1: i32, %arg2: memref<1x8x11xbf16, #tpu.memory_space<vmem>>, %arg3: memref<8x1xf32, #tpu.memory_space<vmem>>, %arg4: memref<1x11x1024xbf16, #tpu.memory_space<vmem>>, %arg5: memref<1x8x512xf32, #tpu.memory_space<vmem>>) attributes {dimension_semantics = [#tpu.dimension_semantics<parallel>, #tpu.dimension_semantics<parallel>], iteration_bounds = array<i64: 2, 2>, scalar_prefetch = 0 : i64, scratch_operands = 0 : i64, tpu.core_type = #tpu.core_type<tc>, window_params = [{pipeline_mode = #tpu.pipeline_mode<synchronous>, transform_indices = @transform_0, window_bounds = array<i64: 1, 8, 11>}, {pipeline_mode = #tpu.pipeline_mode<synchronous>, transform_indices = @transform_1, window_bounds = array<i64: 8, 1>}, {transform_indices = @transform_2, window_bounds = array<i64: 1, 11, 1024>}, {transform_indices = @transform_3, window_bounds = array<i64: 1, 8, 512>}]} {
    %c512_i32 = arith.constant 512 : i32
    %0 = arith.muli %arg1, %c512_i32 : i32
    %1 = tpu.assume_multiple %0, 128 : i32
    %c0 = arith.constant 0 : index
    %c0_0 = arith.constant 0 : index
    %2 = arith.index_cast %1 : i32 to index
    %3 = vector.load %arg4[%c0, %c0_0, %2] : memref<1x11x1024xbf16, #tpu.memory_space<vmem>>, vector<1x11x512xbf16>
    %4 = vector.shape_cast %3 : vector<1x11x512xbf16> to vector<11x512xbf16>
    %cst = arith.constant 0.000000e+00 : f32
    %5 = vector.broadcast %cst : f32 to vector<8x512xf32>
    %c0_1 = arith.constant 0 : index
    %c0_2 = arith.constant 0 : index
    %c0_3 = arith.constant 0 : index
    %6 = vector.load %arg2[%c0_1, %c0_2, %c0_3] : memref<1x8x11xbf16, #tpu.memory_space<vmem>>, vector<1x8x11xbf16>
    %7 = vector.shape_cast %6 : vector<1x8x11xbf16> to vector<8x11xbf16>
    %cst_4 = arith.constant dense<0.000000e+00> : vector<8x512xf32>
    %8 = tpu.matmul %7, %4, %cst_4 {dimension_numbers = #tpu.dot_dimension_numbers<[1], [0], [0], [1], [0, 0, 1, 1], [], []>} : vector<8x11xbf16>, vector<11x512xbf16>, vector<8x512xf32> -> vector<8x512xf32>
    %9 = arith.addf %5, %8 : vector<8x512xf32>
    %c0_5 = arith.constant 0 : index
    %c0_6 = arith.constant 0 : index
    %10 = vector.load %arg3[%c0_5, %c0_6] : memref<8x1xf32, #tpu.memory_space<vmem>>, vector<8x1xf32>
    %11 = vector.broadcast %10 : vector<8x1xf32> to vector<8x512xf32>
    %12 = arith.addf %9, %11 : vector<8x512xf32>
    %cst_7 = arith.constant 5.000000e-01 : f32
    %13 = vector.broadcast %cst_7 : f32 to vector<8x512xf32>
    %14 = arith.mulf %13, %12 : vector<8x512xf32>
    %15 = math.tanh %14 : vector<8x512xf32>
    %cst_8 = arith.constant 1.000000e+00 : f32
    %16 = vector.broadcast %cst_8 : f32 to vector<8x512xf32>
    %17 = arith.addf %15, %16 : vector<8x512xf32>
    %cst_9 = arith.constant 5.000000e-01 : f32
    %18 = vector.broadcast %cst_9 : f32 to vector<8x512xf32>
    %19 = arith.mulf %18, %17 : vector<8x512xf32>
    %c0_10 = arith.constant 0 : index
    %c0_11 = arith.constant 0 : index
    %c0_12 = arith.constant 0 : index
    %20 = vector.load %arg5[%c0_10, %c0_11, %c0_12] : memref<1x8x512xf32, #tpu.memory_space<vmem>>, vector<1x8x512xf32>
    %21 = vector.shape_cast %20 : vector<1x8x512xf32> to vector<8x512xf32>
    %22 = vector.shape_cast %19 : vector<8x512xf32> to vector<1x8x512xf32>
    tpu.vector_store %arg5[%c0_10, %c0_11, %c0_12], %22 {strides = array<i32>} : memref<1x8x512xf32, #tpu.memory_space<vmem>>, vector<1x8x512xf32>,
    return
  }
  func.func @transform_0(%arg0: i32, %arg1: i32) -> (i32, i32, i32) {
    %c0_i32 = arith.constant 0 : i32
    %c0_i32_0 = arith.constant 0 : i32
    %c0_i32_1 = arith.constant 0 : i32
    %c0_i32_2 = arith.constant 0 : i32
    return %c0_i32, %c0_i32_0, %c0_i32_1 : i32, i32, i32
  }
  func.func @transform_1(%arg0: i32, %arg1: i32) -> (i32, i32) {
    %c0_i32 = arith.constant 0 : i32
    %c0_i32_0 = arith.constant 0 : i32
    %c0_i32_1 = arith.constant 0 : i32
    return %c0_i32, %c0_i32_0 : i32, i32
  }
  func.func @transform_2(%arg0: i32, %arg1: i32) -> (i32, i32, i32) {
    %c0_i32 = arith.constant 0 : i32
    %c0_i32_0 = arith.constant 0 : i32
    %c0_i32_1 = arith.constant 0 : i32
    return %arg0, %c0_i32, %c0_i32_0 : i32, i32, i32
  }
  func.func @transform_3(%arg0: i32, %arg1: i32) -> (i32, i32, i32) {
    %c0_i32 = arith.constant 0 : i32
    %c0_i32_0 = arith.constant 0 : i32
    return %arg0, %c0_i32, %arg1 : i32, i32, i32
  }
}

</mosaic_0001>

<bundles_post_ra>
// kernel: unet_forward.10
= control target key start
LH: loop header
LB: loop body
LE: loop exit
PB: predicated region body
PF: predicated region fallthrough
CT: control target
= control target key end

     0   :  { %s1032_s12 = smov 0   ;;  %s1034_s13 = smov 0   ;;  %s1158_s0 = inlined_call_operand.vmem [shape: bf16[9,8,8], index: 0, kind: input, shape index: {}]   ;;  %s1159_s1 = inlined_call_operand.vmem [shape: f32[8,1], index: 1, kind: input, shape index: {}]   ;;  %s1160_s2 = inlined_call_operand.vmem [shape: bf16[2,8,640], index: 2, kind: input, shape index: {}]   ;;  %s1161_s3 = inlined_call_operand.vmem [shape: f32[2,8,512], index: 3, kind: output, shape index: {}]  }
   0x1   :  { %s1036_s14 = smov 0   ;;  %s1038_s15 = smov 0  }
   0x2   :  { %s1040_s16 = smov 0  }
   0x3 LB: > { %s22_s17 = sadd.s32 1, %s993_s14  ;;  %s25_s18 = sadd.s32 1, %s997_s15  ;;  %s1001_s16 = sphi %s1040_s16, %s13_s16   ;;  %s997_s15 = sphi %s1038_s15, %s1165_s15   ;;  %s993_s14 = sphi %s1036_s14, %s1164_s14   ;;  %s989_s13 = sphi %s1034_s13, %s1163_s13   ;;  %s985_s12 = sphi %s1032_s12, %s1162_s12  }
   0x4   : > { %p23_p0 = scmp.ge.s32.totalorder %s22_s17, 2  ;;  %p871_p1 = scmp.ge.s32.totalorder %s1001_s16, 1 }
   0x5   : > { %p151_p2 = scmp.lt.s32.totalorder %s1001_s16, 5 }
   0x6   : > { %s1167_s17 = smov (%p23_p0, %s22_s17), 0  ;;  %s1169_s18 = smov (!%p23_p0, %s25_s18), %s997_s15 }
   0x7   : > { %p152_p3 = pnand %p871_p1, %p151_p2  ;;  %p27_p4 = scmp.ge.s32.totalorder %s1169_s18, 2 }
   0x8   : > { %p179_p5 = scmp.lt.s32.totalorder (!%p152_p3), %s989_s13, 1  ;;  %s876_s19 = sshll.u32 (!%p152_p3), %s985_s12, 8  ;;  %v1003_v0 = vmov (!%p152_p3), 0   ;;  %vm226_vm0 = vcmask (!%p152_p3), 1043456   ;;  %v202_v6 = vld [vmem:[%s1158_s0] sm:$0xf] (!%p152_p3) }
   0x9   : > { %s1171_s18 = smov (%p27_p4, %s1169_s18), 0  ;;  %155 = sbr.rel (%p152_p3) target bundleno = 409 (0x199), region = 32 }
   0xa   : > { %s196_s20 = sshra.s32 (!%p152_p3), %s876_s19, 7  ;;  %265 = vmatprep.mubr.bf16.mxu0 (!%p152_p3), %v1003_v0  ;;  %315 = vmatprep.mubr.bf16.mxu1 (!%p152_p3), %v1003_v0  ;;  %s1004_s27 = smov (!%p152_p3), 127   ;;  %vm222_vm1 = vcmask (!%p152_p3), 64512   ;;  %v765_v7 = vld [vmem:[%s1159_s1] sm:$0xff] (!%p152_p3)  ;;  %vm219_vm2 = vcmask (!%p152_p3), 1039360   ;;  %vm332_vm3 = vcmask (!%p152_p3), 1031168  }
   0xb   : > { %s877_s22 = sshll.u32 (!%p152_p3), %s196_s20, 2  ;;  %959 = vset.pattern.permute.xlu0 (!%p152_p3), %v1003_v0  ;;  %s1005_s30 = smov (!%p152_p3), 126   ;;  %v878_v16 = vld [vmem:[%s1158_s0 + $0x4] sm:$0xf] (!%p152_p3)  ;;  %vm395_vm4 = vcmask (!%p152_p3), 900096   ;;  %vm458_vm5 = vcmask (!%p152_p3), 891904  }
   0xc   : > { %s1006_s4 = smov (!%p152_p3), 110   ;;  %s1007_s5 = smov (!%p152_p3), 109   ;;  %v886_v25 = vld [vmem:[%s1158_s0 + $0x8] sm:$0xf] (!%p152_p3)  ;;  %v889_v30 = vld [vmem:[%s1158_s0 + $0xc] sm:$0xf] (!%p152_p3) }
   0xd   : > { %s1008_s6 = smov (!%p152_p3), 108   ;;  %s1009_s7 = smov (!%p152_p3), 92   ;;  %v892_v36 = vld [vmem:[%s1158_s0 + $0x10] sm:$0xf] (!%p152_p3)  ;;  %vm521_vm6 = vcmask (!%p152_p3), 883712   ;;  %vm584_vm7 = vcmask (!%p152_p3), 752640  }
   0xe   : > { %s1010_s8 = smov (!%p152_p3), 91   ;;  %s1011_s9 = smov (!%p152_p3), 90   ;;  %v895_v44 = vld [vmem:[%s1158_s0 + $0x14] sm:$0xf] (!%p152_p3)  ;;  %v898_v50 = vld [vmem:[%s1158_s0 + $0x18] sm:$0xf] (!%p152_p3) }
   0xf   : > { %vm647_vm8 = vcmask (!%p152_p3), 744448   ;;  %vm710_vm9 = vcmask (!%p152_p3), 736256   ;;  %v901_v58 = vld [vmem:[%s1158_s0 + $0x1c] sm:$0xf] (!%p152_p3)  ;;  %v904_v63 = vld [vmem:[%s1158_s0 + $0x20] sm:$0xf] (!%p152_p3) }
  0x10   : > { %s1173_s13 = smov (!%p179_p5, %s989_s13), 1 }
  0x11   : > { %s909_s21 = smul.u32 20, %s1173_s13 }
  0x13   : > { %s183_s25 = scalar_lea.vmem %s1160_s2, %s909_s21 }
  0x14   : > { %s199_s26 = scalar_lea.vmem %s183_s25, %s877_s22 }
  0x15   : > { %v960_v1 = vld [vmem:[%s199_s26 + $0x8] ss:$0 sps:$4 sm:$0xff]   ;;  %v200_v2 = vld [vmem:[%s199_s26] sm:$0xff] }
  0x16   : > { %v879_v3 = vcombine.low %v200_v2, %v200_v2  ;;  %v880_v4 = vcombine.high %v200_v2, %v200_v2  ;;  %217 = vrot.lane.b32.xlu1 %v960_v1, %s1004_s27 }
  0x18   : > { %213 = vrot.lane.b32.xlu0 %v879_v3, %s1004_s27  ;;  %884 = vmatprep.subr.msk.bf16.mxu1 %vm226_vm0, %v880_v4  ;;  %v278_v5 = vsel %vm226_vm0, %v879_v3, 0 }
  0x19   : > { %284 = vmatpush1.bf16.msra.mxu1 %v278_v5 }
  0x1a   : > { %326 = vrot.lane.b32.xlu1 %v879_v3, %s1005_s30 }
  0x1c   : > { %215 = vrot.lane.b32.xlu0 %v880_v4, %s1004_s27  ;;  %885 = vmatmul.mubr.msk.bf16.vlgmr.msra.gmra.mrb[0].mxu1 %vm222_vm1, %v202_v6 }
  0x1d   : > { %439 = vmatprep.mubr.bf16.mxu1 %v1003_v0 }
  0x1e   : > { %330 = vrot.lane.b32.xlu1 %v960_v1, %s1005_s30 }
  0x20   : > { %328 = vrot.lane.b32.xlu0 %v880_v4, %s1005_s30 }
  0x22   : > { %391 = vrot.lane.b32.xlu1 %v880_v4, %s1006_s4 }
  0x24   : > { %389 = vrot.lane.b32.xlu0 %v879_v3, %s1006_s4 }
  0x26   : > { %452 = vrot.lane.b32.xlu1 %v879_v3, %s1007_s5 }
  0x28   : > { %393 = vrot.lane.b32.xlu0 %v960_v1, %s1006_s4 }
  0x2a   : > { %456 = vrot.lane.b32.xlu1 %v960_v1, %s1007_s5 }
  0x2c   : > { %454 = vrot.lane.b32.xlu0 %v880_v4, %s1007_s5 }
  0x2e   : > { %517 = vrot.lane.b32.xlu1 %v880_v4, %s1008_s6 }
  0x30   : > { %515 = vrot.lane.b32.xlu0 %v879_v3, %s1008_s6 }
  0x32   : > { %578 = vrot.lane.b32.xlu1 %v879_v3, %s1009_s7 }
  0x34   : > { %519 = vrot.lane.b32.xlu0 %v960_v1, %s1008_s6 }
  0x36   : > { %582 = vrot.lane.b32.xlu1 %v960_v1, %s1009_s7 }
  0x38   : > { %580 = vrot.lane.b32.xlu0 %v880_v4, %s1009_s7 }
  0x3a   : > { %643 = vrot.lane.b32.xlu1 %v880_v4, %s1010_s8 }
  0x3c   : > { %641 = vrot.lane.b32.xlu0 %v879_v3, %s1010_s8 }
  0x3e   : > { %704 = vrot.lane.b32.xlu1 %v879_v3, %s1011_s9 }
  0x40   : > { %645 = vrot.lane.b32.xlu0 %v960_v1, %s1010_s8  ;;  %s873_s8 = sshll.u32 %s985_s12, 1 }
  0x41   : > { %p187_p6 = scmp.lt.s32.totalorder %s873_s8, 3 }
  0x42   : > { %708 = vrot.lane.b32.xlu1 %v960_v1, %s1011_s9 }
  0x43   : > { %s1175_s8 = smov (!%p187_p6, %s873_s8), 3 }
  0x44   : > { %706 = vrot.lane.b32.xlu0 %v880_v4, %s1011_s9  ;;  %s874_s9 = sshll.u32 %s1173_s13, 2 }
  0x45   : > { %s190_s10 = sadd.s32 %s874_s9, %s1175_s8 }
  0x46   : > { %s875_s12 = sshll.u32 %s190_s10, 3 }
  0x47   : > { %s192_s13 = scalar_lea.vmem %s1161_s3, %s875_s12 }
  0x48   : > { %768 = vperm.xlu0 %959, %v765_v7  }
  0x88   : > { %v218_v8 = vpop.permute.xlu1 %217 }
  0x8a   : > { %v214_v9 = vpop.permute.xlu0 %213 }
  0x8c   : > { %v327_v10 = vpop.permute.xlu1 %326 }
  0x8e   : > { %v216_v11 = vpop.permute.xlu0 %215 }
  0x8f   : > { %v221_v12 = vsel %vm219_vm2, %v216_v11, %v218_v8  ;;  %v220_v13 = vsel %vm219_vm2, %v214_v9, %v216_v11 }
  0x90   : > { %882 = vmatprep.subr.msk.bf16.mxu0 %vm226_vm0, %v221_v12  ;;  %v228_v14 = vsel %vm226_vm0, %v220_v13, 0  ;;  %v331_v15 = vpop.permute.xlu1 %330 }
  0x91   : > { %234 = vmatpush1.bf16.msra.mxu0 %v228_v14 }
  0x92   : > { %v329_v17 = vpop.permute.xlu0 %328 }
  0x93   : > { %v333_v18 = vsel %vm332_vm3, %v327_v10, %v329_v17  ;;  %v334_v19 = vsel %vm332_vm3, %v329_v17, %v331_v15 }
  0x94   : > { %v339_v20 = vsel %vm226_vm0, %v333_v18, 0  ;;  %887 = vmatprep.subr.msk.bf16.mxu0 %vm226_vm0, %v334_v19  ;;  %883 = vmatmul.mubr.msk.bf16.vlgmr.msra.gmra.mrb[0].mxu0 %vm222_vm1, %v878_v16  ;;  %v392_v21 = vpop.permute.xlu1 %391 }
  0x95   : > { %345 = vmatpush1.bf16.msra.mxu0 %v339_v20  ;;  %376 = vmatprep.mubr.bf16.mxu0 %v1003_v0 }
  0x96   : > { %v390_v22 = vpop.permute.xlu0 %389 }
  0x97   : > { %v396_v23 = vsel %vm395_vm4, %v390_v22, %v392_v21 }
  0x98   : > { %v453_v24 = vpop.permute.xlu1 %452  ;;  %v402_v28 = vsel %vm226_vm0, %v396_v23, 0 }
  0x9a   : > { %v394_v26 = vpop.permute.xlu0 %393 }
  0x9b   : > { %v397_v27 = vsel %vm395_vm4, %v392_v21, %v394_v26 }
  0x9c   : > { %890 = vmatprep.subr.msk.bf16.mxu1 %vm226_vm0, %v397_v27  ;;  %888 = vmatmul.mubr.msk.bf16.vlgmr.msra.gmra.mrb[4].mxu0 %vm222_vm1, %v886_v25  ;;  %v457_v29 = vpop.permute.xlu1 %456 }
  0x9d   : > { %408 = vmatpush1.bf16.msra.mxu1 %v402_v28  ;;  %502 = vmatprep.mubr.bf16.mxu0 %v1003_v0 }
  0x9e   : > { %v455_v31 = vpop.permute.xlu0 %454 }
  0x9f   : > { %v459_v32 = vsel %vm458_vm5, %v453_v24, %v455_v31  ;;  %v460_v33 = vsel %vm458_vm5, %v455_v31, %v457_v29 }
  0xa0   : > { %v465_v34 = vsel %vm226_vm0, %v459_v32, 0  ;;  %893 = vmatprep.subr.msk.bf16.mxu0 %vm226_vm0, %v460_v33  ;;  %891 = vmatmul.mubr.msk.bf16.vlgmr.msra.gmra.mrb[4].mxu1 %vm222_vm1, %v889_v30  ;;  %v518_v35 = vpop.permute.xlu1 %517 }
  0xa1   : > { %471 = vmatpush1.bf16.msra.mxu0 %v465_v34  ;;  %565 = vmatprep.mubr.bf16.mxu1 %v1003_v0 }
  0xa2   : > { %v516_v37 = vpop.permute.xlu0 %515 }
  0xa3   : > { %v522_v38 = vsel %vm521_vm6, %v516_v37, %v518_v35 }
  0xa4   : > { %894 = vmatmul.mubr.msk.bf16.vlgmr.msra.gmra.mrb[8].mxu0 %vm222_vm1, %v892_v36  ;;  %v579_v39 = vpop.permute.xlu1 %578  ;;  %v528_v42 = vsel %vm226_vm0, %v522_v38, 0 }
  0xa5   : > { %628 = vmatprep.mubr.bf16.mxu0 %v1003_v0 }
  0xa6   : > { %v520_v40 = vpop.permute.xlu0 %519 }
  0xa7   : > { %v523_v41 = vsel %vm521_vm6, %v518_v35, %v520_v40 }
  0xa8   : > { %896 = vmatprep.subr.msk.bf16.mxu1 %vm226_vm0, %v523_v41  ;;  %v583_v43 = vpop.permute.xlu1 %582 }
  0xa9   : > { %534 = vmatpush1.bf16.msra.mxu1 %v528_v42 }
  0xaa   : > { %v581_v45 = vpop.permute.xlu0 %580 }
  0xab   : > { %v585_v46 = vsel %vm584_vm7, %v579_v39, %v581_v45  ;;  %v586_v47 = vsel %vm584_vm7, %v581_v45, %v583_v43 }
  0xac   : > { %v591_v48 = vsel %vm226_vm0, %v585_v46, 0  ;;  %897 = vmatmul.mubr.msk.bf16.vlgmr.msra.gmra.mrb[8].mxu1 %vm222_vm1, %v895_v44  ;;  %899 = vmatprep.subr.msk.bf16.mxu0 %vm226_vm0, %v586_v47  ;;  %v644_v49 = vpop.permute.xlu1 %643 }
  0xad   : > { %597 = vmatpush1.bf16.msra.mxu0 %v591_v48  ;;  %691 = vmatprep.mubr.bf16.mxu1 %v1003_v0 }
  0xae   : > { %v642_v51 = vpop.permute.xlu0 %641 }
  0xaf   : > { %v648_v52 = vsel %vm647_vm8, %v642_v51, %v644_v49 }
  0xb0   : > { %900 = vmatmul.mubr.msk.bf16.vlgmr.msra.gmra.mrb[12].mxu0 %vm222_vm1, %v898_v50  ;;  %v705_v53 = vpop.permute.xlu1 %704  ;;  %v654_v56 = vsel %vm226_vm0, %v648_v52, 0 }
  0xb1   : > { %754 = vmatprep.mubr.bf16.mxu0 %v1003_v0 }
  0xb2   : > { %v646_v54 = vpop.permute.xlu0 %645 }
  0xb3   : > { %v649_v55 = vsel %vm647_vm8, %v644_v49, %v646_v54 }
  0xb4   : > { %902 = vmatprep.subr.msk.bf16.mxu1 %vm226_vm0, %v649_v55  ;;  %v709_v57 = vpop.permute.xlu1 %708 }
  0xb5   : > { %660 = vmatpush1.bf16.msra.mxu1 %v654_v56 }
  0xb6   : > { %v707_v59 = vpop.permute.xlu0 %706 }
  0xb7   : > { %v711_v60 = vsel %vm710_vm9, %v705_v53, %v707_v59  ;;  %v712_v61 = vsel %vm710_vm9, %v707_v59, %v709_v57 }
  0xb8   : > { %v717_v62 = vsel %vm226_vm0, %v711_v60, 0  ;;  %903 = vmatmul.mubr.msk.bf16.vlgmr.msra.gmra.mrb[12].mxu1 %vm222_vm1, %v901_v58  ;;  %905 = vmatprep.subr.msk.bf16.mxu0 %vm226_vm0, %v712_v61 }
  0xb9   : > { %723 = vmatpush1.bf16.msra.mxu0 %v717_v62 }
  0xbc   : > { %906 = vmatmul.mubr.msk.bf16.vlgmr.msra.gmra.mrb[16].mxu0 %vm222_vm1, %v904_v63 }
  0xc7   : > { %v769_v47 = vpop.permute.xlu0 %768 }
  0xef   : > { %v317_v0 = vpop.f32.mrb[0].mxu1 }
  0xf0   : > { %v319_v1 = vpop.f32.mrb[1].mxu1 }
  0xf1   : > { %v321_v2 = vpop.f32.mrb[2].mxu1 }
  0xf2   : > { %v322_v3 = vpop.f32.mrb[3].mxu1 }
 0x167   : > { %v267_v4 = vpop.f32.mrb[0].mxu0 }
 0x168   : > { %v269_v5 = vpop.f32.mrb[1].mxu0  ;;  %v318_v6 = vadd.f32 %v317_v0, %v267_v4 }
 0x169   : > { %v271_v7 = vpop.f32.mrb[2].mxu0  ;;  %v320_v8 = vadd.f32 %v319_v1, %v269_v5 }
 0x16a   : > { %v272_v9 = vpop.f32.mrb[3].mxu0 }
 0x16f   : > { %v378_v10 = vpop.f32.mrb[4].mxu0 }
 0x170   : > { %v385_v11 = vadd.f32 %v378_v10, %v318_v6  ;;  %v380_v12 = vpop.f32.mrb[5].mxu0 }
 0x171   : > { %v386_v13 = vadd.f32 %v380_v12, %v320_v8  ;;  %v382_v14 = vpop.f32.mrb[6].mxu0 }
 0x172   : > { %v383_v15 = vpop.f32.mrb[7].mxu0 }
 0x173   : > { %v441_v16 = vpop.f32.mrb[4].mxu1 }
 0x174   : > { %v448_v17 = vadd.f32 %v441_v16, %v385_v11  ;;  %v443_v18 = vpop.f32.mrb[5].mxu1 }
 0x175   : > { %v449_v19 = vadd.f32 %v443_v18, %v386_v13  ;;  %v445_v20 = vpop.f32.mrb[6].mxu1 }
 0x176   : > { %v446_v21 = vpop.f32.mrb[7].mxu1 }
 0x177   : > { %v504_v22 = vpop.f32.mrb[8].mxu0 }
 0x178   : > { %v511_v23 = vadd.f32 %v504_v22, %v448_v17  ;;  %v506_v24 = vpop.f32.mrb[9].mxu0 }
 0x179   : > { %v512_v25 = vadd.f32 %v506_v24, %v449_v19  ;;  %v508_v26 = vpop.f32.mrb[10].mxu0 }
 0x17a   : > { %v509_v27 = vpop.f32.mrb[11].mxu0 }
 0x17f   : > { %v567_v28 = vpop.f32.mrb[8].mxu1 }
 0x180   : > { %v574_v29 = vadd.f32 %v567_v28, %v511_v23  ;;  %v569_v30 = vpop.f32.mrb[9].mxu1 }
 0x181   : > { %v575_v31 = vadd.f32 %v569_v30, %v512_v25  ;;  %v571_v32 = vpop.f32.mrb[10].mxu1 }
 0x182   : > { %v572_v33 = vpop.f32.mrb[11].mxu1 }
 0x183   : > { %v630_v34 = vpop.f32.mrb[12].mxu0 }
 0x184   : > { %v637_v35 = vadd.f32 %v630_v34, %v574_v29  ;;  %v632_v36 = vpop.f32.mrb[13].mxu0 }
 0x185   : > { %v638_v37 = vadd.f32 %v632_v36, %v575_v31  ;;  %v634_v38 = vpop.f32.mrb[14].mxu0 }
 0x186   : > { %v635_v39 = vpop.f32.mrb[15].mxu0 }
 0x18b   : > { %v693_v40 = vpop.f32.mrb[12].mxu1 }
 0x18c   : > { %v700_v41 = vadd.f32 %v693_v40, %v637_v35  ;;  %v695_v42 = vpop.f32.mrb[13].mxu1 }
 0x18d   : > { %v701_v43 = vadd.f32 %v695_v42, %v638_v37  ;;  %v697_v44 = vpop.f32.mrb[14].mxu1 }
 0x18e   : > { %v698_v45 = vpop.f32.mrb[15].mxu1 }
 0x18f   : > { %v756_v46 = vpop.f32.mrb[16].mxu0 }
 0x190   : > { %v763_v48 = vadd.f32 %v756_v46, %v700_v41  ;;  %v758_v49 = vpop.f32.mrb[17].mxu0 }
 0x191   : > { %v764_v50 = vadd.f32 %v758_v49, %v701_v43  ;;  %v760_v51 = vpop.f32.mrb[18].mxu0 }
 0x192   : > { %v771_v52 = vadd.f32 %v769_v47, %v763_v48  ;;  %v761_v53 = vpop.f32.mrb[19].mxu0 }
 0x193   : > { %v772_v54 = vadd.f32 %v769_v47, %v764_v50 }
 0x194   : > { %vm773_vm10 = vcmp.ge.f32.partialorder %v771_v52, 0.0  ;;  %v775_v55 = vmul.f32 0.2, %v771_v52 }
 0x195   : > { %vm774_vm11 = vcmp.ge.f32.partialorder %v772_v54, 0.0  ;;  %v776_v56 = vmul.f32 0.2, %v772_v54 }
 0x196   : > { %v777_v57 = vsel %vm773_vm10, %v771_v52, %v775_v55 }
 0x197   : > { %v778_v58 = vsel %vm774_vm11, %v772_v54, %v776_v56  ;;  %779 = vst [vmem:[%s192_s13] sm:$0xff] %v777_v57 }
 0x198   : > { %780 = vst [vmem:[%s192_s13 + $0x8] sm:$0xff] %v778_v58 }
 0x199 PF: > { %s13_s16 = sadd.s32 1, %s1001_s16   ;;  %s1162_s12 = smov %s993_s14 }
 0x19a   : > { %p10_p7 = scmp.ge.s32.totalorder %s13_s16, 6   ;;  %s1163_s13 = smov %s997_s15 }
 0x19b   : > { %s1164_s14 = smov %s1167_s17  ;;  %s1165_s15 = smov %s1171_s18 }
 0x19c   :  { %12 = sbr.rel (!%p10_p7) target bundleno = 3 (0x3), region = 71 }

// kernel: unet_forward.9
= control target key start
LH: loop header
LB: loop body
LE: loop exit
PB: predicated region body
PF: predicated region fallthrough
CT: control target
= control target key end

     0   :  { %s701_s12 = smov 0   ;;  %s703_s13 = smov 0   ;;  %s787_s0 = inlined_call_operand.vmem [shape: bf16[4,8,12], index: 0, kind: input, shape index: {}]   ;;  %s788_s1 = inlined_call_operand.vmem [shape: f32[8,1], index: 1, kind: input, shape index: {}]   ;;  %s789_s2 = inlined_call_operand.vmem [shape: bf16[2,12,640], index: 2, kind: input, shape index: {}]   ;;  %s790_s3 = inlined_call_operand.vmem [shape: f32[2,8,512], index: 3, kind: output, shape index: {}]  }
   0x1   :  { %s705_s14 = smov 0   ;;  %s707_s15 = smov 0  }
   0x2   :  { %s709_s16 = smov 0  }
   0x3 LB: > { %s22_s17 = sadd.s32 1, %s667_s14  ;;  %s25_s18 = sadd.s32 1, %s671_s15  ;;  %s675_s16 = sphi %s709_s16, %s13_s16   ;;  %s671_s15 = sphi %s707_s15, %s794_s15   ;;  %s667_s14 = sphi %s705_s14, %s793_s14   ;;  %s663_s13 = sphi %s703_s13, %s792_s13   ;;  %s659_s12 = sphi %s701_s12, %s791_s12  }
   0x4   : > { %p23_p0 = scmp.ge.s32.totalorder %s22_s17, 2  ;;  %p563_p1 = scmp.ge.s32.totalorder %s675_s16, 1 }
   0x5   : > { %p151_p2 = scmp.lt.s32.totalorder %s675_s16, 5 }
   0x6   : > { %s796_s17 = smov (%p23_p0, %s22_s17), 0  ;;  %s798_s18 = smov (!%p23_p0, %s25_s18), %s671_s15 }
   0x7   : > { %p152_p3 = pnand %p563_p1, %p151_p2  ;;  %p27_p4 = scmp.ge.s32.totalorder %s798_s18, 2 }
   0x8   : > { %p179_p5 = scmp.lt.s32.totalorder (!%p152_p3), %s663_s13, 1  ;;  %s568_s19 = sshll.u32 (!%p152_p3), %s659_s12, 8  ;;  %v677_v0 = vmov (!%p152_p3), 0   ;;  %vm233_vm0 = vcmask (!%p152_p3), 1045504   ;;  %vm229_vm1 = vcmask (!%p152_p3), 97280   ;;  %v457_v6 = vld [vmem:[%s788_s1] sm:$0xff] (!%p152_p3) }
   0x9   : > { %s800_s18 = smov (%p27_p4, %s798_s18), 0  ;;  %155 = sbr.rel (%p152_p3) target bundleno = 379 (0x17b), region = 32 }
   0xa   : > { %s196_s20 = sshra.s32 (!%p152_p3), %s568_s19, 7  ;;  %272 = vmatprep.mubr.bf16.mxu0 (!%p152_p3), %v677_v0  ;;  %322 = vmatprep.mubr.bf16.mxu1 (!%p152_p3), %v677_v0  ;;  %s678_s27 = smov (!%p152_p3), 127   ;;  %v204_v5 = vld [vmem:[%s787_s0] sm:$0xf] (!%p152_p3)  ;;  %vm226_vm2 = vcmask (!%p152_p3), 1039360   ;;  %vm339_vm3 = vcmask (!%p152_p3), 908288  }
   0xb   : > { %s569_s22 = sshll.u32 (!%p152_p3), %s196_s20, 2  ;;  %631 = vset.pattern.permute.xlu1 (!%p152_p3), %v677_v0  ;;  %632 = vset.pattern.permute.xlu0 (!%p152_p3), %v677_v0  ;;  %s679_s30 = smov (!%p152_p3), 111   ;;  %v570_v15 = vld [vmem:[%s787_s0 + $0x4] sm:$0xf] (!%p152_p3)  ;;  %vm402_vm4 = vcmask (!%p152_p3), 900096  }
   0xc   : > { %s680_s4 = smov (!%p152_p3), 110   ;;  %v578_v23 = vld [vmem:[%s787_s0 + $0x8] sm:$0xf] (!%p152_p3)  ;;  %v581_v27 = vld [vmem:[%s787_s0 + $0xc] sm:$0xf] (!%p152_p3)  ;;  %s565_s20 = sshll.u32 (!%p152_p3), %s659_s12, 1 }
   0xd   : > { %p187_p6 = scmp.lt.s32.totalorder (!%p152_p3), %s565_s20, 3 }
  0x10   : > { %s802_s13 = smov (!%p179_p5, %s663_s13), 1  ;;  %s804_s20 = smov (!%p187_p6, %s565_s20), 3 }
  0x11   : > { %s586_s21 = smul.u32 40, %s802_s13 }
  0x13   : > { %s183_s25 = scalar_lea.vmem %s789_s2, %s586_s21  ;;  %s566_s21 = sshll.u32 %s802_s13, 2 }
  0x14   : > { %s199_s26 = scalar_lea.vmem %s183_s25, %s569_s22  ;;  %s190_s22 = sadd.s32 %s566_s21, %s804_s20 }
  0x15   : > { %v633_v1 = vld [vmem:[%s199_s26 + $0x8] ss:$20 sps:$4 sm:$0x3f]   ;;  %v634_v2 = vld [vmem:[%s199_s26] ss:$20 sps:$4 sm:$0x3f]  }
  0x16   : > { %v636_v3 = vld [vmem:[%s199_s26 + $0x4] ss:$20 sps:$4 sm:$0x3f]   ;;  %224 = vrot.lane.b32.xlu1 %v633_v1, %s678_s27  ;;  %220 = vrot.lane.b32.xlu0 %v634_v2, %s678_s27  ;;  %v285_v4 = vsel %vm233_vm0, %v634_v2, 0  ;;  %s567_s12 = sshll.u32 %s190_s22, 3 }
  0x17   : > { %576 = vmatprep.subr.msk.bf16.mxu1 %vm233_vm0, %v636_v3  ;;  %s192_s13 = scalar_lea.vmem %s790_s3, %s567_s12 }
  0x18   : > { %291 = vmatpush1.bf16.msra.mxu1 %v285_v4 }
  0x1a   : > { %333 = vrot.lane.b32.xlu1 %v634_v2, %s679_s30  ;;  %222 = vrot.lane.b32.xlu0 %v636_v3, %s678_s27 }
  0x1b   : > { %577 = vmatmul.mubr.msk.bf16.vlgmr.msra.gmra.mrb[0].mxu1 %vm229_vm1, %v204_v5 }
  0x1c   : > { %446 = vmatprep.mubr.bf16.mxu1 %v677_v0 }
  0x1e   : > { %337 = vrot.lane.b32.xlu1 %v633_v1, %s679_s30  ;;  %335 = vrot.lane.b32.xlu0 %v636_v3, %s679_s30 }
  0x22   : > { %398 = vrot.lane.b32.xlu1 %v636_v3, %s680_s4  ;;  %396 = vrot.lane.b32.xlu0 %v634_v2, %s680_s4 }
  0x26   : > { %460 = vperm.xlu1 %631, %v457_v6   ;;  %400 = vrot.lane.b32.xlu0 %v633_v1, %s680_s4 }
  0x88   : > { %v225_v7 = vpop.permute.xlu1 %224  ;;  %v221_v8 = vpop.permute.xlu0 %220 }
  0x8c   : > { %v334_v9 = vpop.permute.xlu1 %333  ;;  %v223_v10 = vpop.permute.xlu0 %222 }
  0x8d   : > { %v228_v11 = vsel %vm226_vm2, %v223_v10, %v225_v7  ;;  %v227_v12 = vsel %vm226_vm2, %v221_v8, %v223_v10 }
  0x8e   : > { %574 = vmatprep.subr.msk.bf16.mxu0 %vm233_vm0, %v228_v11  ;;  %v235_v13 = vsel %vm233_vm0, %v227_v12, 0 }
  0x8f   : > { %241 = vmatpush1.bf16.msra.mxu0 %v235_v13 }
  0x90   : > { %v338_v14 = vpop.permute.xlu1 %337  ;;  %v336_v16 = vpop.permute.xlu0 %335 }
  0x91   : > { %v340_v17 = vsel %vm339_vm3, %v334_v9, %v336_v16  ;;  %v341_v18 = vsel %vm339_vm3, %v336_v16, %v338_v14 }
  0x92   : > { %v346_v19 = vsel %vm233_vm0, %v340_v17, 0  ;;  %575 = vmatmul.mubr.msk.bf16.vlgmr.msra.gmra.mrb[0].mxu0 %vm229_vm1, %v570_v15  ;;  %579 = vmatprep.subr.msk.bf16.mxu0 %vm233_vm0, %v341_v18 }
  0x93   : > { %352 = vmatpush1.bf16.msra.mxu0 %v346_v19  ;;  %383 = vmatprep.mubr.bf16.mxu0 %v677_v0 }
  0x94   : > { %v399_v20 = vpop.permute.xlu1 %398  ;;  %v397_v21 = vpop.permute.xlu0 %396 }
  0x95   : > { %v403_v22 = vsel %vm402_vm4, %v397_v21, %v399_v20 }
  0x96   : > { %v409_v26 = vsel %vm233_vm0, %v403_v22, 0 }
  0x98   : > { %v401_v24 = vpop.permute.xlu0 %400 }
  0x99   : > { %v404_v25 = vsel %vm402_vm4, %v399_v20, %v401_v24 }
  0x9a   : > { %580 = vmatmul.mubr.msk.bf16.vlgmr.msra.gmra.mrb[4].mxu0 %vm229_vm1, %v578_v23  ;;  %582 = vmatprep.subr.msk.bf16.mxu1 %vm233_vm0, %v404_v25 }
  0x9b   : > { %415 = vmatpush1.bf16.msra.mxu1 %v409_v26 }
  0x9e   : > { %583 = vmatmul.mubr.msk.bf16.vlgmr.msra.gmra.mrb[4].mxu1 %vm229_vm1, %v581_v27 }
  0xa5   : > { %v461_v45 = vpop.permute.xlu1 %460 }
  0xee   : > { %v324_v28 = vpop.f32.mrb[0].mxu1 }
  0xef   : > { %v326_v29 = vpop.f32.mrb[1].mxu1 }
  0xf0   : > { %v328_v30 = vpop.f32.mrb[2].mxu1 }
  0xf1   : > { %v329_v31 = vpop.f32.mrb[3].mxu1 }
 0x165   : > { %v274_v32 = vpop.f32.mrb[0].mxu0 }
 0x166   : > { %v276_v33 = vpop.f32.mrb[1].mxu0  ;;  %v325_v34 = vadd.f32 %v324_v28, %v274_v32 }
 0x167   : > { %v278_v35 = vpop.f32.mrb[2].mxu0  ;;  %v327_v36 = vadd.f32 %v326_v29, %v276_v33 }
 0x168   : > { %v279_v37 = vpop.f32.mrb[3].mxu0 }
 0x16d   : > { %v385_v38 = vpop.f32.mrb[4].mxu0 }
 0x16e   : > { %v392_v39 = vadd.f32 %v385_v38, %v325_v34  ;;  %v387_v40 = vpop.f32.mrb[5].mxu0 }
 0x16f   : > { %v393_v41 = vadd.f32 %v387_v40, %v327_v36  ;;  %v389_v42 = vpop.f32.mrb[6].mxu0 }
 0x170   : > { %v390_v43 = vpop.f32.mrb[7].mxu0 }
 0x171   : > { %v448_v44 = vpop.f32.mrb[4].mxu1 }
 0x172   : > { %v455_v46 = vadd.f32 %v448_v44, %v392_v39  ;;  %v450_v47 = vpop.f32.mrb[5].mxu1 }
 0x173   : > { %v456_v48 = vadd.f32 %v450_v47, %v393_v41  ;;  %v452_v49 = vpop.f32.mrb[6].mxu1 }
 0x174   : > { %v463_v50 = vadd.f32 %v461_v45, %v455_v46  ;;  %v453_v51 = vpop.f32.mrb[7].mxu1 }
 0x175   : > { %v464_v52 = vadd.f32 %v461_v45, %v456_v48 }
 0x176   : > { %vm465_vm5 = vcmp.ge.f32.partialorder %v463_v50, 0.0  ;;  %v467_v53 = vmul.f32 0.2, %v463_v50 }
 0x177   : > { %vm466_vm6 = vcmp.ge.f32.partialorder %v464_v52, 0.0  ;;  %v468_v54 = vmul.f32 0.2, %v464_v52 }
 0x178   : > { %v469_v55 = vsel %vm465_vm5, %v463_v50, %v467_v53 }
 0x179   : > { %v470_v56 = vsel %vm466_vm6, %v464_v52, %v468_v54  ;;  %471 = vst [vmem:[%s192_s13] sm:$0xff] %v469_v55 }
 0x17a   : > { %472 = vst [vmem:[%s192_s13 + $0x8] sm:$0xff] %v470_v56 }
 0x17b PF: > { %s13_s16 = sadd.s32 1, %s675_s16   ;;  %s791_s12 = smov %s667_s14 }
 0x17c   : > { %p10_p7 = scmp.ge.s32.totalorder %s13_s16, 6   ;;  %s792_s13 = smov %s671_s15 }
 0x17d   : > { %s793_s14 = smov %s796_s17  ;;  %s794_s15 = smov %s800_s18 }
 0x17e   :  { %12 = sbr.rel (!%p10_p7) target bundleno = 3 (0x3), region = 66 }

// kernel: unet_forward.11
= control target key start
LH: loop header
LB: loop body
LE: loop exit
PB: predicated region body
PF: predicated region fallthrough
CT: control target
= control target key end

     0   :  { %s675_s12 = smov 0   ;;  %s677_s13 = smov 0   ;;  %s751_s0 = inlined_call_operand.vmem [shape: bf16[4,8,32], index: 0, kind: input, shape index: {}]   ;;  %s752_s1 = inlined_call_operand.vmem [shape: f32[8,1], index: 1, kind: input, shape index: {}]   ;;  %s753_s2 = inlined_call_operand.vmem [shape: bf16[2,32,256], index: 2, kind: input, shape index: {}]   ;;  %s754_s3 = inlined_call_operand.vmem [shape: f32[2,8,128], index: 3, kind: output, shape index: {}]  }
   0x1   :  { %s679_s14 = smov 0  }
   0x2 LB: > { %s25_s15 = sadd.s32 1, %s643_s13  ;;  %p526_p0 = scmp.ge.s32.totalorder %s647_s14, 1  ;;  %s647_s14 = sphi %s679_s14, %s13_s14   ;;  %s643_s13 = sphi %s677_s13, %s756_s13   ;;  %s639_s12 = sphi %s675_s12, %s755_s12  }
   0x3   : > { %p27_p1 = scmp.ge.s32.totalorder %s25_s15, 2  ;;  %p151_p2 = scmp.lt.s32.totalorder %s647_s14, 3 }
   0x5   : > { %s758_s15 = smov (%p27_p1, %s25_s15), 0  ;;  %p152_p3 = pnand %p526_p0, %p151_p2 }
   0x6   : > { %p177_p4 = scmp.lt.s32.totalorder (!%p152_p3), %s639_s12, 1  ;;  %v649_v0 = vmov (!%p152_p3), 0.0   ;;  %vm650_vm0 = vmmov (!%p152_p3), 0   ;;  %s651_s20 = smov (!%p152_p3), 127   ;;  %vm231_vm1 = vcmask (!%p152_p3), 261120   ;;  %v654_v6 = vmov (!%p152_p3), 0  }
   0x7   : > { %155 = sbr.rel (%p152_p3) target bundleno = 378 (0x17a), region = 32  ;;  %556 = vmatprep.subr.bf16.mxu0 (!%p152_p3), %v649_v0  ;;  %564 = vmatprep.subr.bf16.mxu1 (!%p152_p3), %v649_v0  ;;  %v199_v5 = vld [vmem:[%s751_s0] sm:$0xf] (!%p152_p3)  ;;  %s652_s23 = smov (!%p152_p3), 119   ;;  %vm226_vm2 = vcmask (!%p152_p3), 1039360   ;;  %vm330_vm3 = vcmask (!%p152_p3), 973824  }
   0x8   : > { %560 = vmatprep.mubr.msk.bf16.mxu0 (!%p152_p3), %vm650_vm0, %v649_v0  ;;  %568 = vmatprep.mubr.msk.bf16.mxu1 (!%p152_p3), %vm650_vm0, %v649_v0  ;;  %s653_s24 = smov (!%p152_p3), 118   ;;  %v438_v7 = vld [vmem:[%s752_s1] sm:$0xff] (!%p152_p3)  ;;  %vm389_vm4 = vcmask (!%p152_p3), 965632   ;;  %v537_v24 = vld [vmem:[%s751_s0 + $0x8] sm:$0xf] (!%p152_p3) }
   0x9   : > { %618 = vset.pattern.permute.xlu0 (!%p152_p3), %v654_v6  ;;  %v530_v16 = vld [vmem:[%s751_s0 + $0x4] sm:$0xf] (!%p152_p3)  ;;  %v539_v28 = vld [vmem:[%s751_s0 + $0xc] sm:$0xf] (!%p152_p3) }
   0xe   : > { %s760_s12 = smov (!%p177_p4, %s639_s12), 1 }
   0xf   : > { %s543_s16 = sshll.u32 %s760_s12, 5  ;;  %s529_s6 = sshll.u32 %s760_s12, 3 }
  0x10   : > { %s181_s19 = scalar_lea.vmem %s753_s2, %s543_s16  ;;  %s188_s9 = scalar_lea.vmem %s754_s3, %s529_s6 }
  0x11   : > { %v619_v1 = vld [vmem:[%s181_s19 + $0x10] ss:$8 sps:$4 sm:$0xff]   ;;  %v621_v2 = vld [vmem:[%s181_s19] ss:$8 sps:$4 sm:$0xff]   ;;  %v623_v3 = vld [vmem:[%s181_s19 + $0x14] ss:$8 sps:$4 sm:$0xff]  }
  0x12   : > { %222 = vrot.lane.b32.xlu1 %v619_v1, %s651_s20  ;;  %218 = vrot.lane.b32.xlu0 %v621_v2, %s651_s20  ;;  %v624_v4 = vld [vmem:[%s181_s19 + $0x4] ss:$8 sps:$4 sm:$0xff]  }
  0x13   : > { %565 = vmatpush3.bf16.msra.mxu1 %v621_v2 }
  0x14   : > { %566 = vmatprep.subr.bf16.mxu1 %v649_v0 }
  0x16   : > { %224 = vrot.lane.b32.xlu1 %v623_v3, %s651_s20  ;;  %220 = vrot.lane.b32.xlu0 %v624_v4, %s651_s20 }
  0x17   : > { %567 = vmatpush3.bf16.msra.mxu1 %v619_v1 }
  0x18   : > { %580 = vmatprep.subr.bf16.mxu1 %v649_v0 }
  0x1a   : > { %324 = vrot.lane.b32.xlu1 %v624_v4, %s652_s23  ;;  %569 = vmatmul.mubr.msk.bf16.vlgmr.msra.gmra.mrb[0].mxu1 %vm231_vm1, %v199_v5 }
  0x1b   : > { %322 = vrot.lane.b32.xlu0 %v621_v2, %s652_s23  ;;  %584 = vmatprep.mubr.msk.bf16.mxu1 %vm650_vm0, %v649_v0 }
  0x1e   : > { %383 = vrot.lane.b32.xlu1 %v624_v4, %s653_s24 }
  0x1f   : > { %381 = vrot.lane.b32.xlu0 %v621_v2, %s653_s24 }
  0x22   : > { %328 = vrot.lane.b32.xlu1 %v623_v3, %s652_s23 }
  0x23   : > { %326 = vrot.lane.b32.xlu0 %v619_v1, %s652_s23 }
  0x26   : > { %387 = vrot.lane.b32.xlu1 %v623_v3, %s653_s24 }
  0x27   : > { %385 = vrot.lane.b32.xlu0 %v619_v1, %s653_s24 }
  0x2b   : > { %441 = vperm.xlu0 %618, %v438_v7  }
  0x84   : > { %v223_v8 = vpop.permute.xlu1 %222  ;;  %v219_v9 = vpop.permute.xlu0 %218 }
  0x88   : > { %v225_v10 = vpop.permute.xlu1 %224  ;;  %v221_v11 = vpop.permute.xlu0 %220 }
  0x89   : > { %v227_v12 = vsel %vm226_vm2, %v219_v9, %v221_v11  ;;  %v228_v15 = vsel %vm226_vm2, %v223_v8, %v225_v10 }
  0x8a   : > { %557 = vmatpush3.bf16.msra.mxu0 %v227_v12 }
  0x8b   : > { %558 = vmatprep.subr.bf16.mxu0 %v649_v0 }
  0x8c   : > { %v325_v13 = vpop.permute.xlu1 %324 }
  0x8d   : > { %v323_v14 = vpop.permute.xlu0 %322 }
  0x8e   : > { %559 = vmatpush3.bf16.msra.mxu0 %v228_v15  ;;  %v331_v19 = vsel %vm330_vm3, %v323_v14, %v325_v13 }
  0x8f   : > { %572 = vmatprep.subr.bf16.mxu0 %v649_v0 }
  0x90   : > { %v384_v17 = vpop.permute.xlu1 %383 }
  0x91   : > { %v382_v18 = vpop.permute.xlu0 %381  ;;  %561 = vmatmul.mubr.msk.bf16.vlgmr.msra.gmra.mrb[0].mxu0 %vm231_vm1, %v530_v16 }
  0x92   : > { %v390_v20 = vsel %vm389_vm4, %v382_v18, %v384_v17  ;;  %573 = vmatpush3.bf16.msra.mxu0 %v331_v19  ;;  %576 = vmatprep.mubr.msk.bf16.mxu0 %vm650_vm0, %v649_v0 }
  0x93   : > { %581 = vmatpush3.bf16.msra.mxu1 %v390_v20  ;;  %574 = vmatprep.subr.bf16.mxu0 %v649_v0 }
  0x94   : > { %v329_v21 = vpop.permute.xlu1 %328  ;;  %582 = vmatprep.subr.bf16.mxu1 %v649_v0 }
  0x95   : > { %v327_v22 = vpop.permute.xlu0 %326 }
  0x96   : > { %v332_v23 = vsel %vm330_vm3, %v327_v22, %v329_v21 }
  0x97   : > { %575 = vmatpush3.bf16.msra.mxu0 %v332_v23 }
  0x98   : > { %v388_v25 = vpop.permute.xlu1 %387 }
  0x99   : > { %v386_v26 = vpop.permute.xlu0 %385 }
  0x9a   : > { %v391_v27 = vsel %vm389_vm4, %v386_v26, %v388_v25  ;;  %577 = vmatmul.mubr.msk.bf16.vlgmr.msra.gmra.mrb[4].mxu0 %vm231_vm1, %v537_v24 }
  0x9b   : > { %583 = vmatpush3.bf16.msra.mxu1 %v391_v27 }
  0x9e   : > { %585 = vmatmul.mubr.msk.bf16.vlgmr.msra.gmra.mrb[4].mxu1 %vm231_vm1, %v539_v28 }
  0xaa   : > { %v442_v44 = vpop.permute.xlu0 %441 }
  0xed   : > { %v314_v29 = vpop.f32.mrb[0].mxu1 }
  0xee   : > { %v570_v30 = vpop.f32.mrb[1].mxu1 }
  0xef   : > { %v317_v31 = vpop.f32.mrb[2].mxu1 }
  0xf0   : > { %v571_v32 = vpop.f32.mrb[3].mxu1 }
 0x164   : > { %v269_v33 = vpop.f32.mrb[0].mxu0 }
 0x165   : > { %v562_v34 = vpop.f32.mrb[1].mxu0  ;;  %v315_v35 = vadd.f32 %v314_v29, %v269_v33 }
 0x166   : > { %v272_v36 = vpop.f32.mrb[2].mxu0 }
 0x167   : > { %v563_v37 = vpop.f32.mrb[3].mxu0 }
 0x16d   : > { %v372_v38 = vpop.f32.mrb[4].mxu0 }
 0x16e   : > { %v378_v39 = vadd.f32 %v372_v38, %v315_v35  ;;  %v578_v40 = vpop.f32.mrb[5].mxu0 }
 0x16f   : > { %v375_v41 = vpop.f32.mrb[6].mxu0 }
 0x170   : > { %v579_v42 = vpop.f32.mrb[7].mxu0 }
 0x171   : > { %v431_v43 = vpop.f32.mrb[4].mxu1 }
 0x172   : > { %v437_v45 = vadd.f32 %v431_v43, %v378_v39  ;;  %v586_v46 = vpop.f32.mrb[5].mxu1 }
 0x173   : > { %v434_v47 = vpop.f32.mrb[6].mxu1 }
 0x174   : > { %v444_v48 = vadd.f32 %v442_v44, %v437_v45  ;;  %v587_v49 = vpop.f32.mrb[7].mxu1 }
 0x176   : > { %vm445_vm5 = vcmp.ge.f32.partialorder %v444_v48, 0.0  ;;  %v446_v50 = vmul.f32 0.2, %v444_v48 }
 0x178   : > { %v447_v51 = vsel %vm445_vm5, %v444_v48, %v446_v50 }
 0x179   : > { %448 = vst [vmem:[%s188_s9] sm:$0xff] %v447_v51 }
 0x17a PF: > { %s13_s14 = sadd.s32 1, %s647_s14   ;;  %s755_s12 = smov %s643_s13 }
 0x17b   : > { %p10_p5 = scmp.ge.s32.totalorder %s13_s14, 4   ;;  %s756_s13 = smov %s758_s15 }
 0x17d   :  { %12 = sbr.rel (!%p10_p5) target bundleno = 2 (0x2), region = 66 }

// kernel: tile.13
= control target key start
LH: loop header
LB: loop body
LE: loop exit
PB: predicated region body
PF: predicated region fallthrough
CT: control target
= control target key end

     0   :  { %s22_s0 = inlined_call_operand.vmem [shape: f32[8], index: 0, kind: input, shape index: {}]   ;;  %s23_s1 = inlined_call_operand.vmem [shape: f32[4,8], index: 1, kind: output, shape index: {}]  }
   0x1   :  { %v4_v0 = vld [vmem:[%s22_s0] ss:$0 sm:$0xff] }
   0x2   :  { %5 = vst [vmem:[%s23_s1] sm:$0xf] %v4_v0 }

// kernel: tile.1
= control target key start
LH: loop header
LB: loop body
LE: loop exit
PB: predicated region body
PF: predicated region fallthrough
CT: control target
= control target key end

     0   :  { %s66_s8 = smov 125   ;;  %vm7_vm0 = vcmask 7168   ;;  %s67_s11 = smov 126   ;;  %s117_s0 = inlined_call_operand.vmem [shape: f32[4,8], index: 0, kind: input, shape index: {}]   ;;  %s118_s1 = inlined_call_operand.vmem [shape: f32[32,1], index: 1, kind: output, shape index: {}]  }
   0x1   :  { %v4_v0 = vld [vmem:[%s117_s0] sm:$0xf]  ;;  %s65_s0 = smov 127   ;;  %s68_s12 = smov 124  }
   0x2   :  { %5 = vst [vmem:[#allocation0] sm:$0xf] %v4_v0  ;;  %s69_s13 = smov 123   ;;  %s70_s14 = smov 122  }
   0x3   :  { %s71_s15 = smov 121  }
   0x9   :  { %v9_v1 = vld [vmem:[#allocation0] sm:$0xf]  }
   0xa   :  { %v21_v2 = vld [vmem:[#allocation0] sm:$0xf]   ;;  %10 = vrot.lane.b32.xlu0 %v9_v1, %s65_s0 }
   0xb   :  { %22 = vrot.lane.b32.xlu1 %v21_v2, %s66_s8  ;;  %v15_v3 = vld [vmem:[#allocation0] sm:$0xf]  }
   0xc   :  { %v27_v4 = vld [vmem:[#allocation0] sm:$0xf]  }
   0xd   :  { %v6_v5 = vld [vmem:[#allocation0] sm:$0xf]  }
   0xe   :  { %8 = vst.msk [vmem:[%s118_s1] ss:$8 sm:$0xf] %vm7_vm0, %v6_v5   ;;  %16 = vrot.lane.b32.xlu0 %v15_v3, %s67_s11  ;;  %v33_v6 = vld [vmem:[#allocation0] sm:$0xf]  }
   0xf   :  { %28 = vrot.lane.b32.xlu1 %v27_v4, %s68_s12  ;;  %v39_v7 = vld [vmem:[#allocation0] sm:$0xf]  }
  0x10   :  { %v45_v8 = vld [vmem:[#allocation0] sm:$0xf]  }
  0x12   :  { %34 = vrot.lane.b32.xlu0 %v33_v6, %s69_s13 }
  0x13   :  { %40 = vrot.lane.b32.xlu1 %v39_v7, %s70_s14 }
  0x16   :  { %46 = vrot.lane.b32.xlu0 %v45_v8, %s71_s15 }
  0x7c   :  { %v11_v9 = vpop.permute.xlu0 %10  }
  0x7d   :  { %v23_v10 = vpop.permute.xlu1 %22   ;;  %51 = vst.msk [vmem:[%s118_s1 + $0x1] ss:$8 sm:$0xf] %vm7_vm0, %v11_v9  }
  0x7e   :  { %53 = vst.msk [vmem:[%s118_s1 + $0x3] ss:$8 sm:$0xf] %vm7_vm0, %v23_v10  }
  0x80   :  { %v17_v11 = vpop.permute.xlu0 %16  }
  0x81   :  { %v29_v12 = vpop.permute.xlu1 %28   ;;  %52 = vst.msk [vmem:[%s118_s1 + $0x2] ss:$8 sm:$0xf] %vm7_vm0, %v17_v11  }
  0x82   :  { %54 = vst.msk [vmem:[%s118_s1 + $0x4] ss:$8 sm:$0xf] %vm7_vm0, %v29_v12  }
  0x84   :  { %v35_v13 = vpop.permute.xlu0 %34  }
  0x85   :  { %v41_v14 = vpop.permute.xlu1 %40   ;;  %55 = vst.msk [vmem:[%s118_s1 + $0x5] ss:$8 sm:$0xf] %vm7_vm0, %v35_v13  }
  0x86   :  { %56 = vst.msk [vmem:[%s118_s1 + $0x6] ss:$8 sm:$0xf] %vm7_vm0, %v41_v14  }
  0x88   :  { %v47_v15 = vpop.permute.xlu0 %46  }
  0x89   :  { %57 = vst.msk [vmem:[%s118_s1 + $0x7] ss:$8 sm:$0xf] %vm7_vm0, %v47_v15  }

// kernel: unet_forward.12
= control target key start
LH: loop header
LB: loop body
LE: loop exit
PB: predicated region body
PF: predicated region fallthrough
CT: control target
= control target key end

     0   :  { %s968_s12 = smov 0   ;;  %s970_s13 = smov 0   ;;  %s1083_s0 = inlined_call_operand.vmem [shape: bf16[9,8,8], index: 0, kind: input, shape index: {}]   ;;  %s1084_s1 = inlined_call_operand.vmem [shape: f32[8,1], index: 1, kind: input, shape index: {}]   ;;  %s1085_s2 = inlined_call_operand.vmem [shape: bf16[2,8,256], index: 2, kind: input, shape index: {}]   ;;  %s1086_s3 = inlined_call_operand.vmem [shape: f32[2,8,128], index: 3, kind: output, shape index: {}]  }
   0x1   :  { %s972_s14 = smov 0  }
   0x2 LB: > { %s25_s15 = sadd.s32 1, %s931_s13  ;;  %p777_p0 = scmp.ge.s32.totalorder %s935_s14, 1  ;;  %s935_s14 = sphi %s972_s14, %s13_s14   ;;  %s931_s13 = sphi %s970_s13, %s1088_s13   ;;  %s927_s12 = sphi %s968_s12, %s1087_s12  }
   0x3   : > { %p27_p1 = scmp.ge.s32.totalorder %s25_s15, 2  ;;  %p151_p2 = scmp.lt.s32.totalorder %s935_s14, 3 }
   0x5   : > { %s1090_s15 = smov (%p27_p1, %s25_s15), 0  ;;  %p152_p3 = pnand %p777_p0, %p151_p2 }
   0x6   : > { %p177_p4 = scmp.lt.s32.totalorder (!%p152_p3), %s927_s12, 1  ;;  %v937_v0 = vmov (!%p152_p3), 0.0   ;;  %vm938_vm0 = vmmov (!%p152_p3), 0   ;;  %vm214_vm1 = vcmask (!%p152_p3), 1043456   ;;  %vm210_vm2 = vcmask (!%p152_p3), 64512   ;;  %s939_s22 = smov (!%p152_p3), 126  }
   0x7   : > { %155 = sbr.rel (%p152_p3) target bundleno = 396 (0x18c), region = 32  ;;  %821 = vmatprep.subr.bf16.mxu0 (!%p152_p3), %v937_v0  ;;  %827 = vmatprep.subr.bf16.mxu1 (!%p152_p3), %v937_v0  ;;  %v196_v4 = vld [vmem:[%s1083_s0] sm:$0xf] (!%p152_p3)  ;;  %s940_s23 = smov (!%p152_p3), 127   ;;  %v947_v6 = vmov (!%p152_p3), 0   ;;  %vm310_vm3 = vcmask (!%p152_p3), 1031168  }
   0x8   : > { %823 = vmatprep.mubr.msk.bf16.mxu0 (!%p152_p3), %vm938_vm0, %v937_v0  ;;  %829 = vmatprep.mubr.msk.bf16.mxu1 (!%p152_p3), %vm938_vm0, %v937_v0  ;;  %s941_s24 = smov (!%p152_p3), 118   ;;  %s942_s25 = smov (!%p152_p3), 117   ;;  %v689_v7 = vld [vmem:[%s1084_s1] sm:$0xff] (!%p152_p3)  ;;  %vm208_vm4 = vcmask (!%p152_p3), 1039360   ;;  %vm365_vm5 = vcmask (!%p152_p3), 965632   ;;  %vm420_vm6 = vcmask (!%p152_p3), 957440  }
   0x9   : > { %s943_s26 = smov (!%p152_p3), 116   ;;  %s944_s27 = smov (!%p152_p3), 108   ;;  %910 = vset.pattern.permute.xlu0 (!%p152_p3), %v947_v6  ;;  %v781_v15 = vld [vmem:[%s1083_s0 + $0x4] sm:$0xf] (!%p152_p3)  ;;  %v788_v21 = vld [vmem:[%s1083_s0 + $0xc] sm:$0xf] (!%p152_p3) }
   0xa   : > { %s945_s28 = smov (!%p152_p3), 107   ;;  %s946_s29 = smov (!%p152_p3), 106   ;;  %vm475_vm7 = vcmask (!%p152_p3), 949248   ;;  %v786_v25 = vld [vmem:[%s1083_s0 + $0x8] sm:$0xf] (!%p152_p3)  ;;  %vm530_vm8 = vcmask (!%p152_p3), 883712  }
   0xb   : > { %v792_v31 = vld [vmem:[%s1083_s0 + $0x14] sm:$0xf] (!%p152_p3)  ;;  %vm585_vm9 = vcmask (!%p152_p3), 875520   ;;  %v790_v35 = vld [vmem:[%s1083_s0 + $0x10] sm:$0xf] (!%p152_p3)  ;;  %vm640_vm10 = vcmask (!%p152_p3), 867328  }
   0xc   : > { %v796_v41 = vld [vmem:[%s1083_s0 + $0x1c] sm:$0xf] (!%p152_p3)  ;;  %v794_v45 = vld [vmem:[%s1083_s0 + $0x18] sm:$0xf] (!%p152_p3)  ;;  %v798_v47 = vld [vmem:[%s1083_s0 + $0x20] sm:$0xf] (!%p152_p3) }
   0xe   : > { %s1092_s12 = smov (!%p177_p4, %s927_s12), 1 }
   0xf   : > { %s802_s16 = sshll.u32 %s1092_s12, 3 }
  0x10   : > { %s181_s19 = scalar_lea.vmem %s1085_s2, %s802_s16 }
  0x11   : > { %v195_v1 = vld [vmem:[%s181_s19] sm:$0xff] }
  0x12   : > { %v782_v2 = vcombine.low %v195_v1, %v195_v1  ;;  %v262_v3 = vsel %vm214_vm1, %v195_v1, 0  ;;  %v783_v5 = vcombine.high %v195_v1, %v195_v1 }
  0x13   : > { %828 = vmatpush3.bf16.msra.mxu1 %v262_v3 }
  0x14   : > { %306 = vrot.lane.b32.xlu1 %v782_v2, %s939_s22  ;;  %204 = vrot.lane.b32.xlu0 %v782_v2, %s940_s23 }
  0x15   : > { %839 = vmatprep.subr.bf16.mxu1 %v937_v0 }
  0x16   : > { %830 = vmatmul.mubr.msk.bf16.vlgmr.msra.gmra.mrb[0].mxu1 %vm210_vm2, %v196_v4 }
  0x17   : > { %841 = vmatprep.mubr.msk.bf16.mxu1 %vm938_vm0, %v937_v0 }
  0x18   : > { %308 = vrot.lane.b32.xlu1 %v783_v5, %s939_s22  ;;  %206 = vrot.lane.b32.xlu0 %v783_v5, %s940_s23 }
  0x1c   : > { %363 = vrot.lane.b32.xlu1 %v783_v5, %s941_s24  ;;  %361 = vrot.lane.b32.xlu0 %v782_v2, %s941_s24 }
  0x20   : > { %418 = vrot.lane.b32.xlu1 %v783_v5, %s942_s25  ;;  %416 = vrot.lane.b32.xlu0 %v782_v2, %s942_s25 }
  0x24   : > { %473 = vrot.lane.b32.xlu1 %v783_v5, %s943_s26  ;;  %471 = vrot.lane.b32.xlu0 %v782_v2, %s943_s26 }
  0x28   : > { %528 = vrot.lane.b32.xlu1 %v783_v5, %s944_s27  ;;  %526 = vrot.lane.b32.xlu0 %v782_v2, %s944_s27 }
  0x2c   : > { %583 = vrot.lane.b32.xlu1 %v783_v5, %s945_s28  ;;  %581 = vrot.lane.b32.xlu0 %v782_v2, %s945_s28  ;;  %s188_s28 = scalar_lea.vmem %s1086_s3, %s802_s16 }
  0x30   : > { %638 = vrot.lane.b32.xlu1 %v783_v5, %s946_s29  ;;  %636 = vrot.lane.b32.xlu0 %v782_v2, %s946_s29 }
  0x34   : > { %692 = vperm.xlu0 %910, %v689_v7  }
  0x86   : > { %v307_v8 = vpop.permute.xlu1 %306  ;;  %v205_v9 = vpop.permute.xlu0 %204 }
  0x8a   : > { %v309_v10 = vpop.permute.xlu1 %308  ;;  %v207_v11 = vpop.permute.xlu0 %206 }
  0x8b   : > { %v311_v12 = vsel %vm310_vm3, %v307_v8, %v309_v10  ;;  %v209_v13 = vsel %vm208_vm4, %v205_v9, %v207_v11 }
  0x8c   : > { %v216_v14 = vsel %vm214_vm1, %v209_v13, 0  ;;  %v316_v16 = vsel %vm214_vm1, %v311_v12, 0 }
  0x8d   : > { %822 = vmatpush3.bf16.msra.mxu0 %v216_v14 }
  0x8e   : > { %833 = vmatprep.subr.bf16.mxu0 %v937_v0  ;;  %v364_v17 = vpop.permute.xlu1 %363  ;;  %v362_v18 = vpop.permute.xlu0 %361 }
  0x8f   : > { %v366_v19 = vsel %vm365_vm5, %v362_v18, %v364_v17 }
  0x90   : > { %824 = vmatmul.mubr.msk.bf16.vlgmr.msra.gmra.mrb[0].mxu0 %vm210_vm2, %v781_v15  ;;  %v371_v20 = vsel %vm214_vm1, %v366_v19, 0 }
  0x91   : > { %834 = vmatpush3.bf16.msra.mxu0 %v316_v16  ;;  %840 = vmatpush3.bf16.msra.mxu1 %v371_v20 }
  0x92   : > { %v419_v22 = vpop.permute.xlu1 %418  ;;  %v417_v23 = vpop.permute.xlu0 %416  ;;  %835 = vmatprep.mubr.msk.bf16.mxu0 %vm938_vm0, %v937_v0  ;;  %845 = vmatprep.subr.bf16.mxu0 %v937_v0 }
  0x93   : > { %v421_v24 = vsel %vm420_vm6, %v417_v23, %v419_v22  ;;  %851 = vmatprep.subr.bf16.mxu1 %v937_v0 }
  0x94   : > { %842 = vmatmul.mubr.msk.bf16.vlgmr.msra.gmra.mrb[4].mxu1 %vm210_vm2, %v788_v21  ;;  %v426_v26 = vsel %vm214_vm1, %v421_v24, 0 }
  0x95   : > { %853 = vmatprep.mubr.msk.bf16.mxu1 %vm938_vm0, %v937_v0 }
  0x96   : > { %v474_v27 = vpop.permute.xlu1 %473  ;;  %v472_v28 = vpop.permute.xlu0 %471 }
  0x97   : > { %v476_v29 = vsel %vm475_vm7, %v472_v28, %v474_v27 }
  0x98   : > { %836 = vmatmul.mubr.msk.bf16.vlgmr.msra.gmra.mrb[4].mxu0 %vm210_vm2, %v786_v25  ;;  %v481_v30 = vsel %vm214_vm1, %v476_v29, 0 }
  0x99   : > { %846 = vmatpush3.bf16.msra.mxu0 %v426_v26  ;;  %852 = vmatpush3.bf16.msra.mxu1 %v481_v30 }
  0x9a   : > { %v529_v32 = vpop.permute.xlu1 %528  ;;  %v527_v33 = vpop.permute.xlu0 %526  ;;  %847 = vmatprep.mubr.msk.bf16.mxu0 %vm938_vm0, %v937_v0  ;;  %857 = vmatprep.subr.bf16.mxu0 %v937_v0 }
  0x9b   : > { %v531_v34 = vsel %vm530_vm8, %v527_v33, %v529_v32  ;;  %863 = vmatprep.subr.bf16.mxu1 %v937_v0 }
  0x9c   : > { %854 = vmatmul.mubr.msk.bf16.vlgmr.msra.gmra.mrb[8].mxu1 %vm210_vm2, %v792_v31  ;;  %v536_v36 = vsel %vm214_vm1, %v531_v34, 0 }
  0x9d   : > { %865 = vmatprep.mubr.msk.bf16.mxu1 %vm938_vm0, %v937_v0 }
  0x9e   : > { %v584_v37 = vpop.permute.xlu1 %583  ;;  %v582_v38 = vpop.permute.xlu0 %581 }
  0x9f   : > { %v586_v39 = vsel %vm585_vm9, %v582_v38, %v584_v37 }
  0xa0   : > { %848 = vmatmul.mubr.msk.bf16.vlgmr.msra.gmra.mrb[8].mxu0 %vm210_vm2, %v790_v35  ;;  %v591_v40 = vsel %vm214_vm1, %v586_v39, 0 }
  0xa1   : > { %858 = vmatpush3.bf16.msra.mxu0 %v536_v36  ;;  %864 = vmatpush3.bf16.msra.mxu1 %v591_v40 }
  0xa2   : > { %v639_v42 = vpop.permute.xlu1 %638  ;;  %v637_v43 = vpop.permute.xlu0 %636  ;;  %859 = vmatprep.mubr.msk.bf16.mxu0 %vm938_vm0, %v937_v0  ;;  %869 = vmatprep.subr.bf16.mxu0 %v937_v0 }
  0xa3   : > { %v641_v44 = vsel %vm640_vm10, %v637_v43, %v639_v42 }
  0xa4   : > { %866 = vmatmul.mubr.msk.bf16.vlgmr.msra.gmra.mrb[12].mxu1 %vm210_vm2, %v796_v41  ;;  %v646_v46 = vsel %vm214_vm1, %v641_v44, 0 }
  0xa8   : > { %860 = vmatmul.mubr.msk.bf16.vlgmr.msra.gmra.mrb[12].mxu0 %vm210_vm2, %v794_v45 }
  0xa9   : > { %870 = vmatpush3.bf16.msra.mxu0 %v646_v46  ;;  %871 = vmatprep.mubr.msk.bf16.mxu0 %vm938_vm0, %v937_v0 }
  0xb0   : > { %872 = vmatmul.mubr.msk.bf16.vlgmr.msra.gmra.mrb[16].mxu0 %vm210_vm2, %v798_v47 }
  0xb3   : > { %v693_v24 = vpop.permute.xlu0 %692 }
  0xe9   : > { %v298_v48 = vpop.f32.mrb[0].mxu1 }
  0xea   : > { %v831_v49 = vpop.f32.mrb[1].mxu1 }
  0xeb   : > { %v301_v50 = vpop.f32.mrb[2].mxu1 }
  0xec   : > { %v832_v51 = vpop.f32.mrb[3].mxu1 }
 0x163   : > { %v252_v52 = vpop.f32.mrb[0].mxu0 }
 0x164   : > { %v825_v53 = vpop.f32.mrb[1].mxu0  ;;  %v299_v54 = vadd.f32 %v298_v48, %v252_v52 }
 0x165   : > { %v255_v55 = vpop.f32.mrb[2].mxu0 }
 0x166   : > { %v826_v56 = vpop.f32.mrb[3].mxu0 }
 0x167   : > { %v407_v57 = vpop.f32.mrb[4].mxu1 }
 0x168   : > { %v843_v58 = vpop.f32.mrb[5].mxu1 }
 0x169   : > { %v410_v59 = vpop.f32.mrb[6].mxu1 }
 0x16a   : > { %v844_v60 = vpop.f32.mrb[7].mxu1 }
 0x16b   : > { %v352_v61 = vpop.f32.mrb[4].mxu0 }
 0x16c   : > { %v358_v62 = vadd.f32 %v352_v61, %v299_v54  ;;  %v837_v63 = vpop.f32.mrb[5].mxu0 }
 0x16d   : > { %v355_v0 = vpop.f32.mrb[6].mxu0 }
 0x16e   : > { %v413_v1 = vadd.f32 %v407_v57, %v358_v62  ;;  %v838_v2 = vpop.f32.mrb[7].mxu0 }
 0x16f   : > { %v517_v3 = vpop.f32.mrb[8].mxu1 }
 0x170   : > { %v855_v4 = vpop.f32.mrb[9].mxu1 }
 0x171   : > { %v520_v5 = vpop.f32.mrb[10].mxu1 }
 0x172   : > { %v856_v6 = vpop.f32.mrb[11].mxu1 }
 0x173   : > { %v462_v7 = vpop.f32.mrb[8].mxu0 }
 0x174   : > { %v468_v8 = vadd.f32 %v462_v7, %v413_v1  ;;  %v849_v9 = vpop.f32.mrb[9].mxu0 }
 0x175   : > { %v465_v10 = vpop.f32.mrb[10].mxu0 }
 0x176   : > { %v523_v11 = vadd.f32 %v517_v3, %v468_v8  ;;  %v850_v12 = vpop.f32.mrb[11].mxu0 }
 0x177   : > { %v627_v13 = vpop.f32.mrb[12].mxu1 }
 0x178   : > { %v867_v14 = vpop.f32.mrb[13].mxu1 }
 0x179   : > { %v630_v15 = vpop.f32.mrb[14].mxu1 }
 0x17a   : > { %v868_v16 = vpop.f32.mrb[15].mxu1 }
 0x17b   : > { %v572_v17 = vpop.f32.mrb[12].mxu0 }
 0x17c   : > { %v578_v18 = vadd.f32 %v572_v17, %v523_v11  ;;  %v861_v19 = vpop.f32.mrb[13].mxu0 }
 0x17d   : > { %v575_v20 = vpop.f32.mrb[14].mxu0 }
 0x17e   : > { %v633_v21 = vadd.f32 %v627_v13, %v578_v18  ;;  %v862_v22 = vpop.f32.mrb[15].mxu0 }
 0x183   : > { %v682_v23 = vpop.f32.mrb[16].mxu0 }
 0x184   : > { %v688_v25 = vadd.f32 %v682_v23, %v633_v21  ;;  %v873_v26 = vpop.f32.mrb[17].mxu0 }
 0x185   : > { %v685_v27 = vpop.f32.mrb[18].mxu0 }
 0x186   : > { %v695_v28 = vadd.f32 %v693_v24, %v688_v25  ;;  %v874_v29 = vpop.f32.mrb[19].mxu0 }
 0x188   : > { %vm696_vm11 = vcmp.ge.f32.partialorder %v695_v28, 0.0  ;;  %v697_v30 = vmul.f32 0.2, %v695_v28 }
 0x18a   : > { %v698_v31 = vsel %vm696_vm11, %v695_v28, %v697_v30 }
 0x18b   : > { %699 = vst [vmem:[%s188_s28] sm:$0xff] %v698_v31 }
 0x18c PF: > { %s13_s14 = sadd.s32 1, %s935_s14   ;;  %s1087_s12 = smov %s931_s13 }
 0x18d   : > { %p10_p5 = scmp.ge.s32.totalorder %s13_s14, 4   ;;  %s1088_s13 = smov %s1090_s15 }
 0x18f   :  { %12 = sbr.rel (!%p10_p5) target bundleno = 2 (0x2), region = 71 }

// kernel: unet_forward.14
= control target key start
LH: loop header
LB: loop body
LE: loop exit
PB: predicated region body
PF: predicated region fallthrough
CT: control target
= control target key end

     0   :  { %s1361_s12 = smov 0   ;;  %s1363_s13 = smov 0   ;;  %s1500_s0 = inlined_call_operand.vmem [shape: bf16[9,32,8], index: 0, kind: input, shape index: {}]   ;;  %s1501_s1 = inlined_call_operand.vmem [shape: f32[32,1], index: 1, kind: input, shape index: {}]   ;;  %s1502_s2 = inlined_call_operand.vmem [shape: bf16[2,8,256], index: 2, kind: input, shape index: {}]   ;;  %s1503_s3 = inlined_call_operand.vmem [shape: f32[2,32,128], index: 3, kind: output, shape index: {}]  }
   0x1   :  { %s1365_s14 = smov 0  }
   0x2 LB: > { %s25_s15 = sadd.s32 1, %s1326_s13  ;;  %p1052_p0 = scmp.ge.s32.totalorder %s1330_s14, 1  ;;  %s1330_s14 = sphi %s1365_s14, %s13_s14   ;;  %s1326_s13 = sphi %s1363_s13, %s1505_s13   ;;  %s1322_s12 = sphi %s1361_s12, %s1504_s12  }
   0x3   : > { %p27_p1 = scmp.ge.s32.totalorder %s25_s15, 2  ;;  %p151_p2 = scmp.lt.s32.totalorder %s1330_s14, 3 }
   0x5   : > { %s1507_s15 = smov (%p27_p1, %s25_s15), 0  ;;  %p152_p3 = pnand %p1052_p0, %p151_p2 }
   0x6   : > { %p178_p4 = scmp.lt.s32.totalorder (!%p152_p3), %s1322_s12, 1  ;;  %v1290_v0 = vld [vmem:[%s1500_s0 + $0x10] sm:$0xff] (!%p152_p3)   ;;  %vm228_vm0 = vcmask (!%p152_p3), 64512   ;;  %v1291_v1 = vld [vmem:[%s1500_s0 + $0x40] sm:$0xff] (!%p152_p3)   ;;  %s1332_s24 = smov (!%p152_p3), 127   ;;  %v938_v5 = vld [vmem:[%s1501_s1 + $0x8] sm:$0xff] (!%p152_p3) }
   0x7   : > { %155 = sbr.rel (%p152_p3) target bundleno = 412 (0x19c), region = 32  ;;  %1160 = vmatprep.mubr.msk.bf16.mxu1 (!%p152_p3), %vm228_vm0, %v1290_v0  ;;  %1184 = vmatprep.mubr.msk.bf16.mxu0 (!%p152_p3), %vm228_vm0, %v1291_v1  ;;  %s1333_s25 = smov (!%p152_p3), 117   ;;  %v937_v6 = vld [vmem:[%s1501_s1] sm:$0xff] (!%p152_p3)  ;;  %v1340_v7 = vmov (!%p152_p3), 0   ;;  %v939_v8 = vld [vmem:[%s1501_s1 + $0x10] sm:$0xff] (!%p152_p3)  ;;  %v940_v9 = vld [vmem:[%s1501_s1 + $0x18] sm:$0xff] (!%p152_p3) }
   0x8   : > { %s1334_s26 = smov (!%p152_p3), 116   ;;  %s1335_s27 = smov (!%p152_p3), 108   ;;  %1287 = vset.pattern.permute.xlu1 (!%p152_p3), %v1340_v7  ;;  %1286 = vset.pattern.permute.xlu0 (!%p152_p3), %v1340_v7  ;;  %vm226_vm1 = vcmask (!%p152_p3), 1039360   ;;  %vm541_vm2 = vcmask (!%p152_p3), 957440   ;;  %vm235_vm3 = vcmask (!%p152_p3), 1043456   ;;  %vm624_vm4 = vcmask (!%p152_p3), 949248  }
   0x9   : > { %s1336_s28 = smov (!%p152_p3), 126   ;;  %s1337_s29 = smov (!%p152_p3), 107   ;;  %v1292_v18 = vld [vmem:[%s1500_s0 + $0x18] sm:$0xff] (!%p152_p3)   ;;  %v1293_v19 = vld [vmem:[%s1500_s0 + $0x48] sm:$0xff] (!%p152_p3)   ;;  %v1294_v23 = vld [vmem:[%s1500_s0] sm:$0xff] (!%p152_p3)   ;;  %vm707_vm5 = vcmask (!%p152_p3), 883712  }
   0xa   : > { %s1338_s30 = smov (!%p152_p3), 118   ;;  %s1339_s4 = smov (!%p152_p3), 106   ;;  %v1295_v25 = vld [vmem:[%s1500_s0 + $0x50] sm:$0xff] (!%p152_p3)   ;;  %vm375_vm6 = vcmask (!%p152_p3), 1031168   ;;  %v1296_v33 = vld [vmem:[%s1500_s0 + $0x8] sm:$0xff] (!%p152_p3)   ;;  %v1297_v34 = vld [vmem:[%s1500_s0 + $0x58] sm:$0xff] (!%p152_p3)  }
   0xb   : > { %vm790_vm7 = vcmask (!%p152_p3), 875520   ;;  %v1298_v39 = vld [vmem:[%s1500_s0 + $0x20] sm:$0xff] (!%p152_p3)   ;;  %vm458_vm8 = vcmask (!%p152_p3), 965632   ;;  %v1300_v45 = vld [vmem:[%s1500_s0 + $0x28] sm:$0xff] (!%p152_p3)   ;;  %vm873_vm9 = vcmask (!%p152_p3), 867328   ;;  %v1302_v51 = vld [vmem:[%s1500_s0 + $0x30] sm:$0xff] (!%p152_p3)  }
   0xc   : > { %v1299_v40 = vld [vmem:[%s1500_s0 + $0x60] sm:$0xff] (!%p152_p3)   ;;  %v1301_v46 = vld [vmem:[%s1500_s0 + $0x68] sm:$0xff] (!%p152_p3)   ;;  %v1303_v52 = vld [vmem:[%s1500_s0 + $0x70] sm:$0xff] (!%p152_p3)  }
   0xd   : > { %v1304_v54 = vld [vmem:[%s1500_s0 + $0x38] sm:$0xff] (!%p152_p3)   ;;  %v1306_v56 = vld [vmem:[%s1500_s0 + $0x80] sm:$0xff] (!%p152_p3)   ;;  %v1307_v58 = vld [vmem:[%s1500_s0 + $0x88] sm:$0xff] (!%p152_p3)  }
   0xe   : > { %s1509_s12 = smov (!%p178_p4, %s1322_s12), 1  ;;  %v1305_v55 = vld [vmem:[%s1500_s0 + $0x78] sm:$0xff]  }
   0xf   : > { %s1129_s20 = sshll.u32 %s1509_s12, 3 }
  0x10   : > { %s182_s23 = scalar_lea.vmem %s1502_s2, %s1129_s20 }
  0x11   : > { %v197_v2 = vld [vmem:[%s182_s23] sm:$0xff] }
  0x12   : > { %v1063_v3 = vcombine.low %v197_v2, %v197_v2  ;;  %v1064_v4 = vcombine.high %v197_v2, %v197_v2  ;;  %v305_v22 = vsel %vm235_vm3, %v197_v2, 0 }
  0x14   : > { %222 = vrot.lane.b32.xlu1 %v1063_v3, %s1332_s24  ;;  %537 = vrot.lane.b32.xlu0 %v1063_v3, %s1333_s25 }
  0x18   : > { %224 = vrot.lane.b32.xlu1 %v1064_v4, %s1332_s24  ;;  %539 = vrot.lane.b32.xlu0 %v1064_v4, %s1333_s25 }
  0x1c   : > { %622 = vrot.lane.b32.xlu1 %v1064_v4, %s1334_s26  ;;  %620 = vrot.lane.b32.xlu0 %v1063_v3, %s1334_s26  ;;  %s1130_s26 = sshll.u32 %s1509_s12, 5 }
  0x20   : > { %705 = vrot.lane.b32.xlu1 %v1064_v4, %s1335_s27  ;;  %703 = vrot.lane.b32.xlu0 %v1063_v3, %s1335_s27 }
  0x24   : > { %373 = vrot.lane.b32.xlu1 %v1064_v4, %s1336_s28  ;;  %371 = vrot.lane.b32.xlu0 %v1063_v3, %s1336_s28 }
  0x28   : > { %788 = vrot.lane.b32.xlu1 %v1064_v4, %s1337_s29  ;;  %786 = vrot.lane.b32.xlu0 %v1063_v3, %s1337_s29  ;;  %s190_s29 = scalar_lea.vmem %s1503_s3, %s1130_s26 }
  0x2c   : > { %456 = vrot.lane.b32.xlu1 %v1064_v4, %s1338_s30  ;;  %454 = vrot.lane.b32.xlu0 %v1063_v3, %s1338_s30 }
  0x30   : > { %871 = vrot.lane.b32.xlu1 %v1064_v4, %s1339_s4  ;;  %869 = vrot.lane.b32.xlu0 %v1063_v3, %s1339_s4 }
  0x34   : > { %948 = vperm.xlu1 %1287, %v938_v5   ;;  %943 = vperm.xlu0 %1286, %v937_v6  }
  0x38   : > { %953 = vperm.xlu1 %1287, %v939_v8   ;;  %958 = vperm.xlu0 %1286, %v940_v9  }
  0x86   : > { %v223_v10 = vpop.permute.xlu1 %222  ;;  %v538_v11 = vpop.permute.xlu0 %537 }
  0x8a   : > { %v225_v12 = vpop.permute.xlu1 %224  ;;  %v540_v13 = vpop.permute.xlu0 %539 }
  0x8b   : > { %v227_v14 = vsel %vm226_vm1, %v223_v10, %v225_v12  ;;  %v542_v15 = vsel %vm541_vm2, %v538_v11, %v540_v13 }
  0x8c   : > { %1244 = vmatprep.subr.msk.bf16.mxu1 %vm235_vm3, %v227_v14  ;;  %1248 = vmatprep.subr.msk.bf16.mxu0 %vm235_vm3, %v542_v15  ;;  %v237_v16 = vsel %vm235_vm3, %v227_v14, 0  ;;  %v550_v17 = vsel %vm235_vm3, %v542_v15, 0 }
  0x8d   : > { %1159 = vmatpush3.bf16.msra.mxu1 %v237_v16  ;;  %1183 = vmatpush3.bf16.msra.mxu0 %v550_v17 }
  0x8e   : > { %v623_v20 = vpop.permute.xlu1 %622  ;;  %v621_v21 = vpop.permute.xlu0 %620  ;;  %1245 = vmatprep.subr.msk.bf16.mxu1 %vm235_vm3, %v197_v2 }
  0x8f   : > { %v625_v24 = vsel %vm624_vm4, %v621_v21, %v623_v20 }
  0x90   : > { %v633_v26 = vsel %vm235_vm3, %v625_v24, 0  ;;  %1161 = vmatmul.mubr.msk.bf16.vlgmr.msra.gmra.mrb[0].mxu1 %vm228_vm0, %v1292_v18  ;;  %1185 = vmatmul.mubr.msk.bf16.vlgmr.msra.gmra.mrb[0].mxu0 %vm228_vm0, %v1293_v19 }
  0x91   : > { %1249 = vmatprep.subr.msk.bf16.mxu0 %vm235_vm3, %v625_v24  ;;  %1165 = vmatpush3.bf16.msra.mxu1 %v305_v22 }
  0x92   : > { %1189 = vmatpush3.bf16.msra.mxu0 %v633_v26  ;;  %v706_v27 = vpop.permute.xlu1 %705  ;;  %v704_v28 = vpop.permute.xlu0 %703  ;;  %1166 = vmatprep.mubr.msk.bf16.mxu1 %vm228_vm0, %v1294_v23 }
  0x93   : > { %v708_v29 = vsel %vm707_vm5, %v704_v28, %v706_v27  ;;  %1190 = vmatprep.mubr.msk.bf16.mxu0 %vm228_vm0, %v1295_v25 }
  0x94   : > { %1250 = vmatprep.subr.msk.bf16.mxu0 %vm235_vm3, %v708_v29  ;;  %v716_v35 = vsel %vm235_vm3, %v708_v29, 0 }
  0x96   : > { %v374_v30 = vpop.permute.xlu1 %373  ;;  %v372_v31 = vpop.permute.xlu0 %371 }
  0x97   : > { %v376_v32 = vsel %vm375_vm6, %v372_v31, %v374_v30 }
  0x98   : > { %1246 = vmatprep.subr.msk.bf16.mxu1 %vm235_vm3, %v376_v32  ;;  %v384_v36 = vsel %vm235_vm3, %v376_v32, 0 }
  0x9a   : > { %v789_v37 = vpop.permute.xlu1 %788  ;;  %v787_v38 = vpop.permute.xlu0 %786 }
  0x9b   : > { %v791_v41 = vsel %vm790_vm7, %v787_v38, %v789_v37 }
  0x9c   : > { %1167 = vmatmul.mubr.msk.bf16.vlgmr.msra.gmra.mrb[0].mxu1 %vm228_vm0, %v1296_v33  ;;  %1191 = vmatmul.mubr.msk.bf16.vlgmr.msra.gmra.mrb[0].mxu0 %vm228_vm0, %v1297_v34  ;;  %v799_v49 = vsel %vm235_vm3, %v791_v41, 0 }
  0x9d   : > { %1195 = vmatpush3.bf16.msra.mxu0 %v716_v35  ;;  %1171 = vmatpush3.bf16.msra.mxu1 %v384_v36 }
  0x9e   : > { %1172 = vmatprep.mubr.msk.bf16.mxu1 %vm228_vm0, %v1298_v39  ;;  %1196 = vmatprep.mubr.msk.bf16.mxu0 %vm228_vm0, %v1299_v40  ;;  %v457_v42 = vpop.permute.xlu1 %456  ;;  %v455_v43 = vpop.permute.xlu0 %454 }
  0x9f   : > { %1251 = vmatprep.subr.msk.bf16.mxu0 %vm235_vm3, %v791_v41  ;;  %v459_v44 = vsel %vm458_vm8, %v455_v43, %v457_v42 }
  0xa0   : > { %1247 = vmatprep.subr.msk.bf16.mxu1 %vm235_vm3, %v459_v44  ;;  %v467_v50 = vsel %vm235_vm3, %v459_v44, 0 }
  0xa2   : > { %v872_v47 = vpop.permute.xlu1 %871  ;;  %v870_v48 = vpop.permute.xlu0 %869 }
  0xa3   : > { %v874_v53 = vsel %vm873_vm9, %v870_v48, %v872_v47 }
  0xa4   : > { %v882_v57 = vsel %vm235_vm3, %v874_v53, 0 }
  0xa8   : > { %1173 = vmatmul.mubr.msk.bf16.vlgmr.msra.gmra.mrb[0].mxu1 %vm228_vm0, %v1300_v45  ;;  %1197 = vmatmul.mubr.msk.bf16.vlgmr.msra.gmra.mrb[0].mxu0 %vm228_vm0, %v1301_v46 }
  0xa9   : > { %1201 = vmatpush3.bf16.msra.mxu0 %v799_v49  ;;  %1177 = vmatpush3.bf16.msra.mxu1 %v467_v50 }
  0xaa   : > { %1178 = vmatprep.mubr.msk.bf16.mxu1 %vm228_vm0, %v1302_v51  ;;  %1202 = vmatprep.mubr.msk.bf16.mxu0 %vm228_vm0, %v1303_v52 }
  0xab   : > { %1252 = vmatprep.subr.msk.bf16.mxu0 %vm235_vm3, %v874_v53 }
  0xb3   : > { %v949_v63 = vpop.permute.xlu1 %948  ;;  %v944_v0 = vpop.permute.xlu0 %943 }
  0xb4   : > { %1179 = vmatmul.mubr.msk.bf16.vlgmr.msra.gmra.mrb[0].mxu1 %vm228_vm0, %v1304_v54  ;;  %1203 = vmatmul.mubr.msk.bf16.vlgmr.msra.gmra.mrb[0].mxu0 %vm228_vm0, %v1305_v55 }
  0xb5   : > { %1207 = vmatpush3.bf16.msra.mxu0 %v882_v57  ;;  %1208 = vmatprep.mubr.msk.bf16.mxu0 %vm228_vm0, %v1306_v56 }
  0xb7   : > { %v954_v2 = vpop.permute.xlu1 %953  ;;  %v959_v11 = vpop.permute.xlu0 %958 }
  0xc0   : > { %1209 = vmatmul.mubr.msk.bf16.vlgmr.msra.gmra.mrb[0].mxu0 %vm228_vm0, %v1307_v58 }
 0x187   : > { %v1180_v59 = vpop.f32.mrb[0].mxu1 }
 0x188   : > { %v503_v60 = vpop.f32.mrb[1].mxu1 }
 0x189   : > { %v1181_v61 = vpop.f32.mrb[2].mxu1 }
 0x18a   : > { %v506_v62 = vpop.f32.mrb[3].mxu1 }
 0x193   : > { %v1210_v1 = vpop.f32.mrb[0].mxu0 }
 0x194   : > { %v1212_v3 = vadd.f32 %v1210_v1, %v1180_v59  ;;  %v918_v4 = vpop.f32.mrb[1].mxu0 }
 0x195   : > { %v1213_v5 = vadd.f32 %v918_v4, %v503_v60  ;;  %v1211_v6 = vpop.f32.mrb[2].mxu0 }
 0x196   : > { %v963_v7 = vadd.f32 %v1212_v3, %v954_v2  ;;  %v1214_v8 = vadd.f32 %v1211_v6, %v1181_v61  ;;  %v921_v9 = vpop.f32.mrb[3].mxu0 }
 0x197   : > { %v961_v10 = vadd.f32 %v1213_v5, %v944_v0  ;;  %v1215_v12 = vadd.f32 %v921_v9, %v506_v62 }
 0x198   : > { %967 = vst [vmem:[%s190_s29 + $0x10] sm:$0xff] %v963_v7  ;;  %v964_v13 = vadd.f32 %v1214_v8, %v959_v11 }
 0x199   : > { %965 = vst [vmem:[%s190_s29] sm:$0xff] %v961_v10  ;;  %v962_v14 = vadd.f32 %v1215_v12, %v949_v63 }
 0x19a   : > { %968 = vst [vmem:[%s190_s29 + $0x18] sm:$0xff] %v964_v13 }
 0x19b   : > { %966 = vst [vmem:[%s190_s29 + $0x8] sm:$0xff] %v962_v14 }
 0x19c PF: > { %s13_s14 = sadd.s32 1, %s1330_s14   ;;  %s1504_s12 = smov %s1326_s13 }
 0x19d   : > { %p10_p5 = scmp.ge.s32.totalorder %s13_s14, 4   ;;  %s1505_s13 = smov %s1507_s15 }
 0x19f   :  { %12 = sbr.rel (!%p10_p5) target bundleno = 2 (0x2), region = 71 }

// kernel: unet_forward.15
= control target key start
LH: loop header
LB: loop body
LE: loop exit
PB: predicated region body
PF: predicated region fallthrough
CT: control target
= control target key end

     0   :  { %s994_s12 = smov 0   ;;  %s996_s13 = smov 0   ;;  %s1102_s0 = inlined_call_operand.vmem [shape: bf16[9,8,16], index: 0, kind: input, shape index: {}]   ;;  %s1103_s1 = inlined_call_operand.vmem [shape: f32[8,1], index: 1, kind: input, shape index: {}]   ;;  %s1104_s2 = inlined_call_operand.vmem [shape: bf16[2,16,640], index: 2, kind: input, shape index: {}]   ;;  %s1105_s3 = inlined_call_operand.vmem [shape: f32[2,8,512], index: 3, kind: output, shape index: {}]  }
   0x1   :  { %s998_s14 = smov 0   ;;  %s1000_s15 = smov 0  }
   0x2   :  { %s1002_s16 = smov 0  }
   0x3 LB: > { %s22_s17 = sadd.s32 1, %s955_s14  ;;  %s25_s18 = sadd.s32 1, %s959_s15  ;;  %s963_s16 = sphi %s1002_s16, %s13_s16   ;;  %s959_s15 = sphi %s1000_s15, %s1109_s15   ;;  %s955_s14 = sphi %s998_s14, %s1108_s14   ;;  %s951_s13 = sphi %s996_s13, %s1107_s13   ;;  %s947_s12 = sphi %s994_s12, %s1106_s12  }
   0x4   : > { %p23_p0 = scmp.ge.s32.totalorder %s22_s17, 2  ;;  %p841_p1 = scmp.ge.s32.totalorder %s963_s16, 1 }
   0x5   : > { %p151_p2 = scmp.lt.s32.totalorder %s963_s16, 5 }
   0x6   : > { %s1111_s17 = smov (%p23_p0, %s22_s17), 0  ;;  %s1113_s18 = smov (!%p23_p0, %s25_s18), %s959_s15 }
   0x7   : > { %p152_p3 = pnand %p841_p1, %p151_p2  ;;  %p27_p4 = scmp.ge.s32.totalorder %s1113_s18, 2 }
   0x8   : > { %p179_p5 = scmp.lt.s32.totalorder (!%p152_p3), %s951_s13, 1  ;;  %s846_s19 = sshll.u32 (!%p152_p3), %s947_s12, 8  ;;  %v965_v0 = vmov (!%p152_p3), 0   ;;  %v204_v4 = vld [vmem:[%s1102_s0] sm:$0xf] (!%p152_p3)  ;;  %vm231_vm0 = vcmask (!%p152_p3), 130048  }
   0x9   : > { %s1115_s18 = smov (%p27_p4, %s1113_s18), 0  ;;  %155 = sbr.rel (%p152_p3) target bundleno = 407 (0x197), region = 32 }
   0xa   : > { %s196_s20 = sshra.s32 (!%p152_p3), %s846_s19, 7  ;;  %267 = vmatprep.mubr.bf16.mxu0 (!%p152_p3), %v965_v0  ;;  %313 = vmatprep.mubr.bf16.mxu1 (!%p152_p3), %v965_v0  ;;  %s966_s27 = smov (!%p152_p3), 127   ;;  %v735_v5 = vld [vmem:[%s1103_s1] sm:$0xff] (!%p152_p3)  ;;  %vm226_vm1 = vcmask (!%p152_p3), 1039360   ;;  %vm330_vm2 = vcmask (!%p152_p3), 1031168   ;;  %vm389_vm3 = vcmask (!%p152_p3), 900096  }
   0xb   : > { %s847_s22 = sshll.u32 (!%p152_p3), %s196_s20, 2  ;;  %920 = vset.pattern.permute.xlu0 (!%p152_p3), %v965_v0  ;;  %s967_s30 = smov (!%p152_p3), 126   ;;  %v848_v12 = vld [vmem:[%s1102_s0 + $0x4] sm:$0xf] (!%p152_p3)  ;;  %v854_v20 = vld [vmem:[%s1102_s0 + $0x8] sm:$0xf] (!%p152_p3) }
   0xc   : > { %s968_s4 = smov (!%p152_p3), 110   ;;  %s969_s5 = smov (!%p152_p3), 109   ;;  %vm448_vm4 = vcmask (!%p152_p3), 891904   ;;  %v856_v24 = vld [vmem:[%s1102_s0 + $0xc] sm:$0xf] (!%p152_p3)  ;;  %vm507_vm5 = vcmask (!%p152_p3), 883712  }
   0xd   : > { %s970_s6 = smov (!%p152_p3), 108   ;;  %s971_s7 = smov (!%p152_p3), 92   ;;  %v858_v29 = vld [vmem:[%s1102_s0 + $0x10] sm:$0xf] (!%p152_p3)  ;;  %vm566_vm6 = vcmask (!%p152_p3), 752640   ;;  %vm625_vm7 = vcmask (!%p152_p3), 744448  }
   0xe   : > { %s972_s8 = smov (!%p152_p3), 91   ;;  %s973_s9 = smov (!%p152_p3), 90   ;;  %v860_v36 = vld [vmem:[%s1102_s0 + $0x14] sm:$0xf] (!%p152_p3)  ;;  %v862_v41 = vld [vmem:[%s1102_s0 + $0x18] sm:$0xf] (!%p152_p3) }
   0xf   : > { %vm684_vm8 = vcmask (!%p152_p3), 736256   ;;  %v864_v48 = vld [vmem:[%s1102_s0 + $0x1c] sm:$0xf] (!%p152_p3)  ;;  %v866_v53 = vld [vmem:[%s1102_s0 + $0x20] sm:$0xf] (!%p152_p3) }
  0x10   : > { %s1117_s13 = smov (!%p179_p5, %s951_s13), 1 }
  0x11   : > { %s870_s21 = smul.u32 40, %s1117_s13 }
  0x13   : > { %s183_s25 = scalar_lea.vmem %s1104_s2, %s870_s21 }
  0x14   : > { %s199_s26 = scalar_lea.vmem %s183_s25, %s847_s22 }
  0x15   : > { %v921_v1 = vld [vmem:[%s199_s26 + $0x4] ss:$20 sps:$4 sm:$0xff]   ;;  %v923_v2 = vld [vmem:[%s199_s26] ss:$20 sps:$4 sm:$0xff]   ;;  %v924_v3 = vld [vmem:[%s199_s26 + $0x8] ss:$20 sps:$4 sm:$0xff]  }
  0x16   : > { %222 = vrot.lane.b32.xlu0 %v921_v1, %s966_s27  ;;  %281 = vmatprep.subr.bf16.mxu1 %v921_v1 }
  0x17   : > { %220 = vrot.lane.b32.xlu1 %v923_v2, %s966_s27  ;;  %282 = vmatpush1.bf16.msra.mxu1 %v923_v2 }
  0x1a   : > { %224 = vrot.lane.b32.xlu0 %v924_v3, %s966_s27  ;;  %853 = vmatmul.mubr.msk.bf16.vlgmr.msra.gmra.mrb[0].mxu1 %vm231_vm0, %v204_v4 }
  0x1b   : > { %326 = vrot.lane.b32.xlu1 %v921_v1, %s967_s30  ;;  %429 = vmatprep.mubr.bf16.mxu1 %v965_v0 }
  0x1e   : > { %328 = vrot.lane.b32.xlu0 %v924_v3, %s967_s30 }
  0x1f   : > { %324 = vrot.lane.b32.xlu1 %v923_v2, %s967_s30 }
  0x22   : > { %385 = vrot.lane.b32.xlu0 %v921_v1, %s968_s4 }
  0x23   : > { %387 = vrot.lane.b32.xlu1 %v924_v3, %s968_s4 }
  0x26   : > { %383 = vrot.lane.b32.xlu0 %v923_v2, %s968_s4 }
  0x27   : > { %444 = vrot.lane.b32.xlu1 %v921_v1, %s969_s5 }
  0x2a   : > { %446 = vrot.lane.b32.xlu0 %v924_v3, %s969_s5 }
  0x2b   : > { %442 = vrot.lane.b32.xlu1 %v923_v2, %s969_s5 }
  0x2e   : > { %503 = vrot.lane.b32.xlu0 %v921_v1, %s970_s6 }
  0x2f   : > { %505 = vrot.lane.b32.xlu1 %v924_v3, %s970_s6 }
  0x32   : > { %501 = vrot.lane.b32.xlu0 %v923_v2, %s970_s6 }
  0x33   : > { %562 = vrot.lane.b32.xlu1 %v921_v1, %s971_s7 }
  0x36   : > { %564 = vrot.lane.b32.xlu0 %v924_v3, %s971_s7 }
  0x37   : > { %560 = vrot.lane.b32.xlu1 %v923_v2, %s971_s7 }
  0x3a   : > { %621 = vrot.lane.b32.xlu0 %v921_v1, %s972_s8 }
  0x3b   : > { %623 = vrot.lane.b32.xlu1 %v924_v3, %s972_s8 }
  0x3e   : > { %619 = vrot.lane.b32.xlu0 %v923_v2, %s972_s8  ;;  %s843_s8 = sshll.u32 %s947_s12, 1 }
  0x3f   : > { %680 = vrot.lane.b32.xlu1 %v921_v1, %s973_s9  ;;  %p187_p6 = scmp.lt.s32.totalorder %s843_s8, 3 }
  0x41   : > { %s1119_s8 = smov (!%p187_p6, %s843_s8), 3 }
  0x42   : > { %682 = vrot.lane.b32.xlu0 %v924_v3, %s973_s9 }
  0x43   : > { %678 = vrot.lane.b32.xlu1 %v923_v2, %s973_s9  ;;  %s844_s9 = sshll.u32 %s1117_s13, 2 }
  0x44   : > { %s190_s10 = sadd.s32 %s844_s9, %s1119_s8 }
  0x45   : > { %s845_s12 = sshll.u32 %s190_s10, 3 }
  0x46   : > { %738 = vperm.xlu0 %920, %v735_v5   ;;  %s192_s20 = scalar_lea.vmem %s1105_s3, %s845_s12 }
  0x88   : > { %v223_v6 = vpop.permute.xlu0 %222 }
  0x89   : > { %v221_v7 = vpop.permute.xlu1 %220 }
  0x8a   : > { %v227_v11 = vsel %vm226_vm1, %v221_v7, %v223_v6 }
  0x8c   : > { %v225_v8 = vpop.permute.xlu0 %224 }
  0x8d   : > { %v327_v9 = vpop.permute.xlu1 %326  ;;  %v228_v10 = vsel %vm226_vm1, %v223_v6, %v225_v8 }
  0x8e   : > { %235 = vmatprep.subr.bf16.mxu0 %v228_v10 }
  0x8f   : > { %236 = vmatpush1.bf16.msra.mxu0 %v227_v11 }
  0x90   : > { %v329_v13 = vpop.permute.xlu0 %328 }
  0x91   : > { %v325_v14 = vpop.permute.xlu1 %324  ;;  %v332_v15 = vsel %vm330_vm2, %v327_v9, %v329_v13 }
  0x92   : > { %v331_v16 = vsel %vm330_vm2, %v325_v14, %v327_v9  ;;  %338 = vmatprep.subr.bf16.mxu0 %v332_v15  ;;  %852 = vmatmul.mubr.msk.bf16.vlgmr.msra.gmra.mrb[0].mxu0 %vm231_vm0, %v848_v12 }
  0x93   : > { %339 = vmatpush1.bf16.msra.mxu0 %v331_v16  ;;  %370 = vmatprep.mubr.bf16.mxu0 %v965_v0 }
  0x94   : > { %v386_v17 = vpop.permute.xlu0 %385 }
  0x95   : > { %v388_v18 = vpop.permute.xlu1 %387 }
  0x96   : > { %v391_v19 = vsel %vm389_vm3, %v386_v17, %v388_v18 }
  0x97   : > { %397 = vmatprep.subr.bf16.mxu1 %v391_v19 }
  0x98   : > { %v384_v21 = vpop.permute.xlu0 %383 }
  0x99   : > { %v390_v22 = vsel %vm389_vm3, %v384_v21, %v386_v17  ;;  %v445_v23 = vpop.permute.xlu1 %444 }
  0x9a   : > { %398 = vmatpush1.bf16.msra.mxu1 %v390_v22  ;;  %855 = vmatmul.mubr.msk.bf16.vlgmr.msra.gmra.mrb[4].mxu0 %vm231_vm0, %v854_v20 }
  0x9b   : > { %488 = vmatprep.mubr.bf16.mxu0 %v965_v0 }
  0x9c   : > { %v447_v25 = vpop.permute.xlu0 %446 }
  0x9d   : > { %v443_v26 = vpop.permute.xlu1 %442  ;;  %v450_v27 = vsel %vm448_vm4, %v445_v23, %v447_v25  ;;  %857 = vmatmul.mubr.msk.bf16.vlgmr.msra.gmra.mrb[4].mxu1 %vm231_vm0, %v856_v24 }
  0x9e   : > { %v449_v28 = vsel %vm448_vm4, %v443_v26, %v445_v23  ;;  %456 = vmatprep.subr.bf16.mxu0 %v450_v27  ;;  %547 = vmatprep.mubr.bf16.mxu1 %v965_v0 }
  0x9f   : > { %457 = vmatpush1.bf16.msra.mxu0 %v449_v28 }
  0xa0   : > { %v504_v30 = vpop.permute.xlu0 %503 }
  0xa1   : > { %v506_v31 = vpop.permute.xlu1 %505 }
  0xa2   : > { %v509_v32 = vsel %vm507_vm5, %v504_v30, %v506_v31  ;;  %859 = vmatmul.mubr.msk.bf16.vlgmr.msra.gmra.mrb[8].mxu0 %vm231_vm0, %v858_v29 }
  0xa3   : > { %515 = vmatprep.subr.bf16.mxu1 %v509_v32  ;;  %606 = vmatprep.mubr.bf16.mxu0 %v965_v0 }
  0xa4   : > { %v502_v33 = vpop.permute.xlu0 %501 }
  0xa5   : > { %v508_v34 = vsel %vm507_vm5, %v502_v33, %v504_v30  ;;  %v563_v35 = vpop.permute.xlu1 %562 }
  0xa6   : > { %516 = vmatpush1.bf16.msra.mxu1 %v508_v34 }
  0xa8   : > { %v565_v37 = vpop.permute.xlu0 %564 }
  0xa9   : > { %v561_v38 = vpop.permute.xlu1 %560  ;;  %861 = vmatmul.mubr.msk.bf16.vlgmr.msra.gmra.mrb[8].mxu1 %vm231_vm0, %v860_v36  ;;  %v568_v39 = vsel %vm566_vm6, %v563_v35, %v565_v37 }
  0xaa   : > { %v567_v40 = vsel %vm566_vm6, %v561_v38, %v563_v35  ;;  %574 = vmatprep.subr.bf16.mxu0 %v568_v39  ;;  %665 = vmatprep.mubr.bf16.mxu1 %v965_v0 }
  0xab   : > { %575 = vmatpush1.bf16.msra.mxu0 %v567_v40 }
  0xac   : > { %v622_v42 = vpop.permute.xlu0 %621 }
  0xad   : > { %v624_v43 = vpop.permute.xlu1 %623 }
  0xae   : > { %863 = vmatmul.mubr.msk.bf16.vlgmr.msra.gmra.mrb[12].mxu0 %vm231_vm0, %v862_v41  ;;  %v627_v44 = vsel %vm625_vm7, %v622_v42, %v624_v43 }
  0xaf   : > { %633 = vmatprep.subr.bf16.mxu1 %v627_v44  ;;  %724 = vmatprep.mubr.bf16.mxu0 %v965_v0 }
  0xb0   : > { %v620_v45 = vpop.permute.xlu0 %619 }
  0xb1   : > { %v626_v46 = vsel %vm625_vm7, %v620_v45, %v622_v42  ;;  %v681_v47 = vpop.permute.xlu1 %680 }
  0xb2   : > { %634 = vmatpush1.bf16.msra.mxu1 %v626_v46 }
  0xb4   : > { %v683_v49 = vpop.permute.xlu0 %682 }
  0xb5   : > { %v679_v50 = vpop.permute.xlu1 %678  ;;  %865 = vmatmul.mubr.msk.bf16.vlgmr.msra.gmra.mrb[12].mxu1 %vm231_vm0, %v864_v48  ;;  %v686_v51 = vsel %vm684_vm8, %v681_v47, %v683_v49 }
  0xb6   : > { %v685_v52 = vsel %vm684_vm8, %v679_v50, %v681_v47  ;;  %692 = vmatprep.subr.bf16.mxu0 %v686_v51 }
  0xb7   : > { %693 = vmatpush1.bf16.msra.mxu0 %v685_v52 }
  0xba   : > { %867 = vmatmul.mubr.msk.bf16.vlgmr.msra.gmra.mrb[16].mxu0 %vm231_vm0, %v866_v53 }
  0xc5   : > { %v739_v37 = vpop.permute.xlu0 %738 }
  0xed   : > { %v315_v54 = vpop.f32.mrb[0].mxu1 }
  0xee   : > { %v317_v55 = vpop.f32.mrb[1].mxu1 }
  0xef   : > { %v319_v56 = vpop.f32.mrb[2].mxu1 }
  0xf0   : > { %v320_v57 = vpop.f32.mrb[3].mxu1 }
 0x165   : > { %v269_v58 = vpop.f32.mrb[0].mxu0 }
 0x166   : > { %v271_v59 = vpop.f32.mrb[1].mxu0  ;;  %v316_v60 = vadd.f32 %v315_v54, %v269_v58 }
 0x167   : > { %v273_v61 = vpop.f32.mrb[2].mxu0  ;;  %v318_v62 = vadd.f32 %v317_v55, %v271_v59 }
 0x168   : > { %v274_v63 = vpop.f32.mrb[3].mxu0 }
 0x16d   : > { %v372_v0 = vpop.f32.mrb[4].mxu0 }
 0x16e   : > { %v379_v1 = vadd.f32 %v372_v0, %v316_v60  ;;  %v374_v2 = vpop.f32.mrb[5].mxu0 }
 0x16f   : > { %v380_v3 = vadd.f32 %v374_v2, %v318_v62  ;;  %v376_v4 = vpop.f32.mrb[6].mxu0 }
 0x170   : > { %v431_v5 = vpop.f32.mrb[4].mxu1  ;;  %v377_v6 = vpop.f32.mrb[7].mxu0 }
 0x171   : > { %v438_v7 = vadd.f32 %v431_v5, %v379_v1  ;;  %v433_v8 = vpop.f32.mrb[5].mxu1 }
 0x172   : > { %v439_v9 = vadd.f32 %v433_v8, %v380_v3  ;;  %v435_v10 = vpop.f32.mrb[6].mxu1 }
 0x173   : > { %v436_v11 = vpop.f32.mrb[7].mxu1 }
 0x175   : > { %v490_v12 = vpop.f32.mrb[8].mxu0 }
 0x176   : > { %v497_v13 = vadd.f32 %v490_v12, %v438_v7  ;;  %v492_v14 = vpop.f32.mrb[9].mxu0 }
 0x177   : > { %v498_v15 = vadd.f32 %v492_v14, %v439_v9  ;;  %v494_v16 = vpop.f32.mrb[10].mxu0 }
 0x178   : > { %v495_v17 = vpop.f32.mrb[11].mxu0 }
 0x17c   : > { %v549_v18 = vpop.f32.mrb[8].mxu1 }
 0x17d   : > { %v556_v19 = vadd.f32 %v549_v18, %v497_v13  ;;  %v551_v20 = vpop.f32.mrb[9].mxu1 }
 0x17e   : > { %v557_v21 = vadd.f32 %v551_v20, %v498_v15  ;;  %v553_v22 = vpop.f32.mrb[10].mxu1 }
 0x17f   : > { %v554_v23 = vpop.f32.mrb[11].mxu1 }
 0x181   : > { %v608_v24 = vpop.f32.mrb[12].mxu0 }
 0x182   : > { %v615_v25 = vadd.f32 %v608_v24, %v556_v19  ;;  %v610_v26 = vpop.f32.mrb[13].mxu0 }
 0x183   : > { %v616_v27 = vadd.f32 %v610_v26, %v557_v21  ;;  %v612_v28 = vpop.f32.mrb[14].mxu0 }
 0x184   : > { %v613_v29 = vpop.f32.mrb[15].mxu0 }
 0x188   : > { %v667_v30 = vpop.f32.mrb[12].mxu1 }
 0x189   : > { %v674_v31 = vadd.f32 %v667_v30, %v615_v25  ;;  %v669_v32 = vpop.f32.mrb[13].mxu1 }
 0x18a   : > { %v675_v33 = vadd.f32 %v669_v32, %v616_v27  ;;  %v671_v34 = vpop.f32.mrb[14].mxu1 }
 0x18b   : > { %v672_v35 = vpop.f32.mrb[15].mxu1 }
 0x18d   : > { %v726_v36 = vpop.f32.mrb[16].mxu0 }
 0x18e   : > { %v733_v38 = vadd.f32 %v726_v36, %v674_v31  ;;  %v728_v39 = vpop.f32.mrb[17].mxu0 }
 0x18f   : > { %v734_v40 = vadd.f32 %v728_v39, %v675_v33  ;;  %v730_v41 = vpop.f32.mrb[18].mxu0 }
 0x190   : > { %v741_v42 = vadd.f32 %v739_v37, %v733_v38  ;;  %v731_v43 = vpop.f32.mrb[19].mxu0 }
 0x191   : > { %v742_v44 = vadd.f32 %v739_v37, %v734_v40 }
 0x192   : > { %vm743_vm9 = vcmp.ge.f32.partialorder %v741_v42, 0.0  ;;  %v745_v45 = vmul.f32 0.2, %v741_v42 }
 0x193   : > { %vm744_vm10 = vcmp.ge.f32.partialorder %v742_v44, 0.0  ;;  %v746_v46 = vmul.f32 0.2, %v742_v44 }
 0x194   : > { %v747_v47 = vsel %vm743_vm9, %v741_v42, %v745_v45 }
 0x195   : > { %v748_v48 = vsel %vm744_vm10, %v742_v44, %v746_v46  ;;  %749 = vst [vmem:[%s192_s20] sm:$0xff] %v747_v47 }
 0x196   : > { %750 = vst [vmem:[%s192_s20 + $0x8] sm:$0xff] %v748_v48 }
 0x197 PF: > { %s13_s16 = sadd.s32 1, %s963_s16   ;;  %s1106_s12 = smov %s955_s14 }
 0x198   : > { %p10_p7 = scmp.ge.s32.totalorder %s13_s16, 6   ;;  %s1107_s13 = smov %s959_s15 }
 0x199   : > { %s1108_s14 = smov %s1111_s17  ;;  %s1109_s15 = smov %s1115_s18 }
 0x19a   :  { %12 = sbr.rel (!%p10_p7) target bundleno = 3 (0x3), region = 71 }

// kernel: unet_forward.16
= control target key start
LH: loop header
LB: loop body
LE: loop exit
PB: predicated region body
PF: predicated region fallthrough
CT: control target
= control target key end

     0   :  { %s1530_s12 = smov 0   ;;  %s1532_s13 = smov 0   ;;  %s1777_s0 = inlined_call_operand.vmem [shape: bf16[9,32,8], index: 0, kind: input, shape index: {}]   ;;  %s1778_s1 = inlined_call_operand.vmem [shape: f32[32,1], index: 1, kind: input, shape index: {}]   ;;  %s1779_s2 = inlined_call_operand.vmem [shape: bf16[2,8,640], index: 2, kind: input, shape index: {}]   ;;  %s1780_s3 = inlined_call_operand.vmem [shape: f32[2,32,512], index: 3, kind: output, shape index: {}]  }
   0x1   :  { %s1534_s14 = smov 0   ;;  %s1536_s15 = smov 0  }
   0x2   :  { %s1538_s16 = smov 0   ;;  %s1540_s17 = smov 0  }
   0x3   :  { %s1542_s18 = smov 0  }
   0x4 LB: > { %s22_s19 = sadd.s32 1, %s1491_s16  ;;  %s25_s20 = sadd.s32 1, %s1495_s17  ;;  %s1499_s18 = sphi %s1542_s18, %s13_s18   ;;  %s1495_s17 = sphi %s1540_s17, %s1787_s17   ;;  %s1491_s16 = sphi %s1538_s16, %s1786_s16   ;;  %s1487_s15 = sphi %s1536_s15, %s1785_s15   ;;  %s1483_s14 = sphi %s1534_s14, %s1784_s14   ;;  %s1479_s13 = sphi %s1532_s13, %s1783_s13   ;;  %s1475_s12 = sphi %s1530_s12, %s1782_s12  }
   0x5   : > { %p23_p0 = scmp.ge.s32.totalorder %s22_s19, 2  ;;  %s1195_s21 = sadd.s32 4294967295, %s1499_s18  }
   0x6   : > { %p112_p1 = scmp.ne.s32.totalorder %s1479_s13, %s1475_s12  ;;  %p113_p2 = scmp.eq.s32.totalorder %s1195_s21, 3 }
   0x7   : > { %s1789_s19 = smov (%p23_p0, %s22_s19), 0  ;;  %s1791_s20 = smov (!%p23_p0, %s25_s20), %s1495_s17 }
   0x8   : > { %s98_s22 = ssub.s32 %s1491_s16, %s1789_s19  ;;  %p27_p3 = scmp.ge.s32.totalorder %s1791_s20, 2 }
   0x9   : > { %p1199_p4 = scmp.ge.s32.totalorder %s1499_s18, 1  ;;  %p1576_p5 = por %p113_p2, %p112_p1 }
   0xa   : > { %p151_p6 = scmp.lt.s32.totalorder %s1499_s18, 5  ;;  %s1793_s20 = smov (%p27_p3, %s1791_s20), 0 }
   0xb   : > { %s97_s24 = ssub.s32 %s1495_s17, %s1793_s20  ;;  %s102_s26 = sadd.s32 1, %s1479_s13 }
   0xc   : > { %p152_p7 = pnand %p1199_p4, %p151_p6  ;;  %s99_s25 = sor.u32 %s98_s22, %s97_s24 }
   0xd   : > { %p100_p8 = scmp.eq.s32.totalorder %s99_s25, 0  ;;  %p174_p9 = scmp.lt.s32.totalorder (!%p152_p7), %s1487_s15, 1  ;;  %v1501_v0 = vmov (!%p152_p7), 0   ;;  %v1045_v5 = vld [vmem:[%s1778_s1] sm:$0xff] (!%p152_p7)  ;;  %v1046_v6 = vld [vmem:[%s1778_s1 + $0x8] sm:$0xff] (!%p152_p7)  ;;  %v1047_v7 = vld [vmem:[%s1778_s1 + $0x10] sm:$0xff] (!%p152_p7) }
   0xe   : > { %155 = sbr.rel (%p152_p7) target bundleno = 455 (0x1c7), region = 32  ;;  %s1202_s28 = sshll.u32 (!%p152_p7), %s1483_s14, 8  ;;  %270 = vmatprep.mubr.bf16.mxu1 (!%p152_p7), %v1501_v0  ;;  %628 = vmatprep.mubr.bf16.mxu0 (!%p152_p7), %v1501_v0  ;;  %v1048_v8 = vld [vmem:[%s1778_s1 + $0x18] sm:$0xff] (!%p152_p7)  ;;  %vm221_vm0 = vcmask (!%p152_p7), 1039360   ;;  %vm231_vm1 = vcmask (!%p152_p7), 1043456   ;;  %v1427_v16 = vld [vmem:[%s1777_s0 + $0x10] sm:$0xff] (!%p152_p7)  }
   0xf   : > { %s1587_s27 = scalar_select %p100_p8, %s1479_s13, %s102_s26  }
  0x10   : > { %s182_s29 = sshra.s32 (!%p152_p7), %s1202_s28, 7  ;;  %1422 = vset.pattern.permute.xlu0 (!%p152_p7), %v1501_v0  ;;  %1423 = vset.pattern.permute.xlu1 (!%p152_p7), %v1501_v0  ;;  %s1502_s10 = smov (!%p152_p7), 127   ;;  %vm581_vm2 = vcmask (!%p152_p7), 891904   ;;  %vm224_vm3 = vcmask (!%p152_p7), 64512   ;;  %vm678_vm4 = vcmask (!%p152_p7), 883712   ;;  %v1428_v23 = vld [vmem:[%s1777_s0 + $0x40] sm:$0xff] (!%p152_p7)  }
  0x11   : > { %s1203_s5 = sshll.u32 (!%p152_p7), %s182_s29, 2  ;;  %s1503_s11 = smov (!%p152_p7), 109   ;;  %v1429_v27 = vld [vmem:[%s1777_s0 + $0x18] sm:$0xff] (!%p152_p7)   ;;  %vm775_vm5 = vcmask (!%p152_p7), 752640   ;;  %v1430_v36 = vld [vmem:[%s1777_s0] sm:$0xff] (!%p152_p7)   ;;  %v1431_v37 = vld [vmem:[%s1777_s0 + $0x50] sm:$0xff] (!%p152_p7)  }
  0x12   : > { %s1504_s21 = smov (!%p152_p7), 108   ;;  %s1505_s22 = smov (!%p152_p7), 92   ;;  %vm387_vm6 = vcmask (!%p152_p7), 1031168   ;;  %vm872_vm7 = vcmask (!%p152_p7), 744448   ;;  %v1432_v46 = vld [vmem:[%s1777_s0 + $0x8] sm:$0xff] (!%p152_p7)   ;;  %v1433_v47 = vld [vmem:[%s1777_s0 + $0x58] sm:$0xff] (!%p152_p7)  }
  0x13   : > { %s1506_s24 = smov (!%p152_p7), 126   ;;  %s1507_s25 = smov (!%p152_p7), 91   ;;  %vm484_vm8 = vcmask (!%p152_p7), 900096   ;;  %v1434_v55 = vld [vmem:[%s1777_s0 + $0x20] sm:$0xff] (!%p152_p7)   ;;  %vm969_vm9 = vcmask (!%p152_p7), 736256  }
  0x14   : > { %s1508_s26 = smov (!%p152_p7), 110   ;;  %s1509_s28 = smov (!%p152_p7), 90   ;;  %v1435_v56 = vld [vmem:[%s1777_s0 + $0x60] sm:$0xff] (!%p152_p7)  }
  0x15   : > { %s175_s30 = scalar_select %p174_p9, %s1487_s15, 1 }
  0x17   : > { %s1356_s4 = smul.u32 20, %s175_s30 }
  0x19   : > { %s178_s8 = scalar_lea.vmem %s1779_s2, %s1356_s4 }
  0x1a   : > { %s185_s9 = scalar_lea.vmem %s178_s8, %s1203_s5 }
  0x1b   : > { %v1424_v1 = vld [vmem:[%s185_s9 + $0x8] ss:$0 sps:$4 sm:$0xff]   ;;  %v186_v2 = vld [vmem:[%s185_s9] sm:$0xff] }
  0x1c   : > { %v1210_v3 = vcombine.low %v186_v2, %v186_v2  ;;  %219 = vrot.lane.b32.xlu1 %v1424_v1, %s1502_s10  ;;  %v1211_v4 = vcombine.high %v186_v2, %v186_v2  ;;  %v1436_v2 = vld [vmem:[%s1777_s0 + $0x28] sm:$0xff]  }
  0x1e   : > { %215 = vrot.lane.b32.xlu0 %v1210_v3, %s1502_s10  ;;  %v308_v21 = vsel %vm231_vm1, %v1210_v3, 0 }
  0x20   : > { %575 = vrot.lane.b32.xlu1 %v1210_v3, %s1503_s11 }
  0x22   : > { %217 = vrot.lane.b32.xlu0 %v1211_v4, %s1502_s10 }
  0x24   : > { %579 = vrot.lane.b32.xlu1 %v1424_v1, %s1503_s11 }
  0x26   : > { %577 = vrot.lane.b32.xlu0 %v1211_v4, %s1503_s11 }
  0x28   : > { %674 = vrot.lane.b32.xlu1 %v1211_v4, %s1504_s21 }
  0x2a   : > { %672 = vrot.lane.b32.xlu0 %v1210_v3, %s1504_s21 }
  0x2c   : > { %769 = vrot.lane.b32.xlu1 %v1210_v3, %s1505_s22 }
  0x2e   : > { %676 = vrot.lane.b32.xlu0 %v1424_v1, %s1504_s21 }
  0x30   : > { %773 = vrot.lane.b32.xlu1 %v1424_v1, %s1505_s22 }
  0x32   : > { %771 = vrot.lane.b32.xlu0 %v1211_v4, %s1505_s22 }
  0x34   : > { %383 = vrot.lane.b32.xlu1 %v1211_v4, %s1506_s24 }
  0x36   : > { %381 = vrot.lane.b32.xlu0 %v1210_v3, %s1506_s24 }
  0x38   : > { %866 = vrot.lane.b32.xlu1 %v1210_v3, %s1507_s25 }
  0x3a   : > { %385 = vrot.lane.b32.xlu0 %v1424_v1, %s1506_s24  ;;  %s171_s24 = sand.u32 1, %s1475_s12   ;;  %s1285_s12 = sshll.u32 (%p1576_p5), %s1483_s14, 1 }
  0x3c   : > { %870 = vrot.lane.b32.xlu1 %v1424_v1, %s1507_s25 }
  0x3e   : > { %868 = vrot.lane.b32.xlu0 %v1211_v4, %s1507_s25  ;;  %s1200_s25 = sshll.u32 %s171_s24, 6 }
  0x40   : > { %480 = vrot.lane.b32.xlu1 %v1211_v4, %s1508_s26 }
  0x42   : > { %478 = vrot.lane.b32.xlu0 %v1210_v3, %s1508_s26 }
  0x44   : > { %963 = vrot.lane.b32.xlu1 %v1210_v3, %s1509_s28  ;;  %v1437_v3 = vld [vmem:[%s1777_s0 + $0x68] sm:$0xff]  }
  0x46   : > { %482 = vrot.lane.b32.xlu0 %v1424_v1, %s1508_s26  ;;  %s1731_s26 = scalar_lea.vmem [#allocation2], %s1200_s25 }
  0x48   : > { %967 = vrot.lane.b32.xlu1 %v1424_v1, %s1509_s28 }
  0x4a   : > { %965 = vrot.lane.b32.xlu0 %v1211_v4, %s1509_s28  ;;  %s1286_s28 = sshll.u32 (%p1576_p5), %s1487_s15, 4 }
  0x4b   : > { %s1094_s29 = sadd.s32 (%p1576_p5), %s1286_s28, %s1285_s12 }
  0x4c   : > { %1056 = vperm.xlu1 %1423, %v1046_v6   ;;  %v1439_v6 = vld [vmem:[%s1777_s0 + $0x70] sm:$0xff]   ;;  %s1287_s23 = sshll.u32 (%p1576_p5), %s1094_s29, 3 }
  0x4d   : > { %s1096_s5 = scalar_lea.vmem (%p1576_p5), %s1780_s3, %s1287_s23 }
  0x4e   : > { %1051 = vperm.xlu0 %1422, %v1045_v5   ;;  %v1438_v5 = vld [vmem:[%s1777_s0 + $0x30] sm:$0xff]  }
  0x50   : > { %1061 = vperm.xlu1 %1423, %v1047_v7  }
  0x52   : > { %1066 = vperm.xlu0 %1422, %v1048_v8   ;;  %v1440_v8 = vld [vmem:[%s1777_s0 + $0x38] sm:$0xff]  }
  0x8e   : > { %v220_v9 = vpop.permute.xlu1 %219 }
  0x90   : > { %v216_v10 = vpop.permute.xlu0 %215 }
  0x92   : > { %v576_v11 = vpop.permute.xlu1 %575 }
  0x94   : > { %v218_v12 = vpop.permute.xlu0 %217 }
  0x95   : > { %v223_v13 = vsel %vm221_vm0, %v218_v12, %v220_v9  ;;  %v222_v14 = vsel %vm221_vm0, %v216_v10, %v218_v12  ;;  %v1441_v9 = vld [vmem:[%s1777_s0 + $0x78] sm:$0xff]   ;;  %v1442_v10 = vld [vmem:[%s1777_s0 + $0x80] sm:$0xff]   ;;  %v1444_v12 = vld [vmem:[%s1777_s0 + $0x88] sm:$0xff]  }
  0x96   : > { %1213 = vmatprep.subr.msk.bf16.mxu1 %vm231_vm1, %v223_v13  ;;  %v233_v15 = vsel %vm231_vm1, %v222_v14, 0  ;;  %v580_v17 = vpop.permute.xlu1 %579 }
  0x97   : > { %239 = vmatpush1.bf16.msra.mxu1 %v233_v15 }
  0x98   : > { %v578_v18 = vpop.permute.xlu0 %577  ;;  %1218 = vmatprep.subr.msk.bf16.mxu1 %vm231_vm1, %v1211_v4 }
  0x99   : > { %v1617_v19 = vsel %vm581_vm2, %v578_v18, %v580_v17  ;;  %v582_v20 = vsel %vm581_vm2, %v576_v11, %v578_v18  ;;  %v1443_v11 = vld [vmem:[%s1777_s0 + $0x48] sm:$0xff]  }
  0x9a   : > { %1214 = vmatmul.mubr.msk.bf16.vlgmr.msra.gmra.mrb[0].mxu1 %vm224_vm3, %v1427_v16  ;;  %1245 = vmatprep.subr.msk.bf16.mxu0 %vm231_vm1, %v1617_v19  ;;  %v1624_v22 = vsel %vm231_vm1, %v582_v20, 0  ;;  %v675_v24 = vpop.permute.xlu1 %674 }
  0x9b   : > { %597 = vmatpush1.bf16.msra.mxu0 %v1624_v22  ;;  %280 = vmatprep.mubr.bf16.mxu1 %v1501_v0 }
  0x9c   : > { %v673_v25 = vpop.permute.xlu0 %672  ;;  %314 = vmatpush1.bf16.msra.mxu1 %v308_v21 }
  0x9d   : > { %v679_v26 = vsel %vm678_vm4, %v673_v25, %v675_v24 }
  0x9e   : > { %1246 = vmatmul.mubr.msk.bf16.vlgmr.msra.gmra.mrb[0].mxu0 %vm224_vm3, %v1428_v23  ;;  %v770_v28 = vpop.permute.xlu1 %769  ;;  %v688_v29 = vsel %vm231_vm1, %v679_v26, 0 }
  0x9f   : > { %725 = vmatprep.mubr.bf16.mxu0 %v1501_v0 }
  0xa0   : > { %v677_v30 = vpop.permute.xlu0 %676 }
  0xa1   : > { %v680_v31 = vsel %vm678_vm4, %v675_v24, %v677_v30 }
  0xa2   : > { %1215 = vmatmul.mubr.msk.bf16.gmra.mrb[4].mxu1 %vm224_vm3, %v1429_v27  ;;  %1254 = vmatprep.subr.msk.bf16.mxu0 %vm231_vm1, %v680_v31  ;;  %v774_v32 = vpop.permute.xlu1 %773 }
  0xa3   : > { %694 = vmatpush1.bf16.msra.mxu0 %v688_v29  ;;  %345 = vmatprep.mubr.bf16.mxu1 %v1501_v0 }
  0xa4   : > { %v772_v33 = vpop.permute.xlu0 %771 }
  0xa5   : > { %v776_v34 = vsel %vm775_vm5, %v770_v28, %v772_v33  ;;  %v777_v35 = vsel %vm775_vm5, %v772_v33, %v774_v32 }
  0xa6   : > { %1263 = vmatprep.subr.msk.bf16.mxu0 %vm231_vm1, %v777_v35  ;;  %v384_v38 = vpop.permute.xlu1 %383  ;;  %v785_v39 = vsel %vm231_vm1, %v776_v34, 0 }
  0xa8   : > { %v382_v40 = vpop.permute.xlu0 %381 }
  0xa9   : > { %v388_v41 = vsel %vm387_vm6, %v382_v40, %v384_v38 }
  0xaa   : > { %1219 = vmatmul.mubr.msk.bf16.vlgmr.msra.gmra.mrb[0].mxu1 %vm224_vm3, %v1430_v36  ;;  %1255 = vmatmul.mubr.msk.bf16.vlgmr.msra.gmra.mrb[0].mxu0 %vm224_vm3, %v1431_v37  ;;  %v867_v42 = vpop.permute.xlu1 %866  ;;  %v397_v43 = vsel %vm231_vm1, %v388_v41, 0 }
  0xab   : > { %791 = vmatpush1.bf16.msra.mxu0 %v785_v39  ;;  %355 = vmatprep.mubr.bf16.mxu1 %v1501_v0 }
  0xac   : > { %v386_v44 = vpop.permute.xlu0 %385  ;;  %735 = vmatprep.mubr.bf16.mxu0 %v1501_v0 }
  0xad   : > { %v389_v45 = vsel %vm387_vm6, %v384_v38, %v386_v44 }
  0xae   : > { %1227 = vmatprep.subr.msk.bf16.mxu1 %vm231_vm1, %v389_v45  ;;  %v871_v48 = vpop.permute.xlu1 %870 }
  0xaf   : > { %403 = vmatpush1.bf16.msra.mxu1 %v397_v43 }
  0xb0   : > { %v869_v49 = vpop.permute.xlu0 %868 }
  0xb1   : > { %v874_v50 = vsel %vm872_vm7, %v869_v49, %v871_v48  ;;  %v873_v54 = vsel %vm872_vm7, %v867_v42, %v869_v49 }
  0xb2   : > { %1220 = vmatmul.mubr.msk.bf16.gmra.mrb[4].mxu1 %vm224_vm3, %v1432_v46  ;;  %1256 = vmatmul.mubr.msk.bf16.gmra.mrb[4].mxu0 %vm224_vm3, %v1433_v47  ;;  %v481_v51 = vpop.permute.xlu1 %480  ;;  %v882_v60 = vsel %vm231_vm1, %v873_v54, 0 }
  0xb3   : > { %434 = vmatprep.mubr.bf16.mxu1 %v1501_v0  ;;  %822 = vmatprep.mubr.bf16.mxu0 %v1501_v0 }
  0xb4   : > { %v479_v52 = vpop.permute.xlu0 %478  ;;  %1272 = vmatprep.subr.msk.bf16.mxu0 %vm231_vm1, %v874_v50 }
  0xb5   : > { %v485_v53 = vsel %vm484_vm8, %v479_v52, %v481_v51 }
  0xb6   : > { %v964_v57 = vpop.permute.xlu1 %963  ;;  %v494_v58 = vsel %vm231_vm1, %v485_v53, 0 }
  0xb8   : > { %v483_v59 = vpop.permute.xlu0 %482 }
  0xb9   : > { %v486_v61 = vsel %vm484_vm8, %v481_v51, %v483_v59 }
  0xba   : > { %1228 = vmatmul.mubr.msk.bf16.vlgmr.msra.gmra.mrb[0].mxu1 %vm224_vm3, %v1434_v55  ;;  %1236 = vmatprep.subr.msk.bf16.mxu1 %vm231_vm1, %v486_v61  ;;  %v968_v62 = vpop.permute.xlu1 %967 }
  0xbb   : > { %1264 = vmatmul.mubr.msk.bf16.vlgmr.msra.gmra.mrb[0].mxu0 %vm224_vm3, %v1435_v56  ;;  %500 = vmatpush1.bf16.msra.mxu1 %v494_v58 }
  0xbc   : > { %888 = vmatpush1.bf16.msra.mxu0 %v882_v60  ;;  %1290 = vmatprep.subr.msk.bf16.mxu1 %vm231_vm1, %v1617_v19  ;;  %v966_v63 = vpop.permute.xlu0 %965 }
  0xbd   : > { %444 = vmatprep.mubr.bf16.mxu1 %v1501_v0  ;;  %832 = vmatprep.mubr.bf16.mxu0 %v1501_v0  ;;  %v971_v1 = vsel %vm969_vm9, %v966_v63, %v968_v62  ;;  %v970_v4 = vsel %vm969_vm9, %v964_v57, %v966_v63 }
  0xbe   : > { %1281 = vmatprep.subr.msk.bf16.mxu0 %vm231_vm1, %v971_v1  ;;  %v979_v7 = vsel %vm231_vm1, %v970_v4, 0 }
  0xc2   : > { %1229 = vmatmul.mubr.msk.bf16.gmra.mrb[4].mxu1 %vm224_vm3, %v1436_v2 }
  0xc3   : > { %1265 = vmatmul.mubr.msk.bf16.gmra.mrb[4].mxu0 %vm224_vm3, %v1437_v3  ;;  %531 = vmatprep.mubr.bf16.mxu1 %v1501_v0 }
  0xc4   : > { %919 = vmatprep.mubr.bf16.mxu0 %v1501_v0 }
  0xca   : > { %1237 = vmatmul.mubr.msk.bf16.vlgmr.msra.gmra.mrb[0].mxu1 %vm224_vm3, %v1438_v5 }
  0xcb   : > { %1291 = vmatpush1.bf16.msra.mxu1 %v1624_v22  ;;  %1273 = vmatmul.mubr.msk.bf16.vlgmr.msra.gmra.mrb[0].mxu0 %vm224_vm3, %v1439_v6  ;;  %v1057_v22 = vpop.permute.xlu1 %1056 }
  0xcc   : > { %985 = vmatpush1.bf16.msra.mxu0 %v979_v7  ;;  %541 = vmatprep.mubr.bf16.mxu1 %v1501_v0 }
  0xcd   : > { %929 = vmatprep.mubr.bf16.mxu0 %v1501_v0  ;;  %v1052_v18 = vpop.permute.xlu0 %1051 }
  0xcf   : > { %v1062_v35 = vpop.permute.xlu1 %1061 }
  0xd1   : > { %v1067_v45 = vpop.permute.xlu0 %1066 }
  0xd2   : > { %1238 = vmatmul.mubr.msk.bf16.gmra.mrb[4].mxu1 %vm224_vm3, %v1440_v8 }
  0xd3   : > { %1274 = vmatmul.mubr.msk.bf16.gmra.mrb[4].mxu0 %vm224_vm3, %v1441_v9  ;;  %638 = vmatprep.mubr.bf16.mxu1 %v1501_v0 }
  0xd4   : > { %1016 = vmatprep.mubr.bf16.mxu0 %v1501_v0 }
  0xdb   : > { %1282 = vmatmul.mubr.msk.bf16.vlgmr.msra.gmra.mrb[0].mxu0 %vm224_vm3, %v1442_v10 }
  0xdc   : > { %1026 = vmatprep.mubr.bf16.mxu0 %v1501_v0 }
  0xde   : > { %1247 = vmatmul.mubr.msk.bf16.vlgmr.msra.gmra.mrb[4].mxu1 %vm224_vm3, %v1443_v11 }
  0xe3   : > { %1283 = vmatmul.mubr.msk.bf16.gmra.mrb[4].mxu0 %vm224_vm3, %v1444_v12 }
 0x19d   : > { %v533_v13 = vpop.f32.mrb[0].mxu1 }
 0x19e   : > { %v535_v14 = vpop.f32.mrb[1].mxu1 }
 0x19f   : > { %v537_v15 = vpop.f32.mrb[2].mxu1 }
 0x1a0   : > { %v539_v16 = vpop.f32.mrb[3].mxu1 }
 0x1ae   : > { %v1018_v17 = vpop.f32.mrb[0].mxu0 }
 0x1af   : > { %v1292_v19 = vadd.f32 %v1018_v17, %v533_v13  ;;  %v1020_v20 = vpop.f32.mrb[1].mxu0 }
 0x1b0   : > { %v1293_v21 = vadd.f32 %v1020_v20, %v535_v14  ;;  %v1022_v0 = vpop.f32.mrb[2].mxu0 }
 0x1b1   : > { %v1294_v23 = vadd.f32 %v1022_v0, %v537_v15  ;;  %v1069_v24 = vadd.f32 %v1292_v19, %v1052_v18  ;;  %v1024_v25 = vpop.f32.mrb[3].mxu0  ;;  %v640_v26 = vpop.f32.mrb[4].mxu1 }
 0x1b2   : > { %v1070_v27 = vadd.f32 %v1293_v21, %v1052_v18  ;;  %v1295_v28 = vadd.f32 %v1024_v25, %v539_v16  ;;  %v642_v29 = vpop.f32.mrb[5].mxu1 }
 0x1b3   : > { %1077 = vst [vmem:[%s1731_s26] sm:$0xff] %v1069_v24  ;;  %v1071_v30 = vadd.f32 %v1294_v23, %v1057_v22  ;;  %v644_v31 = vpop.f32.mrb[6].mxu1 }
 0x1b4   : > { %1078 = vst [vmem:[%s1731_s26 + $0x8] sm:$0xff] %v1070_v27  ;;  %v1072_v32 = vadd.f32 %v1295_v28, %v1057_v22  ;;  %v646_v33 = vpop.f32.mrb[7].mxu1 }
 0x1b5   : > { %1079 = vst [vmem:[%s1731_s26 + $0x10] sm:$0xff] %v1071_v30 }
 0x1b6   : > { %1080 = vst [vmem:[%s1731_s26 + $0x18] sm:$0xff] %v1072_v32  ;;  %v1028_v34 = vpop.f32.mrb[4].mxu0 }
 0x1b7   : > { %v1296_v36 = vadd.f32 %v1028_v34, %v640_v26  ;;  %v1030_v37 = vpop.f32.mrb[5].mxu0 }
 0x1b8   : > { %v1297_v38 = vadd.f32 %v1030_v37, %v642_v29  ;;  %v1032_v39 = vpop.f32.mrb[6].mxu0  ;;  %1091 = sbr.rel (!%p1576_p5) target bundleno = 455 (0x1c7), region = 36 }
 0x1b9   : > { %v1073_v40 = vadd.f32 %v1296_v36, %v1062_v35  ;;  %v1298_v41 = vadd.f32 %v1032_v39, %v644_v31  ;;  %v1034_v42 = vpop.f32.mrb[7].mxu0 }
 0x1ba   : > { %v1074_v43 = vadd.f32 %v1297_v38, %v1062_v35  ;;  %v1299_v44 = vadd.f32 %v1034_v42, %v646_v33  ;;  %v1109_v48 = vld [vmem:[%s1731_s26] sm:$0xff] (%p1576_p5) }
 0x1bb   : > { %1081 = vst [vmem:[%s1731_s26 + $0x20] sm:$0xff] %v1073_v40  ;;  %v1075_v46 = vadd.f32 %v1298_v41, %v1067_v45  ;;  %v1111_v49 = vld [vmem:[%s1731_s26 + $0x8] sm:$0xff] (%p1576_p5)  ;;  %1110 = vst [vmem:[%s1096_s5] sm:$0xff] (%p1576_p5), %v1109_v48 }
 0x1bc   : > { %1082 = vst [vmem:[%s1731_s26 + $0x28] sm:$0xff] %v1074_v43  ;;  %v1076_v47 = vadd.f32 %v1299_v44, %v1067_v45  ;;  %v1113_v50 = vld [vmem:[%s1731_s26 + $0x10] sm:$0xff] (%p1576_p5)  ;;  %1112 = vst [vmem:[%s1096_s5 + $0x8] sm:$0xff] (%p1576_p5), %v1111_v49 }
 0x1bd   : > { %1083 = vst [vmem:[%s1731_s26 + $0x30] sm:$0xff] %v1075_v46  ;;  %v1115_v51 = vld [vmem:[%s1731_s26 + $0x18] sm:$0xff] (%p1576_p5)  ;;  %1114 = vst [vmem:[%s1096_s5 + $0x20] sm:$0xff] (%p1576_p5), %v1113_v50 }
 0x1be   : > { %1084 = vst [vmem:[%s1731_s26 + $0x38] sm:$0xff] %v1076_v47  ;;  %1116 = vst [vmem:[%s1096_s5 + $0x28] sm:$0xff] (%p1576_p5), %v1115_v51 }
 0x1c2   : > { %v1117_v52 = vld [vmem:[%s1731_s26 + $0x20] sm:$0xff] }
 0x1c3   : > { %v1119_v53 = vld [vmem:[%s1731_s26 + $0x28] sm:$0xff]  ;;  %1118 = vst [vmem:[%s1096_s5 + $0x40] sm:$0xff] %v1117_v52 }
 0x1c4   : > { %v1121_v54 = vld [vmem:[%s1731_s26 + $0x30] sm:$0xff]  ;;  %1120 = vst [vmem:[%s1096_s5 + $0x48] sm:$0xff] %v1119_v53 }
 0x1c5   : > { %v1123_v55 = vld [vmem:[%s1731_s26 + $0x38] sm:$0xff]  ;;  %1122 = vst [vmem:[%s1096_s5 + $0x60] sm:$0xff] %v1121_v54 }
 0x1c6   : > { %1124 = vst [vmem:[%s1096_s5 + $0x68] sm:$0xff] %v1123_v55 }
 0x1c7 PF: > { %s13_s18 = sadd.s32 1, %s1499_s18   ;;  %s1782_s12 = smov %s1479_s13 }
 0x1c8   : > { %p10_p10 = scmp.ge.s32.totalorder %s13_s18, 6   ;;  %s1783_s13 = smov %s1587_s27 }
 0x1c9   : > { %s1784_s14 = smov %s1491_s16  ;;  %s1785_s15 = smov %s1495_s17 }
 0x1ca   : > { %s1786_s16 = smov %s1789_s19  ;;  %s1787_s17 = smov %s1793_s20 }
 0x1cb   :  { %12 = sbr.rel (!%p10_p10) target bundleno = 4 (0x4), region = 94 }

// kernel: unet_forward.17
= control target key start
LH: loop header
LB: loop body
LE: loop exit
PB: predicated region body
PF: predicated region fallthrough
CT: control target
= control target key end

     0   :  { %s569_s12 = smov 0   ;;  %s571_s13 = smov 0   ;;  %s634_s0 = inlined_call_operand.vmem [shape: bf16[1,8,11], index: 0, kind: input, shape index: {}]   ;;  %s635_s1 = inlined_call_operand.vmem [shape: f32[8,1], index: 1, kind: input, shape index: {}]   ;;  %s636_s2 = inlined_call_operand.vmem [shape: bf16[2,11,1024], index: 2, kind: input, shape index: {}]   ;;  %s637_s3 = inlined_call_operand.vmem [shape: f32[2,8,1024], index: 3, kind: output, shape index: {}]  }
   0x1   :  { %s573_s14 = smov 0   ;;  %s575_s15 = smov 0  }
   0x2   :  { %s577_s16 = smov 0  }
   0x3 LB: > { %s22_s17 = sadd.s32 1, %s537_s14  ;;  %s25_s18 = sadd.s32 1, %s541_s15  ;;  %s545_s16 = sphi %s577_s16, %s13_s16   ;;  %s541_s15 = sphi %s575_s15, %s641_s15   ;;  %s537_s14 = sphi %s573_s14, %s640_s14   ;;  %s533_s13 = sphi %s571_s13, %s639_s13   ;;  %s529_s12 = sphi %s569_s12, %s638_s12  }
   0x4   : > { %p23_p0 = scmp.ge.s32.totalorder %s22_s17, 2  ;;  %p439_p1 = scmp.ge.s32.totalorder %s545_s16, 1 }
   0x5   : > { %p151_p2 = scmp.lt.s32.totalorder %s545_s16, 5 }
   0x6   : > { %s643_s17 = smov (%p23_p0, %s22_s17), 0  ;;  %s645_s18 = smov (!%p23_p0, %s25_s18), %s541_s15 }
   0x7   : > { %p152_p3 = pnand %p439_p1, %p151_p2  ;;  %p27_p4 = scmp.ge.s32.totalorder %s645_s18, 2 }
   0x8   : > { %p179_p5 = scmp.lt.s32.totalorder (!%p152_p3), %s533_s13, 1  ;;  %s445_s19 = sshll.u32 (!%p152_p3), %s529_s12, 9  ;;  %vm231_vm0 = vcmask (!%p152_p3), 1044480   ;;  %v547_v0 = vmov (!%p152_p3), 0   ;;  %v205_v1 = vld [vmem:[%s635_s1] sm:$0xff] (!%p152_p3)  ;;  %vm232_vm1 = vcmask (!%p152_p3), 1045504  }
   0x9   : > { %s647_s18 = smov (%p27_p4, %s645_s18), 0  ;;  %155 = sbr.rel (%p152_p3) target bundleno = 265 (0x109), region = 32 }
   0xa   : > { %s196_s20 = sshra.s32 (!%p152_p3), %s445_s19, 7  ;;  %279 = vmatprep.mubr.bf16.mxu0 (!%p152_p3), %v547_v0  ;;  %320 = vmatprep.mubr.bf16.mxu1 (!%p152_p3), %v547_v0  ;;  %v548_v2 = vmov (!%p152_p3), 65535   ;;  %v204_v17 = vld [vmem:[%s634_s0] sm:$0xf] (!%p152_p3)  ;;  %vm227_vm2 = vcmask (!%p152_p3), 89088   ;;  %s442_s4 = sshll.u32 (!%p152_p3), %s529_s12, 2 }
   0xb   : > { %498 = vset.pattern.permute.xlu0 (!%p152_p3), %v547_v0  ;;  %s446_s23 = sshll.u32 (!%p152_p3), %s196_s20, 2  ;;  %v233_v3 = vsel (!%p152_p3), %vm231_vm0, 4294967295, %v548_v2  ;;  %p187_p6 = scmp.lt.s32.totalorder (!%p152_p3), %s442_s4, 7 }
   0xc   : > { %208 = vperm.xlu0 (!%p152_p3), %498, %v205_v1   ;;  %v234_v6 = vsel (!%p152_p3), %vm232_vm1, %v233_v3, 0 }
  0x10   : > { %s649_s13 = smov (!%p179_p5, %s533_s13), 1  ;;  %s651_s4 = smov (!%p187_p6, %s442_s4), 7 }
  0x11   : > { %s455_s24 = sshll.u32 %s649_s13, 6  ;;  %s443_s5 = sshll.u32 %s649_s13, 3 }
  0x12   : > { %s183_s27 = scalar_lea.vmem %s636_s2, %s455_s24  ;;  %s190_s6 = sadd.s32 %s443_s5, %s651_s4 }
  0x13   : > { %s199_s28 = scalar_lea.vmem %s183_s27, %s446_s23  ;;  %s444_s7 = sshll.u32 %s190_s6, 3 }
  0x14   : > { %v200_v4 = vld [vmem:[%s199_s28] sm:$0xff]  ;;  %v201_v7 = vld [vmem:[%s199_s28 + $0x8] sm:$0xff]  ;;  %s192_s10 = scalar_lea.vmem %s637_s3, %s444_s7 }
  0x15   : > { %v202_v5 = vld [vmem:[%s199_s28 + $0x20] sm:$0x33]  ;;  %v203_v9 = vld [vmem:[%s199_s28 + $0x28] sm:$0x33] }
  0x16   : > { %v448_v8 = vcombine.high %v200_v4, %v202_v5  ;;  %v447_v10 = vcombine.low %v200_v4, %v202_v5  ;;  %v450_v11 = vcombine.high %v201_v7, %v203_v9  ;;  %v449_v12 = vcombine.low %v201_v7, %v203_v9 }
  0x18   : > { %v239_v13 = vand.u32 %v448_v8, %v234_v6  ;;  %v236_v14 = vand.u32 %v447_v10, %v234_v6  ;;  %v245_v15 = vand.u32 %v450_v11, %v234_v6  ;;  %v242_v16 = vand.u32 %v449_v12, %v234_v6 }
  0x1a   : > { %247 = vmatprep.subr.bf16.mxu0 %v239_v13  ;;  %288 = vmatprep.subr.bf16.mxu1 %v245_v15 }
  0x1b   : > { %248 = vmatpush1.bf16.msra.mxu0 %v236_v14  ;;  %289 = vmatpush1.bf16.msra.mxu1 %v242_v16 }
  0x1e   : > { %451 = vmatmul.mubr.msk.bf16.vlgmr.msra.gmra.mrb[0].mxu0 %vm227_vm2, %v204_v17  ;;  %452 = vmatmul.mubr.msk.bf16.vlgmr.msra.gmra.mrb[0].mxu1 %vm227_vm2, %v204_v17 }
  0x8b   : > { %v209_v18 = vpop.permute.xlu0 %208 }
  0xf1   : > { %v281_v19 = vpop.f32.mrb[0].mxu0  ;;  %v322_v21 = vpop.f32.mrb[0].mxu1 }
  0xf2   : > { %v282_v20 = vadd.f32 %v281_v19, %v209_v18  ;;  %v283_v22 = vpop.f32.mrb[1].mxu0  ;;  %v323_v23 = vadd.f32 %v322_v21, %v209_v18  ;;  %v324_v25 = vpop.f32.mrb[1].mxu1 }
  0xf3   : > { %v284_v24 = vadd.f32 %v283_v22, %v209_v18  ;;  %v285_v26 = vpop.f32.mrb[2].mxu0  ;;  %v325_v28 = vadd.f32 %v324_v25, %v209_v18  ;;  %v326_v29 = vpop.f32.mrb[2].mxu1 }
  0xf4   : > { %v329_v27 = vmul.f32 0.5, %v282_v20  ;;  %v286_v30 = vpop.f32.mrb[3].mxu0  ;;  %v331_v31 = vmul.f32 0.5, %v323_v23  ;;  %v327_v33 = vpop.f32.mrb[3].mxu1 }
  0xf5   : > { %v330_v32 = vmul.f32 0.5, %v284_v24  ;;  %v332_v34 = vmul.f32 0.5, %v325_v28 }
  0xf6   : > { %499 = vtanh.f32 %v329_v27 }
  0xf7   : > { %501 = vtanh.f32 %v331_v31 }
  0xf8   : > { %503 = vtanh.f32 %v330_v32 }
  0xf9   : > { %505 = vtanh.f32 %v332_v34 }
 0x100   : > { %v500_v35 = vpop.eup %499 }
 0x101   : > { %v502_v36 = vpop.eup %501  ;;  %v337_v37 = vadd.f32 1.0, %v500_v35 }
 0x102   : > { %v504_v38 = vpop.eup %503  ;;  %v339_v39 = vadd.f32 1.0, %v502_v36 }
 0x103   : > { %v506_v40 = vpop.eup %505  ;;  %v341_v41 = vmul.f32 0.5, %v337_v37  ;;  %v338_v42 = vadd.f32 1.0, %v504_v38 }
 0x104   : > { %v343_v43 = vmul.f32 0.5, %v339_v39  ;;  %v340_v44 = vadd.f32 1.0, %v506_v40 }
 0x105   : > { %345 = vst [vmem:[%s192_s10] sm:$0xff] %v341_v41  ;;  %v342_v45 = vmul.f32 0.5, %v338_v42 }
 0x106   : > { %347 = vst [vmem:[%s192_s10 + $0x10] sm:$0xff] %v343_v43  ;;  %v344_v46 = vmul.f32 0.5, %v340_v44 }
 0x107   : > { %346 = vst [vmem:[%s192_s10 + $0x8] sm:$0xff] %v342_v45 }
 0x108   : > { %348 = vst [vmem:[%s192_s10 + $0x18] sm:$0xff] %v344_v46 }
 0x109 PF: > { %s13_s16 = sadd.s32 1, %s545_s16   ;;  %s638_s12 = smov %s537_s14 }
 0x10a   : > { %p10_p7 = scmp.ge.s32.totalorder %s13_s16, 6   ;;  %s639_s13 = smov %s541_s15 }
 0x10b   : > { %s640_s14 = smov %s643_s17  ;;  %s641_s15 = smov %s647_s18 }
 0x10c   :  { %12 = sbr.rel (!%p10_p7) target bundleno = 3 (0x3), region = 63 }

</bundles_post_ra>
